<compile_context>
chip_gen: v5e
topology: v5e:2x2
jax: 0.10.0
libtpu: 0.0.40
codegen_flags: <defaults>
</compile_context>

<pallas_src>
import functools
import math

import jax
import jax.numpy as jnp
from jax import lax
from jax.experimental import pallas as pl
from jax.experimental.pallas import tpu as pltpu

# Use full-precision MXU passes for f32 matmuls in both the kernels and the
# pure-JAX reference so the correctness check is apples-to-apples.
jax.config.update("jax_default_matmul_precision", "highest")

_VMEM_LIMIT = 48 * 1024 * 1024  # safe on v5e/v6e (128 MiB) and v7x (64 MiB)


# ---------------------------------------------------------------------------
# helpers
# ---------------------------------------------------------------------------
def _round_up(x, m):
    return (x + m - 1) // m * m


def _pick_tile(n, candidates=(512, 256, 128)):
    """Largest candidate dividing n, else the full dim (always legal)."""
    for c in candidates:
        if n % c == 0:
            return c
    return n


# ---------------------------------------------------------------------------
# Kernel 1: tiled matmul on the MXU (projections wq/wk/wv fused, and wo)
# ---------------------------------------------------------------------------
def _matmul_kernel(a_ref, b_ref, o_ref, acc_ref):
    @pl.when(pl.program_id(2) == 0)
    def _():
        acc_ref[...] = jnp.zeros_like(acc_ref)

    acc_ref[...] += jnp.dot(a_ref[...], b_ref[...],
                            preferred_element_type=jnp.float32)

    @pl.when(pl.program_id(2) == pl.num_programs(2) - 1)
    def _():
        o_ref[...] = acc_ref[...].astype(o_ref.dtype)


def matmul(a, b):
    """a @ b with f32 accumulation. a: (M, K), b: (K, N)."""
    M, K = a.shape
    K2, N = b.shape
    assert K == K2
    out_dtype = jnp.promote_types(a.dtype, b.dtype)

    # Sublane-aligned row tile; pad the tail instead of asserting.
    tm = min(_round_up(M, 8), 256)
    pm = _round_up(M, tm)
    if pm != M:
        a = jnp.pad(a, ((0, pm - M), (0, 0)))
    tn = _pick_tile(N)
    tk = _pick_tile(K)

    bytes_in = a.dtype.itemsize
    cost = pl.CostEstimate(
        flops=2 * pm * N * K,
        transcendentals=0,
        bytes_accessed=(pm * K + K * N) * bytes_in
        + pm * N * jnp.dtype(out_dtype).itemsize,
    )

    out = pl.pallas_call(
        _matmul_kernel,
        out_shape=jax.ShapeDtypeStruct((pm, N), out_dtype),
        grid_spec=pltpu.PrefetchScalarGridSpec(
            num_scalar_prefetch=0,
            grid=(pm // tm, N // tn, K // tk),
            in_specs=[
                pl.BlockSpec((tm, tk), lambda i, j, k: (i, k)),
                pl.BlockSpec((tk, tn), lambda i, j, k: (k, j)),
            ],
            out_specs=pl.BlockSpec((tm, tn), lambda i, j, k: (i, j)),
            scratch_shapes=[pltpu.VMEM((tm, tn), jnp.float32)],
        ),
        compiler_params=pltpu.CompilerParams(
            dimension_semantics=("parallel", "parallel", "arbitrary"),
            vmem_limit_bytes=_VMEM_LIMIT,
        ),
        cost_estimate=cost,
    )(a, b)
    return out[:M]


# ---------------------------------------------------------------------------
# Kernel 2: rotary embedding (elementwise, row-tiled, lane axis = n_heads*dh)
# ---------------------------------------------------------------------------
def _rotary_kernel(xq_ref, xk_ref, fl_ref, fr_ref, oq_ref, ok_ref):
    fl = fl_ref[...]
    fr = fr_ref[...]
    # NOTE: the reference builds xq_/xk_ with `[..., slice(0, 2)]`, which keeps
    # both halves (an identity re-view), so xq_ == xq and xk_ == xk.
    xq = xq_ref[...]
    xk = xk_ref[...]
    oq_ref[...] = xq * fl + xq * fr
    ok_ref[...] = xk * fl + xk * fr


def apply_rotary_emb_pallas(xq, xk, fl, fr):
    """All inputs (rows, n_heads*head_dim)."""
    rows, hd = xq.shape
    row_tile = min(_round_up(rows, 8), 512)
    pr = _round_up(rows, row_tile)
    if pr != rows:
        pad = ((0, pr - rows), (0, 0))
        xq, xk, fl, fr = (jnp.pad(t, pad) for t in (xq, xk, fl, fr))

    spec = pl.BlockSpec((row_tile, hd), lambda i: (i, 0))
    oq, ok = pl.pallas_call(
        _rotary_kernel,
        out_shape=(jax.ShapeDtypeStruct((pr, hd), xq.dtype),
                   jax.ShapeDtypeStruct((pr, hd), xk.dtype)),
        grid_spec=pltpu.PrefetchScalarGridSpec(
            num_scalar_prefetch=0,
            grid=(pr // row_tile,),
            in_specs=[spec, spec, spec, spec],
            out_specs=(spec, spec),
        ),
        compiler_params=pltpu.CompilerParams(
            dimension_semantics=("parallel",),
            vmem_limit_bytes=_VMEM_LIMIT,
        ),
    )(xq, xk, fl, fr)
    return oq[:rows], ok[:rows]


# ---------------------------------------------------------------------------
# Kernel 3: attention core per (batch*head): q k^T / sqrt(d) + mask, softmax, @v
# ---------------------------------------------------------------------------
def _attention_kernel(q_ref, k_ref, v_ref, mask_ref, o_ref, *, scale):
    q = q_ref[0].astype(jnp.float32)          # (S, Dh)
    k = k_ref[0].astype(jnp.float32)          # (KV, Dh)
    v = v_ref[0].astype(jnp.float32)          # (KV, Dh)
    scores = lax.dot_general(q, k, (((1,), (1,)), ((), ())),
                             preferred_element_type=jnp.float32) * scale
    scores = scores + mask_ref[...].astype(jnp.float32)
    m = jnp.max(scores, axis=-1, keepdims=True)
    p = jnp.exp(scores - m)                    # EUP; free relative to loads
    p = p / jnp.sum(p, axis=-1, keepdims=True)
    o_ref[0] = jnp.dot(p, v, preferred_element_type=jnp.float32).astype(o_ref.dtype)


def attention_core_pallas(q, k, v, mask2d, scale):
    """q: (BH, S, Dh); k, v: (BH, KV, Dh); mask2d: (S, KV)."""
    BH, S, Dh = q.shape
    KV = k.shape[1]
    itemsize = q.dtype.itemsize
    cost = pl.CostEstimate(
        flops=4 * BH * S * KV * Dh,
        transcendentals=BH * S * KV,
        bytes_accessed=itemsize * (2 * BH * S * Dh + 2 * BH * KV * Dh) + 4 * S * KV,
    )
    # TODO(synk): for long sequences this per-head full-KV block should become
    # a flash-attention style KV-tiled loop; fine for cache-resident sizes here.
    return pl.pallas_call(
        functools.partial(_attention_kernel, scale=scale),
        out_shape=jax.ShapeDtypeStruct((BH, S, Dh), q.dtype),
        grid_spec=pltpu.PrefetchScalarGridSpec(
            num_scalar_prefetch=0,
            grid=(BH,),
            in_specs=[
                pl.BlockSpec((1, S, Dh), lambda i: (i, 0, 0)),
                pl.BlockSpec((1, KV, Dh), lambda i: (i, 0, 0)),
                pl.BlockSpec((1, KV, Dh), lambda i: (i, 0, 0)),
                pl.BlockSpec((S, KV), lambda i: (0, 0)),   # resident mask
            ],
            out_specs=pl.BlockSpec((1, S, Dh), lambda i: (i, 0, 0)),
        ),
        compiler_params=pltpu.CompilerParams(
            dimension_semantics=("parallel",),
            vmem_limit_bytes=_VMEM_LIMIT,
        ),
        cost_estimate=cost,
    )(q, k, v, mask2d)


# ---------------------------------------------------------------------------
# Full Attention.forward (functional: caches passed in / returned)
# ---------------------------------------------------------------------------
def attention_forward(x, start_pos, freqs_cos, freqs_sin, mask,
                      wq, wk, wv, wo, cache_k, cache_v, n_heads):
    bsz, seqlen, dim = x.shape
    assert bsz == 1, "reference forward squeezes the batch (CKKS path)"
    head_dim = dim // n_heads

    x2d = x.reshape(seqlen, dim)

    # Fused QKV projection: read x once, one MXU pass over (dim, 3*dim).
    wqkv_t = jnp.concatenate([wq.T, wk.T, wv.T], axis=1)       # (dim, 3*dim)
    xqkv = matmul(x2d, wqkv_t)                                 # (S, 3*dim)
    xq, xk, xv = jnp.split(xqkv, 3, axis=1)

    # freqs_cis_l / freqs_cis_r of the reference, broadcast over heads and
    # flattened onto the lane axis (done once outside the kernel).
    fl = jnp.repeat(freqs_cos, 2, axis=-1)                           # (S, Dh)
    fr = jnp.stack([-freqs_sin, freqs_sin], axis=-1).reshape(seqlen, head_dim)
    fl = jnp.tile(fl[:, None, :], (1, n_heads, 1)).reshape(seqlen, dim)
    fr = jnp.tile(fr[:, None, :], (1, n_heads, 1)).reshape(seqlen, dim)

    xq, xk = apply_rotary_emb_pallas(xq, xk, fl, fr)

    xq = xq.reshape(seqlen, n_heads, head_dim)
    xk = xk.reshape(seqlen, n_heads, head_dim)
    xv = xv.reshape(seqlen, n_heads, head_dim)

    # KV-cache update (module state) and read-back of the visible prefix.
    cache_k = lax.dynamic_update_slice(
        cache_k, xk[None].astype(cache_k.dtype), (0, start_pos, 0, 0))
    cache_v = lax.dynamic_update_slice(
        cache_v, xv[None].astype(cache_v.dtype), (0, start_pos, 0, 0))
    kv_len = start_pos + seqlen
    keys = cache_k[:bsz, :kv_len]                                # (1, KV, H, Dh)
    values = cache_v[:bsz, :kv_len]

    q = xq[None].transpose(0, 2, 1, 3).reshape(bsz * n_heads, seqlen, head_dim)
    k = keys.transpose(0, 2, 1, 3).reshape(bsz * n_heads, kv_len, head_dim)
    v = values.transpose(0, 2, 1, 3).reshape(bsz * n_heads, kv_len, head_dim)
    q = q.astype(x.dtype)
    k = k.astype(x.dtype)
    v = v.astype(x.dtype)

    if mask is None:
        mask2d = jnp.zeros((seqlen, kv_len), dtype=jnp.float32)
    else:
        mask2d = jnp.broadcast_to(
            mask.astype(jnp.float32).reshape(mask.shape[-2:]), (seqlen, kv_len))

    attn = attention_core_pallas(q, k, v, mask2d, 1.0 / math.sqrt(head_dim))

    out = attn.reshape(bsz, n_heads, seqlen, head_dim).transpose(0, 2, 1, 3)
    out = out.reshape(bsz * seqlen, dim)
    out = matmul(out, wo.T)                                       # wo projection
    return out.reshape(bsz, seqlen, dim), cache_k, cache_v


# ---------------------------------------------------------------------------
# Pure-JAX reference (same semantics, incl. the identity xq_ / xk_ re-view)
# ---------------------------------------------------------------------------
def attention_reference(x, start_pos, freqs_cos, freqs_sin, mask,
                        wq, wk, wv, wo, cache_k, cache_v, n_heads):
    bsz, seqlen, dim = x.shape
    head_dim = dim // n_heads
    x2d = x.reshape(seqlen, dim)
    xq = (x2d @ wq.T).reshape(seqlen, n_heads, head_dim)
    xk = (x2d @ wk.T).reshape(seqlen, n_heads, head_dim)
    xv = (x2d @ wv.T).reshape(seqlen, n_heads, head_dim)
    fl = jnp.repeat(freqs_cos, 2, axis=-1).reshape(seqlen, 1, head_dim)
    fr = jnp.stack([-freqs_sin, freqs_sin], axis=-1).reshape(seqlen, 1, head_dim)
    xq = xq * fl + xq * fr
    xk = xk * fl + xk * fr
    cache_k = cache_k.at[:bsz, start_pos:start_pos + seqlen].set(xk[None])
    cache_v = cache_v.at[:bsz, start_pos:start_pos + seqlen].set(xv[None])
    keys = cache_k[:bsz, :start_pos + seqlen]
    values = cache_v[:bsz, :start_pos + seqlen]
    q = xq[None].transpose(0, 2, 1, 3)
    k = keys.transpose(0, 2, 1, 3)
    v = values.transpose(0, 2, 1, 3)
    scores = jnp.einsum("bhsd,bhkd->bhsk", q, k) / math.sqrt(head_dim)
    if mask is not None:
        scores = scores + mask
    scores = jax.nn.softmax(scores.astype(jnp.float32), axis=-1).astype(q.dtype)
    out = jnp.einsum("bhsk,bhkd->bhsd", scores, v)
    out = out.transpose(0, 2, 1, 3).reshape(bsz, seqlen, dim)
    return out @ wo.T, cache_k, cache_v


if __name__ == "__main__":
    dim, n_heads = 512, 8
    head_dim = dim // n_heads
    max_batch, max_seq = 4, 32
    bsz, seqlen, start_pos = 1, 8, 0

    key = jax.random.PRNGKey(0)
    kx, kq, kk, kv, ko = jax.random.split(key, 5)
    wscale = 1.0 / math.sqrt(dim)
    x = jax.random.normal(kx, (bsz, seqlen, dim), dtype=jnp.float32)
    wq = jax.random.normal(kq, (dim, dim), jnp.float32) * wscale
    wk = jax.random.normal(kk, (dim, dim), jnp.float32) * wscale
    wv = jax.random.normal(kv, (dim, dim), jnp.float32) * wscale
    wo = jax.random.normal(ko, (dim, dim), jnp.float32) * wscale

    # llama precompute_freqs_cis(head_dim, ...)[start_pos:start_pos+seqlen]
    inv_freq = 1.0 / (10000.0 ** (jnp.arange(0, head_dim, 2, dtype=jnp.float32)
                                  / head_dim))
    t = jnp.arange(seqlen, dtype=jnp.float32) + start_pos
    angles = jnp.outer(t, inv_freq)                    # (S, head_dim//2)
    freqs_cos = jnp.cos(angles)
    freqs_sin = jnp.sin(angles)

    # llama causal mask for a prefill step (large negative instead of -inf).
    mask = jnp.full((1, 1, seqlen, start_pos + seqlen), -1e30, dtype=jnp.float32)
    mask = jnp.triu(mask, k=start_pos + 1)

    cache_k = jnp.zeros((max_batch, max_seq, n_heads, head_dim), jnp.float32)
    cache_v = jnp.zeros((max_batch, max_seq, n_heads, head_dim), jnp.float32)

    out, new_ck, new_cv = attention_forward(
        x, start_pos, freqs_cos, freqs_sin, mask,
        wq, wk, wv, wo, cache_k, cache_v, n_heads)
    out = jax.block_until_ready(out)

    ref, ref_ck, ref_cv = attention_reference(
        x, start_pos, freqs_cos, freqs_sin, mask,
        wq, wk, wv, wo, cache_k, cache_v, n_heads)

    assert out.shape == (bsz, seqlen, dim)
    assert jnp.allclose(out, ref, atol=1e-3, rtol=1e-3), "output mismatch"
    assert jnp.allclose(new_ck, ref_ck, atol=1e-3, rtol=1e-3), "cache_k mismatch"
    assert jnp.allclose(new_cv, ref_cv, atol=1e-3, rtol=1e-3), "cache_v mismatch"

    print("KERNEL_OK")
</pallas_src>

<mosaic_0001>
module attributes {stable_mosaic.version = 11 : i64} {
  func.func @_matmul_kernel(%arg0: i32, %arg1: i32, %arg2: i32, %arg3: memref<8x512xf32, #tpu.memory_space<vmem>>, %arg4: memref<512x512xf32, #tpu.memory_space<vmem>>, %arg5: memref<8x512xf32, #tpu.memory_space<vmem>>, %arg6: memref<8x512xf32, #tpu.memory_space<vmem>>) attributes {dimension_semantics = [#tpu.dimension_semantics<parallel>, #tpu.dimension_semantics<parallel>, #tpu.dimension_semantics<arbitrary>], iteration_bounds = array<i64: 1, 3, 1>, scalar_prefetch = 0 : i64, scratch_operands = 1 : i64, tpu.core_type = #tpu.core_type<tc>, window_params = [{transform_indices = @transform_0, window_bounds = array<i64: 8, 512>}, {transform_indices = @transform_1, window_bounds = array<i64: 512, 512>}, {transform_indices = @transform_2, window_bounds = array<i64: 8, 512>}]} {
    %c0_i32 = arith.constant 0 : i32
    %0 = arith.cmpi eq, %arg2, %c0_i32 : i32
    %1 = arith.extui %0 : i1 to i32
    %c0_i32_0 = arith.constant 0 : i32
    %2 = arith.cmpi ne, %1, %c0_i32_0 : i32
    scf.if %2 {
      %cst_10 = arith.constant 0.000000e+00 : f32
      %12 = vector.broadcast %cst_10 : f32 to vector<8x512xf32>
      %c0_11 = arith.constant 0 : index
      %c0_12 = arith.constant 0 : index
      %13 = vector.load %arg6[%c0_11, %c0_12] : memref<8x512xf32, #tpu.memory_space<vmem>>, vector<8x512xf32>
      tpu.vector_store %arg6[%c0_11, %c0_12], %12 {strides = array<i32>} : memref<8x512xf32, #tpu.memory_space<vmem>>, vector<8x512xf32>,
    } else {
    }
    %c0 = arith.constant 0 : index
    %c0_1 = arith.constant 0 : index
    %3 = vector.load %arg6[%c0, %c0_1] : memref<8x512xf32, #tpu.memory_space<vmem>>, vector<8x512xf32>
    %c0_2 = arith.constant 0 : index
    %c0_3 = arith.constant 0 : index
    %4 = vector.load %arg3[%c0_2, %c0_3] : memref<8x512xf32, #tpu.memory_space<vmem>>, vector<8x512xf32>
    %c0_4 = arith.constant 0 : index
    %c0_5 = arith.constant 0 : index
    %5 = vector.load %arg4[%c0_4, %c0_5] : memref<512x512xf32, #tpu.memory_space<vmem>>, vector<512x512xf32>
    %cst = arith.constant dense<0.000000e+00> : vector<8x512xf32>
    %6 = tpu.matmul %4, %5, %cst {dimension_numbers = #tpu.dot_dimension_numbers<[1], [0], [0], [1], [0, 0, 1, 1], [], []>, precision = #tpu.contract_precision<fp32>} : vector<8x512xf32>, vector<512x512xf32>, vector<8x512xf32> -> vector<8x512xf32>
    %7 = arith.addf %3, %6 : vector<8x512xf32>
    %c0_6 = arith.constant 0 : index
    %c0_7 = arith.constant 0 : index
    %8 = vector.load %arg6[%c0_6, %c0_7] : memref<8x512xf32, #tpu.memory_space<vmem>>, vector<8x512xf32>
    tpu.vector_store %arg6[%c0_6, %c0_7], %7 {strides = array<i32>} : memref<8x512xf32, #tpu.memory_space<vmem>>, vector<8x512xf32>,
    %c0_i32_8 = arith.constant 0 : i32
    %9 = arith.cmpi eq, %arg2, %c0_i32_8 : i32
    %10 = arith.extui %9 : i1 to i32
    %c0_i32_9 = arith.constant 0 : i32
    %11 = arith.cmpi ne, %10, %c0_i32_9 : i32
    scf.if %11 {
      %c0_10 = arith.constant 0 : index
      %c0_11 = arith.constant 0 : index
      %12 = vector.load %arg6[%c0_10, %c0_11] : memref<8x512xf32, #tpu.memory_space<vmem>>, vector<8x512xf32>
      %c0_12 = arith.constant 0 : index
      %c0_13 = arith.constant 0 : index
      %13 = vector.load %arg5[%c0_12, %c0_13] : memref<8x512xf32, #tpu.memory_space<vmem>>, vector<8x512xf32>
      tpu.vector_store %arg5[%c0_12, %c0_13], %12 {strides = array<i32>} : memref<8x512xf32, #tpu.memory_space<vmem>>, vector<8x512xf32>,
    } else {
    }
    return
  }
  func.func @transform_0(%arg0: i32, %arg1: i32, %arg2: i32) -> (i32, i32) {
    %c0_i32 = arith.constant 0 : i32
    return %arg0, %arg2 : i32, i32
  }
  func.func @transform_1(%arg0: i32, %arg1: i32, %arg2: i32) -> (i32, i32) {
    %c0_i32 = arith.constant 0 : i32
    return %arg2, %arg1 : i32, i32
  }
  func.func @transform_2(%arg0: i32, %arg1: i32, %arg2: i32) -> (i32, i32) {
    %c0_i32 = arith.constant 0 : i32
    return %arg0, %arg1 : i32, i32
  }
}

</mosaic_0001>

<bundles_post_ra>
// kernel: tpu_custom_call.1
= control target key start
LH: loop header
LB: loop body
LE: loop exit
PB: predicated region body
PF: predicated region fallthrough
CT: control target
= control target key end

     0   :  { %s10754_s0 = inlined_call_operand.hbm [shape: f32[8,512], index: 0, kind: input, shape index: {}]   ;;  %s10755_s1 = inlined_call_operand.hbm [shape: f32[512,1536], index: 1, kind: input, shape index: {}]   ;;  %s10756_s2 = inlined_call_operand.hbm [shape: f32[8,1536], index: 2, kind: output, shape index: {}]  }
   0x1   :  { %10940 = sst [smem:[#allocation28_spill]] %s10754_s0 }
   0x2   :  { %7 = vsyncpa [#allocation4], 0 }
   0x3   :  { %8 = vsyncpa [#allocation7], 0 }
   0x4   :  { %10 = vsyncpa [#allocation7 + $0x1], 0 }
   0x5   :  { %11 = vsyncpa [#allocation5], 0 }
   0x6   :  { %13 = vsyncpa [#allocation5 + $0x1], 0  ;;  %s6353_s9 = smov 0   ;;  %s6355_s10 = smov 0  }
   0x7   :  { %s6357_s11 = smov 0   ;;  %s6359_s12 = smov 0  }
   0x8   :  { %s6361_s13 = smov 0   ;;  %s6363_s14 = smov 0  }
   0x9 LB: > { %s6091_s15 = sadd.s32 4294967295, %s6332_s14   ;;  %s6092_s16 = sadd.s32 4294967294, %s6332_s14   ;;  %s6332_s14 = sphi %s6363_s14, %s19_s14   ;;  %s6328_s13 = sphi %s6361_s13, %s11253_s13   ;;  %s6324_s12 = sphi %s6359_s12, %s11252_s12   ;;  %s6320_s11 = sphi %s6357_s11, %s11251_s11   ;;  %s6316_s10 = sphi %s6355_s10, %s11250_s10   ;;  %s6312_s9 = sphi %s6353_s9, %s11249_s9  }
   0xa   : > { %s75_s17 = sadd.s32 1, %s6320_s11  ;;  %p82_p0 = scmp.ne.s32.totalorder %s6320_s11, %s6316_s10 }
   0xb   : > { %p83_p1 = scmp.eq.s32.totalorder %s6332_s14, 0  ;;  %p88_p2 = scmp.ne.s32.totalorder %s6316_s10, %s6312_s9 }
   0xc   : > { %p6391_p3 = scmp.eq.s32.totalorder %s6091_s15, 0  ;;  %p114_p4 = scmp.eq.s32.totalorder %s6091_s15, 2 }
   0xd   : > { %p6395_p5 = por %p83_p1, %p82_p0  ;;  %p120_p6 = scmp.eq.s32.totalorder %s6092_s16, 2 }
   0xe   : > { %p6401_p7 = por %p6391_p3, %p88_p2  ;;  %p6405_p8 = por %p114_p4, %p82_p0 }
   0xf   : > { %p6409_p9 = por %p120_p6, %p88_p2  ;;  %p6093_p10 = scmp.ge.s32.totalorder %s6332_s14, 1 }
  0x10   : > { %p127_p11 = scmp.lt.s32.totalorder %s6332_s14, 4  ;;  %s10946_s0 = sld [smem:[#allocation28_spill]] }
  0x11   : > { %s6334_s27 = smov [#allocation3]   ;;  %p6131_p0 = scmp.lt.s32.totalorder %s6332_s14, 3 }
  0x12   : > { %p6418_p12 = pnand %p6093_p10, %p127_p11  ;;  %s146_s28 = sshll.u32 %s6334_s27, 4  ;;  %s147_s28 = int_to_ptr.vmem [resolvable:$true] %s146_s28 }
  0x13   : > { %p6429_p2 = pnand %p6131_p0, %p6395_p5  ;;  %s34_s30 = sadd.s32 1, %s6328_s13 }
  0x14   : > { %p6118_p13 = pneg %p6418_p12  ;;  %p36_p4 = scmp.ge.s32.totalorder %s34_s30, 3 }
  0x15   : > { %s157_s3 = sand.u32 1, %s6320_s11   ;;  %s6108_s6 = sshll.u32 %s6328_s13, 5 }
  0x16   : > { %s144_s25 = sshll.u32 %s10946_s0, 4  ;;  %p6119_p1 = pnand %p6118_p13, %p6391_p3  ;;  %s145_s25 = int_to_ptr.hbm [resolvable:$true] %s144_s25 }
  0x17   : > { %s11255_s30 = smov (%p36_p4, %s34_s30), 0  ;;  %s6096_s4 = sshll.u32 %s157_s3, 11 }
  0x18   : > { %6121 = dma.hbm_to_vmem [thread:$0]  (!%p6119_p1), %s145_s25, 512, %s147_s28, [#allocation4]  }
  0x19   : > { %s71_s5 = ssub.s32 %s6328_s13, %s11255_s30  ;;  %s169_s15 = scalar_lea.hbm %s10755_s1, %s6108_s6 }
  0x1a   : > { %p73_p6 = scmp.eq.s32.totalorder %s71_s5, 0  ;;  %s161_s16 = scalar_lea.vmem [#allocation6], %s6096_s4 }
  0x1b   : > { %s172_s19 = sshll.u32 %s161_s16, 4  ;;  %s170_s24 = sshll.u32 %s169_s15, 4  ;;  %s173_s19 = int_to_ptr.vmem [resolvable:$true] %s172_s19  ;;  %s171_s24 = int_to_ptr.hbm [resolvable:$true] %s170_s24 }
  0x1c   : > { %s6446_s23 = scalar_select %p73_p6, %s6320_s11, %s75_s17  }
  0x1d   : > { %s158_s25 = scalar_lea.sflag [#allocation7], %s157_s3  ;;  %s6335_s27 = smov 1536  }
  0x1e   : > { %s6336_s28 = smov 512   ;;  %s6337_s0 = smov 32  }
  0x1f   : > { %6125 = dma.hbm_to_vmem [thread:$0]  (!%p6429_p2), %s171_s24, 32768, %s173_s19, %s158_s25, %s6335_s27, %s6336_s28, %s6337_s0  }
  0x20   : > { %184 = sbr.rel (%p6418_p12) target bundleno = 1000 (0x3e8), region = 28 }
  0x25   : > { %6299 = dma.done.wait (%p6391_p3), [#allocation4], 512  }
  0x26   : > { %6301 = vsyncadd (%p6391_p3), [#allocation4], 4294966784  ;;  %s6457_s17 = sand.u32 1, %s6316_s10  }
  0x27   : > { %s6101_s3 = sshll.u32 %s6457_s17, 11  ;;  %s192_s4 = scalar_lea.sflag [#allocation7], %s6457_s17 }
  0x28   : > { %s6461_s5 = scalar_lea.vmem [#allocation6], %s6101_s3 }
  0x29   : > { %6303 = dma.done.wait (%p6401_p7), %s192_s4, 32768  }
  0x2a   : > { %6305 = vsyncadd (%p6401_p7), %s192_s4, 4294934528  ;;  %v297_v0 = vld [vmem:[%s6461_s5 + $0x1e0] sm:$0xff]  ;;  %s6102_s0 = sshll.u32 %s6457_s17, 5  ;;  %s6109_s20 = sshll.u32 %s6324_s12, 5 }
  0x2b   : > { %v293_v1 = vld [vmem:[%s6461_s5 + $0x1c0] sm:$0xff]  ;;  %v6470_v3 = vand.u32 4294901760, %v297_v0  ;;  %s8373_s18 = scalar_lea.vmem [#allocation8], %s6102_s0  ;;  %s5982_s6 = scalar_lea.hbm %s10756_s2, %s6109_s20 }
  0x2c   : > { %v289_v2 = vld [vmem:[%s6461_s5 + $0x1a0] sm:$0xff]  ;;  %v6472_v4 = vand.u32 4294901760, %v293_v1  ;;  %s5984_s7 = sshll.u32 %s8373_s18, 4  ;;  %s5986_s8 = sshll.u32 %s5982_s6, 4  ;;  %s5985_s7 = int_to_ptr.vmem [resolvable:$true] %s5984_s7  ;;  %s5987_s8 = int_to_ptr.hbm [resolvable:$true] %s5986_s8 }
  0x2d   : > { %v6474_v5 = vand.u32 4294901760, %v289_v2  ;;  %v285_v6 = vld [vmem:[%s6461_s5 + $0x180] sm:$0xff]  ;;  %494 = vmatpush.msra.mxu0 %v6470_v3  ;;  %v6489_v14 = vsub.f32 %v297_v0, %v6470_v3  ;;  %690 = vmatpush.msra.mxu3 %v6470_v3  ;;  %s5969_s15 = scalar_lea.sflag [#allocation5], %s6457_s17  ;;  %s6260_s12 = sshra.s32 %s5987_s8, 4  ;;  %s6261_s12 = int_to_ptr.hbm [resolvable:$true] %s6260_s12 }
  0x2e   : > { %v281_v7 = vld [vmem:[%s6461_s5 + $0x160] sm:$0xff]  ;;  %v6479_v9 = vand.u32 4294901760, %v285_v6  ;;  %v6492_v15 = vsub.f32 %v293_v1, %v6472_v4  ;;  %s6262_s16 = scalar_lea.hbm %s6261_s12, 32  ;;  %s6266_s25 = scalar_lea.hbm %s10756_s2, 96 }
  0x2f   : > { %v277_v8 = vld [vmem:[%s6461_s5 + $0x140] sm:$0xff]  ;;  %v6481_v10 = vand.u32 4294901760, %v281_v7  ;;  %v6496_v16 = vsub.f32 %v289_v2, %v6474_v5  ;;  %496 = vmatpush.msra.mxu0 %v6472_v4  ;;  %637 = vmatpush.msra.mxu2 %v6489_v14  ;;  %v536_v22 = vand.u32 4294901760, %v6489_v14  ;;  %p6263_p3 = scmp.ne.s32.totalorder %s6261_s12, %s6262_s16  ;;  %p6267_p10 = scmp.lt.s32.totalorder %s6261_s12, %s10756_s2 }
  0x30   : > { %v6483_v11 = vand.u32 4294901760, %v277_v8  ;;  %v273_v12 = vld [vmem:[%s6461_s5 + $0x120] sm:$0xff]  ;;  %v6502_v19 = vsub.f32 %v285_v6, %v6479_v9  ;;  %v10772_v23 = vand.u32 4294901760, %v6492_v15  ;;  %692 = vmatpush.msra.mxu3 %v6472_v4  ;;  %p6268_p11 = scmp.lt.s32.totalorder %s6266_s25, %s6262_s16 }
  0x31   : > { %v269_v13 = vld [vmem:[%s6461_s5 + $0x100] sm:$0xff]  ;;  %v6498_v17 = vand.u32 4294901760, %v273_v12  ;;  %v6505_v20 = vsub.f32 %v281_v7, %v6481_v10  ;;  %v10770_v24 = vand.u32 4294901760, %v6496_v16  ;;  %498 = vmatpush.msra.mxu0 %v6474_v5  ;;  %640 = vmatpush.msra.mxu2 %v6492_v15  ;;  %v537_v30 = vsub.f32 %v6489_v14, %v536_v22  ;;  %p6264_p5 = pnand %p6263_p3, %p6405_p8 }
  0x32   : > { %v265_v18 = vld [vmem:[%s6461_s5 + $0xe0] sm:$0xff]  ;;  %v6508_v21 = vsub.f32 %v277_v8, %v6483_v11  ;;  %v6515_v25 = vand.u32 4294901760, %v269_v13  ;;  %v10769_v27 = vand.u32 4294901760, %v6502_v19  ;;  %v543_v31 = vsub.f32 %v6492_v15, %v10772_v23  ;;  %694 = vmatpush.msra.mxu3 %v6474_v5  ;;  %p6269_p12 = por %p6268_p11, %p6267_p10 }
  0x33   : > { %v261_v26 = vld [vmem:[%s6461_s5 + $0xc0] sm:$0xff]  ;;  %v6520_v28 = vand.u32 4294901760, %v265_v18  ;;  %v6523_v29 = vsub.f32 %v273_v12, %v6498_v17  ;;  %v549_v32 = vsub.f32 %v6496_v16, %v10770_v24  ;;  %v10766_v33 = vand.u32 4294901760, %v6505_v20  ;;  %500 = vmatpush.msra.mxu0 %v6479_v9  ;;  %643 = vmatpush.msra.mxu2 %v6496_v16  ;;  %p6265_p7 = pneg %p6264_p5 }
  0x34   : > { %v257_v34 = vld [vmem:[%s6461_s5 + $0xa0] sm:$0xff]  ;;  %v6539_v35 = vand.u32 4294901760, %v261_v26  ;;  %v10765_v36 = vand.u32 4294901760, %v6508_v21  ;;  %v538_v37 = vand.u32 4294901760, %v537_v30  ;;  %v544_v38 = vand.u32 4294901760, %v543_v31  ;;  %696 = vmatpush.msra.mxu3 %v6479_v9 }
  0x35   : > { %v555_v39 = vsub.f32 %v6502_v19, %v10769_v27  ;;  %v6548_v40 = vsub.f32 %v269_v13, %v6515_v25  ;;  %v6551_v41 = vand.u32 4294901760, %v257_v34  ;;  %v253_v42 = vld [vmem:[%s6461_s5 + $0x80] sm:$0xff]  ;;  %502 = vmatpush.msra.mxu0 %v6481_v10  ;;  %v550_v43 = vand.u32 4294901760, %v549_v32  ;;  %646 = vmatpush.msra.mxu2 %v6502_v19  ;;  %p6270_p13 = pnand %p6269_p12, %p6265_p7 }
  0x36   : > { %539 = vmatpush.msra.mxu1 %v538_v37  ;;  %v561_v44 = vsub.f32 %v6505_v20, %v10766_v33  ;;  %v10763_v45 = vand.u32 4294901760, %v6523_v29  ;;  %v6560_v46 = vsub.f32 %v265_v18, %v6520_v28  ;;  %698 = vmatpush.msra.mxu3 %v6481_v10  ;;  %v567_v47 = vsub.f32 %v6508_v21, %v10765_v36  ;;  %v249_v48 = vld [vmem:[%s6461_s5 + $0x60] sm:$0xff] }
  0x37   : > { %504 = vmatpush.msra.mxu0 %v6483_v11  ;;  %v556_v49 = vand.u32 4294901760, %v555_v39  ;;  %v6569_v50 = vand.u32 4294901760, %v253_v42  ;;  %v10762_v51 = vand.u32 4294901760, %v6548_v40  ;;  %v6573_v52 = vsub.f32 %v261_v26, %v6539_v35  ;;  %649 = vmatpush.msra.mxu2 %v6505_v20  ;;  %v245_v54 = vld [vmem:[%s6461_s5 + $0x40] sm:$0xff] }
  0x38   : > { %545 = vmatpush.msra.mxu1 %v544_v38  ;;  %700 = vmatpush.msra.mxu3 %v6483_v11  ;;  %v6578_v53 = vsub.f32 %v257_v34, %v6551_v41  ;;  %v562_v55 = vand.u32 4294901760, %v561_v44  ;;  %v573_v56 = vsub.f32 %v6523_v29, %v10763_v45  ;;  %v6585_v57 = vand.u32 4294901760, %v249_v48  ;;  %v361_v59 = vld [vmem:[%s6461_s5 + $0x3e0] sm:$0xff] }
  0x39   : > { %506 = vmatpush.msra.mxu0 %v6498_v17  ;;  %v10761_v58 = vand.u32 4294901760, %v6560_v46  ;;  %652 = vmatpush.msra.mxu2 %v6508_v21  ;;  %v568_v60 = vand.u32 4294901760, %v567_v47  ;;  %v241_v61 = vld [vmem:[%s6461_s5 + $0x20] sm:$0xff]  ;;  %v579_v62 = vsub.f32 %v6548_v40, %v10762_v51  ;;  %v6596_v63 = vand.u32 4294901760, %v245_v54 }
  0x3a   : > { %551 = vmatpush.msra.mxu1 %v550_v43  ;;  %702 = vmatpush.msra.mxu3 %v6498_v17  ;;  %v10759_v0 = vand.u32 4294901760, %v6573_v52  ;;  %v6600_v1 = vsub.f32 %v253_v42, %v6569_v50  ;;  %v237_v2 = vld [vmem:[%s6461_s5] sm:$0xff]  ;;  %v10758_v7 = vand.u32 4294901760, %v6578_v53  ;;  %v6607_v8 = vand.u32 4294901760, %v361_v59 }
  0x3b   : > { %508 = vmatpush.msra.mxu0 %v6515_v25  ;;  %v357_v6 = vld [vmem:[%s6461_s5 + $0x3c0] sm:$0xff]  ;;  %655 = vmatpush.msra.mxu2 %v6523_v29  ;;  %v574_v12 = vand.u32 4294901760, %v573_v56  ;;  %v585_v13 = vsub.f32 %v6560_v46, %v10761_v58  ;;  %v6613_v18 = vand.u32 4294901760, %v241_v61  ;;  %v6616_v26 = vsub.f32 %v249_v48, %v6585_v57 }
  0x3c   : > { %557 = vmatpush.msra.mxu1 %v556_v49  ;;  %704 = vmatpush.msra.mxu3 %v6515_v25  ;;  %v6620_v30 = vand.u32 4294901760, %v237_v2  ;;  %v6622_v31 = vand.u32 4294901760, %v357_v6  ;;  %v353_v32 = vld [vmem:[%s6461_s5 + $0x3a0] sm:$0xff]  ;;  %v580_v34 = vand.u32 4294901760, %v579_v62  ;;  %v591_v37 = vsub.f32 %v6573_v52, %v10759_v0 }
  0x3d   : > { %510 = vmatpush.msra.mxu0 %v6520_v28  ;;  %658 = vmatpush.msra.mxu2 %v6548_v40  ;;  %v10757_v38 = vand.u32 4294901760, %v6600_v1  ;;  %v6631_v39 = vsub.f32 %v245_v54, %v6596_v63  ;;  %v597_v42 = vsub.f32 %v6578_v53, %v10758_v7  ;;  %v6639_v43 = vsub.f32 %v361_v59, %v6607_v8  ;;  %v349_v44 = vld [vmem:[%s6461_s5 + $0x380] sm:$0xff] }
  0x3e   : > { %563 = vmatpush.msra.mxu1 %v562_v55  ;;  %706 = vmatpush.msra.mxu3 %v6520_v28  ;;  %10949 = vst [vmem:[#allocation12_spill] sm:$0xff] %v6620_v30  ;;  %v586_v47 = vand.u32 4294901760, %v585_v13  ;;  %v10760_v48 = vand.u32 4294901760, %v6616_v26  ;;  %v6645_v49 = vsub.f32 %v241_v61, %v6613_v18  ;;  %v6647_v54 = vand.u32 4294901760, %v353_v32  ;;  %v345_v59 = vld [vmem:[%s6461_s5 + $0x360] sm:$0xff] }
  0x3f   : > { %512 = vmatpush.msra.mxu0 %v6539_v35  ;;  %661 = vmatpush.msra.mxu2 %v6560_v46  ;;  %v6652_v55 = vsub.f32 %v237_v2, %v6620_v30  ;;  %v6655_v56 = vsub.f32 %v357_v6, %v6622_v31  ;;  %v603_v61 = vsub.f32 %v6600_v1, %v10757_v38  ;;  %v10764_v62 = vand.u32 4294901760, %v6631_v39  ;;  %v341_v13 = vld [vmem:[%s6461_s5 + $0x340] sm:$0xff] }
  0x40   : > { %569 = vmatpush.msra.mxu1 %v568_v60  ;;  %708 = vmatpush.msra.mxu3 %v6539_v35  ;;  %v592_v60 = vand.u32 4294901760, %v591_v37  ;;  %v598_v2 = vand.u32 4294901760, %v597_v42  ;;  %v10767_v6 = vand.u32 4294901760, %v6639_v43  ;;  %v10768_v37 = vand.u32 4294901760, %v6645_v49  ;;  %v337_v42 = vld [vmem:[%s6461_s5 + $0x320] sm:$0xff] }
  0x41   : > { %514 = vmatpush.msra.mxu0 %v6551_v41  ;;  %664 = vmatpush.msra.mxu2 %v6573_v52  ;;  %v6675_v38 = vsub.f32 %v353_v32, %v6647_v54  ;;  %v6677_v7 = vand.u32 4294901760, %v345_v59  ;;  %v10773_v0 = vand.u32 4294901760, %v6652_v55  ;;  %v615_v32 = vsub.f32 %v6631_v39, %v10764_v62  ;;  %v333_v45 = vld [vmem:[%s6461_s5 + $0x300] sm:$0xff] }
  0x42   : > { %575 = vmatpush.msra.mxu1 %v574_v12  ;;  %710 = vmatpush.msra.mxu3 %v6551_v41  ;;  %v6663_v12 = vand.u32 4294901760, %v349_v44  ;;  %v6691_v51 = vand.u32 4294901760, %v341_v13 }
  0x43   : > { %516 = vmatpush.msra.mxu0 %v6569_v50  ;;  %667 = vmatpush.msra.mxu2 %v6578_v53  ;;  %v10774_v36 = vand.u32 4294901760, %v6675_v38  ;;  %v6707_v33 = vsub.f32 %v345_v59, %v6677_v7  ;;  %v627_v59 = vsub.f32 %v6652_v55, %v10773_v0 }
  0x44   : > { %581 = vmatpush.msra.mxu1 %v580_v34  ;;  %712 = vmatpush.msra.mxu3 %v6569_v50  ;;  %v609_v34 = vsub.f32 %v6616_v26, %v10760_v48  ;;  %v604_v48 = vand.u32 4294901760, %v603_v61  ;;  %v6689_v58 = vsub.f32 %v349_v44, %v6663_v12  ;;  %v6699_v61 = vand.u32 4294901760, %v337_v42 }
  0x45   : > { %518 = vmatpush.msra.mxu0 %v6585_v57  ;;  %670 = vmatpush.msra.mxu2 %v6600_v1  ;;  %v621_v44 = vsub.f32 %v6645_v49, %v10768_v37  ;;  %v616_v37 = vand.u32 4294901760, %v615_v32  ;;  %v6723_v24 = vsub.f32 %v341_v13, %v6691_v51  ;;  %v890_v13 = vsub.f32 %v6675_v38, %v10774_v36 }
  0x46   : > { %587 = vmatpush.msra.mxu1 %v586_v47  ;;  %714 = vmatpush.msra.mxu3 %v6585_v57  ;;  %v10771_v47 = vand.u32 4294901760, %v6655_v56  ;;  %v610_v62 = vand.u32 4294901760, %v609_v34  ;;  %v329_v34 = vld [vmem:[%s6461_s5 + $0x2e0] sm:$0xff]  ;;  %v10775_v27 = vand.u32 4294901760, %v6689_v58  ;;  %v6729_v23 = vsub.f32 %v337_v42, %v6699_v61 }
  0x47   : > { %520 = vmatpush.msra.mxu0 %v6596_v63  ;;  %673 = vmatpush.msra.mxu2 %v6616_v26  ;;  %v622_v32 = vand.u32 4294901760, %v621_v44  ;;  %v6737_v14 = vand.u32 4294901760, %v329_v34  ;;  %v628_v44 = vand.u32 4294901760, %v627_v59  ;;  %v10952_v59 = vand.u32 4294901760, %v6707_v33 }
  0x48   : > { %593 = vmatpush.msra.mxu1 %v592_v60  ;;  %716 = vmatpush.msra.mxu3 %v6596_v63  ;;  %v878_v60 = vsub.f32 %v6639_v43, %v10767_v6  ;;  %v884_v6 = vsub.f32 %v6655_v56, %v10771_v47  ;;  %v896_v36 = vsub.f32 %v6689_v58, %v10775_v27 }
  0x49   : > { %522 = vmatpush.msra.mxu0 %v6613_v18  ;;  %676 = vmatpush.msra.mxu2 %v6631_v39  ;;  %v902_v27 = vsub.f32 %v6707_v33, %v10952_v59 }
  0x4a   : > { %599 = vmatpush.msra.mxu1 %v598_v2  ;;  %718 = vmatpush.msra.mxu3 %v6613_v18  ;;  %v6714_v2 = vand.u32 4294901760, %v333_v45  ;;  %v879_v47 = vand.u32 4294901760, %v878_v60  ;;  %v885_v42 = vand.u32 4294901760, %v884_v6  ;;  %v321_v60 = vld [vmem:[%s6461_s5 + $0x2a0] sm:$0xff] }
  0x4b   : > { %524 = vmatpush.msra.mxu0 %v6620_v30  ;;  %679 = vmatpush.msra.mxu2 %v6645_v49  ;;  %v317_v6 = vld [vmem:[%s6461_s5 + $0x280] sm:$0xff]  ;;  %v6764_v0 = vand.u32 4294901760, %v321_v60 }
  0x4c   : > { %605 = vmatpush.msra.mxu1 %v604_v48  ;;  %v325_v48 = vld [vmem:[%s6461_s5 + $0x2c0] sm:$0xff]  ;;  %720 = vmatpush.msra.mxu3 %v6620_v30  ;;  %v6762_v30 = vsub.f32 %v329_v34, %v6737_v14 }
  0x4d   : > { %731 = vmatpush.msrb.mxu0 %v536_v22  ;;  %v10950_v22 = vand.u32 4294901760, %v6492_v15  ;;  %682 = vmatpush.msra.mxu2 %v6652_v55  ;;  %v6751_v15 = vand.u32 4294901760, %v325_v48 }
  0x4e   : > { %611 = vmatpush.msra.mxu1 %v610_v62  ;;  %v6743_v62 = vsub.f32 %v333_v45, %v6714_v2  ;;  %880 = vmatpush.msrb.mxu3 %v879_v47  ;;  %v6777_v45 = vand.u32 4294901760, %v317_v6 }
  0x4f   : > { %735 = vmatpush.msrb.mxu0 %v10950_v22  ;;  %835 = vmatpush.msrb.mxu2 %v6607_v8  ;;  %v10951_v22 = vand.u32 4294901760, %v6496_v16  ;;  %v10953_v16 = vand.u32 4294901760, %v6502_v19  ;;  %v6775_v34 = vsub.f32 %v325_v48, %v6751_v15  ;;  %v10955_v19 = vand.u32 4294901760, %v6505_v20 }
  0x50   : > { %617 = vmatpush.msra.mxu1 %v616_v37  ;;  %v891_v37 = vand.u32 4294901760, %v890_v13  ;;  %886 = vmatpush.msrb.mxu3 %v885_v42  ;;  %v10954_v13 = vand.u32 4294901760, %v6723_v24  ;;  %v10956_v42 = vand.u32 4294901760, %v6729_v23  ;;  %v6788_v48 = vsub.f32 %v321_v60, %v6764_v0 }
  0x51   : > { %739 = vmatpush.msrb.mxu0 %v10951_v22  ;;  %837 = vmatpush.msrb.mxu2 %v6622_v31  ;;  %v313_v22 = vld [vmem:[%s6461_s5 + $0x260] sm:$0xff]  ;;  %v10957_v20 = vand.u32 4294901760, %v6508_v21  ;;  %v6802_v60 = vsub.f32 %v317_v6, %v6777_v45  ;;  %v10960_v21 = vand.u32 4294901760, %v6523_v29  ;;  %v10962_v29 = vand.u32 4294901760, %v6548_v40 }
  0x52   : > { %623 = vmatpush.msra.mxu1 %v622_v32  ;;  %v897_v32 = vand.u32 4294901760, %v896_v36  ;;  %v908_v59 = vsub.f32 %v6723_v24, %v10954_v13  ;;  %v233_v36 = vld [vmem:[#allocation3] sm:$0xff]  ;;  %892 = vmatpush.msrb.mxu3 %v891_v37  ;;  %v6790_v47 = vand.u32 4294901760, %v313_v22  ;;  %v10965_v40 = vand.u32 4294901760, %v6560_v46 }
  0x53   : > { %743 = vmatpush.msrb.mxu0 %v10953_v16  ;;  %839 = vmatpush.msrb.mxu2 %v6647_v54  ;;  %v903_v16 = vand.u32 4294901760, %v902_v27  ;;  %v6804_v13 = vand.u32 4294901760, %v233_v36  ;;  %v301_v6 = vld [vmem:[%s6461_s5 + $0x200] sm:$0xff] }
  0x54   : > { %629 = vmatpush.msra.mxu1 %v628_v44  ;;  %v914_v44 = vsub.f32 %v6729_v23, %v10956_v42  ;;  %v309_v42 = vld [vmem:[%s6461_s5 + $0x240] sm:$0xff]  ;;  %898 = vmatpush.msrb.mxu3 %v897_v32  ;;  %v909_v27 = vand.u32 4294901760, %v908_v59  ;;  %v10961_v32 = vand.u32 4294901760, %v6762_v30  ;;  %v6818_v37 = vsub.f32 %v313_v22, %v6790_v47 }
  0x55   : > { %747 = vmatpush.msrb.mxu0 %v10955_v19  ;;  %841 = vmatpush.msrb.mxu2 %v6663_v12  ;;  %10959 = vst [vmem:[#allocation13_spill] sm:$0xff] %v6804_v13  ;;  %v6848_v46 = vand.u32 4294901760, %v301_v6 }
  0x56   : > { %798 = vmatpush.msrb.mxu1 %v6470_v3  ;;  %v10958_v3 = vand.u32 4294901760, %v6743_v62  ;;  %904 = vmatpush.msrb.mxu3 %v903_v16  ;;  %v926_v59 = vsub.f32 %v6762_v30, %v10961_v32  ;;  %v6829_v32 = vsub.f32 %v233_v36, %v6804_v13 }
  0x57   : > { %751 = vmatpush.msrb.mxu0 %v10957_v20  ;;  %843 = vmatpush.msrb.mxu2 %v6677_v7  ;;  %v305_v20 = vld [vmem:[%s6461_s5 + $0x220] sm:$0xff] }
  0x58   : > { %800 = vmatpush.msrb.mxu1 %v6472_v4  ;;  %v920_v19 = vsub.f32 %v6743_v62, %v10958_v3  ;;  %v915_v4 = vand.u32 4294901760, %v914_v44  ;;  %v6815_v3 = vand.u32 4294901760, %v309_v42  ;;  %910 = vmatpush.msrb.mxu3 %v909_v27  ;;  %v10963_v44 = vand.u32 4294901760, %v6775_v34  ;;  %10964 = vst [vmem:[#allocation14_spill] sm:$0xff] %v6829_v32 }
  0x59   : > { %755 = vmatpush.msrb.mxu0 %v10960_v21  ;;  %845 = vmatpush.msrb.mxu2 %v6691_v51  ;;  %v943_v21 = vand.u32 4294901760, %v6802_v60  ;;  %v6831_v22 = vand.u32 4294901760, %v305_v20 }
  0x5a   : > { %802 = vmatpush.msrb.mxu1 %v6474_v5  ;;  %v921_v5 = vand.u32 4294901760, %v920_v19  ;;  %v932_v16 = vsub.f32 %v6775_v34, %v10963_v44  ;;  %916 = vmatpush.msrb.mxu3 %v915_v4  ;;  %v10966_v19 = vand.u32 4294901760, %v6788_v48  ;;  %v6843_v36 = vsub.f32 %v309_v42, %v6815_v3 }
  0x5b   : > { %759 = vmatpush.msrb.mxu0 %v10962_v29  ;;  %847 = vmatpush.msrb.mxu2 %v6699_v61  ;;  %v949_v29 = vand.u32 4294901760, %v6818_v37  ;;  %v10967_v44 = vand.u32 4294901760, %v6573_v52  ;;  %v944_v4 = vsub.f32 %v6802_v60, %v943_v21  ;;  %v6858_v42 = vsub.f32 %v305_v20, %v6831_v22 }
  0x5c   : > { %804 = vmatpush.msrb.mxu1 %v6479_v9  ;;  %v927_v9 = vand.u32 4294901760, %v926_v59  ;;  %v938_v27 = vsub.f32 %v6788_v48, %v10966_v19  ;;  %922 = vmatpush.msrb.mxu3 %v921_v5  ;;  %v6855_v59 = vand.u32 4294901760, %v6829_v32  ;;  %v10969_v52 = vand.u32 4294901760, %v6578_v53 }
  0x5d   : > { %763 = vmatpush.msrb.mxu0 %v10965_v40  ;;  %849 = vmatpush.msrb.mxu2 %v6714_v2  ;;  %v955_v40 = vand.u32 4294901760, %v6843_v36  ;;  %v10970_v19 = vand.u32 4294901760, %v6600_v1  ;;  %v6872_v53 = vsub.f32 %v301_v6, %v6848_v46  ;;  %v10973_v6 = vand.u32 4294901760, %v6631_v39 }
  0x5e   : > { %806 = vmatpush.msrb.mxu1 %v6481_v10  ;;  %v933_v10 = vand.u32 4294901760, %v932_v16  ;;  %10968 = vst [vmem:[#allocation15_spill] sm:$0xff] %v6855_v59  ;;  %928 = vmatpush.msrb.mxu3 %v927_v9  ;;  %v939_v5 = vand.u32 4294901760, %v938_v27  ;;  %v950_v16 = vsub.f32 %v6818_v37, %v949_v29  ;;  %v528_v20 = vsub.f32 %v6829_v32, %v6855_v59 }
  0x5f   : > { %767 = vmatpush.msrb.mxu0 %v10967_v44  ;;  %851 = vmatpush.msrb.mxu2 %v6737_v14  ;;  %v961_v9 = vand.u32 4294901760, %v6858_v42  ;;  %v10972_v44 = vand.u32 4294901760, %v6616_v26  ;;  %v956_v1 = vsub.f32 %v6843_v36, %v955_v40  ;;  %v10977_v39 = vand.u32 4294901760, %v6652_v55 }
  0x60   : > { %808 = vmatpush.msrb.mxu1 %v6483_v11  ;;  %v234_v11 = vld [vmem:[#allocation3 + $0x8] sm:$0xff]  ;;  %934 = vmatpush.msrb.mxu3 %v933_v10  ;;  %v967_v10 = vand.u32 4294901760, %v6872_v53  ;;  %v6892_v26 = vand.u32 4294901760, %v528_v20 }
  0x61   : > { %771 = vmatpush.msrb.mxu0 %v10969_v52  ;;  %853 = vmatpush.msrb.mxu2 %v6751_v15  ;;  %v6878_v27 = vand.u32 4294901760, %v234_v11  ;;  %v10976_v52 = vand.u32 4294901760, %v6645_v49 }
  0x62   : > { %810 = vmatpush.msrb.mxu1 %v6498_v17  ;;  %v945_v17 = vand.u32 4294901760, %v944_v4  ;;  %940 = vmatpush.msrb.mxu3 %v939_v5  ;;  %10974 = vst [vmem:[#allocation17_spill] sm:$0xff] %v6892_v26  ;;  %v968_v5 = vsub.f32 %v6872_v53, %v967_v10 }
  0x63   : > { %775 = vmatpush.msrb.mxu0 %v10970_v19  ;;  %855 = vmatpush.msrb.mxu2 %v6764_v0  ;;  %10971 = vst [vmem:[#allocation16_spill] sm:$0xff] %v6878_v27  ;;  %v6898_v4 = vsub.f32 %v234_v11, %v6878_v27 }
  0x64   : > { %812 = vmatpush.msrb.mxu1 %v6515_v25  ;;  %v951_v25 = vand.u32 4294901760, %v950_v16  ;;  %946 = vmatpush.msrb.mxu3 %v945_v17  ;;  %v10982_v16 = vld [vmem:[#allocation12_spill] sm:$0xff] }
  0x65   : > { %779 = vmatpush.msrb.mxu0 %v10972_v44  ;;  %857 = vmatpush.msrb.mxu2 %v6777_v45  ;;  %10975 = vst [vmem:[#allocation18_spill] sm:$0xff] %v6898_v4  ;;  %v393_v17 = vld [vmem:[%s6461_s5 + $0x4e0] sm:$0xff] }
  0x66   : > { %814 = vmatpush.msrb.mxu1 %v6520_v28  ;;  %v962_v28 = vsub.f32 %v6858_v42, %v961_v9  ;;  %952 = vmatpush.msrb.mxu3 %v951_v25  ;;  %v389_v25 = vld [vmem:[%s6461_s5 + $0x4c0] sm:$0xff] }
  0x67   : > { %783 = vmatpush.msrb.mxu0 %v10973_v6  ;;  %859 = vmatpush.msrb.mxu2 %v6790_v47 }
  0x68   : > { %816 = vmatpush.msrb.mxu1 %v6539_v35  ;;  %v957_v35 = vand.u32 4294901760, %v956_v1  ;;  %530 = vmatmul.f32.vlgmr.msra.gmra.mxu0 %v6892_v26  ;;  %v963_v49 = vand.u32 4294901760, %v962_v28  ;;  %v441_v26 = vld [vmem:[%s6461_s5 + $0x660] sm:$0xff] }
  0x69   : > { %787 = vmatpush.msrb.mxu0 %v10976_v52  ;;  %861 = vmatpush.msrb.mxu2 %v6815_v3  ;;  %v385_v52 = vld [vmem:[%s6461_s5 + $0x4a0] sm:$0xff] }
  0x6a   : > { %818 = vmatpush.msrb.mxu1 %v6551_v41  ;;  %v6913_v41 = vand.u32 4294901760, %v6898_v4  ;;  %958 = vmatpush.msrb.mxu3 %v957_v35 }
  0x6b   : > { %791 = vmatpush.msrb.mxu0 %v10977_v39  ;;  %863 = vmatpush.msrb.mxu2 %v6831_v22 }
  0x6c   : > { %820 = vmatpush.msrb.mxu1 %v6569_v50  ;;  %10978 = vst [vmem:[#allocation19_spill] sm:$0xff] %v6913_v41  ;;  %685 = vmatmul.f32.vlgmr.msra.gmra.mxu2 %v6829_v32  ;;  %v969_v50 = vand.u32 4294901760, %v968_v5  ;;  %v869_v55 = vsub.f32 %v6898_v4, %v6913_v41  ;;  %v7090_v5 = vand.u32 4294901760, %v389_v25 }
  0x6d   : > { %978 = vmatpush.msra.mxu0 %v6639_v43  ;;  %865 = vmatpush.msrb.mxu2 %v6848_v46 }
  0x6e   : > { %822 = vmatpush.msrb.mxu1 %v6585_v57  ;;  %964 = vmatpush.msrb.mxu3 %v963_v49  ;;  %v10979_v57 = vand.u32 4294901760, %v6639_v43  ;;  %v6932_v11 = vand.u32 4294901760, %v869_v55  ;;  %v10984_v43 = vand.u32 4294901760, %v6689_v58 }
  0x6f   : > { %981 = vmatpush.msra.mxu0 %v6655_v56  ;;  %724 = vmatmul.f32.vlgmr.msra.gmra.mxu3 %v6855_v59 }
  0x70   : > { %824 = vmatpush.msrb.mxu1 %v6596_v63  ;;  %1072 = vmatpush.msra.mxu2 %v10979_v57  ;;  %v10980_v63 = vand.u32 4294901760, %v6655_v56  ;;  %10981 = vst [vmem:[#allocation20_spill] sm:$0xff] %v6932_v11  ;;  %v7102_v57 = vand.u32 4294901760, %v385_v52 }
  0x71   : > { %984 = vmatpush.msra.mxu0 %v6675_v38  ;;  %970 = vmatpush.msrb.mxu3 %v969_v50  ;;  %v381_v50 = vld [vmem:[%s6461_s5 + $0x480] sm:$0xff] }
  0x72   : > { %826 = vmatpush.msrb.mxu1 %v6613_v18  ;;  %1076 = vmatpush.msra.mxu2 %v10980_v63  ;;  %v10983_v18 = vand.u32 4294901760, %v6675_v38 }
  0x73   : > { %631 = vmatmul.f32.vlgmr.msra.gmra.mxu1 %v6804_v13  ;;  %987 = vmatpush.msra.mxu0 %v6689_v58  ;;  %v10986_v58 = vand.u32 4294901760, %v6723_v24 }
  0x74   : > { %1139 = vmatpush.msra.mxu3 %v6607_v8  ;;  %828 = vmatpush.msrb.mxu1 %v10982_v16 }
  0x75   : > { %990 = vmatpush.msra.mxu0 %v6707_v33  ;;  %1080 = vmatpush.msra.mxu2 %v10983_v18  ;;  %v235_v18 = vld [vmem:[#allocation3 + $0x10] sm:$0xff] }
  0x76   : > { %1031 = vmatpush.msra.mxu1 %v6607_v8  ;;  %1141 = vmatpush.msra.mxu3 %v6622_v31  ;;  %v10985_v8 = vand.u32 4294901760, %v6707_v33  ;;  %v10987_v33 = vand.u32 4294901760, %v6729_v23 }
  0x77   : > { %871 = vmatmul.f32.vlgmr.msrb.gmra.mxu2 %v6932_v11  ;;  %993 = vmatpush.msra.mxu0 %v6723_v24  ;;  %v425_v24 = vld [vmem:[%s6461_s5 + $0x5e0] sm:$0xff] }
  0x78   : > { %1033 = vmatpush.msra.mxu1 %v6622_v31  ;;  %1084 = vmatpush.msra.mxu2 %v10984_v43  ;;  %v10988_v31 = vand.u32 4294901760, %v6743_v62  ;;  %v6982_v38 = vand.u32 4294901760, %v425_v24 }
  0x79   : > { %1143 = vmatpush.msra.mxu3 %v6647_v54  ;;  %793 = vmatmul.f32.vlgmr.msrb.gmra.mxu0 %v6804_v13 }
  0x7a   : > { %972 = vmatmul.f32.vlgmr.msrb.gmra.mxu3 %v6878_v27  ;;  %996 = vmatpush.msra.mxu0 %v6729_v23  ;;  %v10989_v23 = vand.u32 4294901760, %v6762_v30 }
  0x7b   : > { %1035 = vmatpush.msra.mxu1 %v6647_v54  ;;  %1088 = vmatpush.msra.mxu2 %v10985_v8  ;;  %v10991_v54 = vand.u32 4294901760, %v6788_v48  ;;  %v377_v8 = vld [vmem:[%s6461_s5 + $0x460] sm:$0xff] }
  0x7c   : > { %1145 = vmatpush.msra.mxu3 %v6663_v12  ;;  %830 = vmatmul.f32.vlgmr.msrb.gmra.mxu1 %v6804_v13  ;;  %v457_v13 = vld [vmem:[%s6461_s5 + $0x6e0] sm:$0xff] }
  0x7d   : > { %999 = vmatpush.msra.mxu0 %v6743_v62  ;;  %1037 = vmatpush.msra.mxu1 %v6663_v12  ;;  %v413_v12 = vld [vmem:[%s6461_s5 + $0x580] sm:$0xff]  ;;  %v7304_v32 = vand.u32 4294901760, %v457_v13 }
  0x7e   : > { %1092 = vmatpush.msra.mxu2 %v10986_v58  ;;  %1147 = vmatpush.msra.mxu3 %v6677_v7  ;;  %v7009_v62 = vand.u32 4294901760, %v413_v12 }
  0x7f   : > { %1002 = vmatpush.msra.mxu0 %v6762_v30  ;;  %1039 = vmatpush.msra.mxu1 %v6677_v7  ;;  %v10990_v7 = vand.u32 4294901760, %v6775_v34  ;;  %v417_v30 = vld [vmem:[%s6461_s5 + $0x5a0] sm:$0xff] }
  0x80   : > { %1096 = vmatpush.msra.mxu2 %v10987_v33  ;;  %1149 = vmatpush.msra.mxu3 %v6691_v51  ;;  %v7115_v33 = vand.u32 4294901760, %v381_v50 }
  0x81   : > { %1005 = vmatpush.msra.mxu0 %v6775_v34  ;;  %1041 = vmatpush.msra.mxu1 %v6691_v51  ;;  %v421_v51 = vld [vmem:[%s6461_s5 + $0x5c0] sm:$0xff] }
  0x82   : > { %1100 = vmatpush.msra.mxu2 %v10988_v31  ;;  %1151 = vmatpush.msra.mxu3 %v6699_v61  ;;  %v6990_v56 = vand.u32 4294901760, %v421_v51  ;;  %v405_v34 = vld [vmem:[%s6461_s5 + $0x540] sm:$0xff] }
  0x83   : > { %1008 = vmatpush.msra.mxu0 %v6788_v48  ;;  %1043 = vmatpush.msra.mxu1 %v6699_v61  ;;  %v6998_v61 = vand.u32 4294901760, %v417_v30 }
  0x84   : > { %1104 = vmatpush.msra.mxu2 %v10989_v23  ;;  %1153 = vmatpush.msra.mxu3 %v6714_v2 }
  0x85   : > { %1011 = vmatpush.msra.mxu0 %v6802_v60  ;;  %1045 = vmatpush.msra.mxu1 %v6714_v2  ;;  %v7001_v2 = vsub.f32 %v425_v24, %v6982_v38  ;;  %v7028_v60 = vand.u32 4294901760, %v405_v34  ;;  %v7119_v24 = vsub.f32 %v389_v25, %v7090_v5 }
  0x86   : > { %1108 = vmatpush.msra.mxu2 %v10990_v7  ;;  %1155 = vmatpush.msra.mxu3 %v6737_v14  ;;  %v7124_v7 = vand.u32 4294901760, %v235_v18 }
  0x87   : > { %1014 = vmatpush.msra.mxu0 %v6818_v37  ;;  %1047 = vmatpush.msra.mxu1 %v6737_v14  ;;  %v409_v14 = vld [vmem:[%s6461_s5 + $0x560] sm:$0xff]  ;;  %v7024_v37 = vsub.f32 %v417_v30, %v6998_v61 }
  0x88   : > { %1112 = vmatpush.msra.mxu2 %v10991_v54  ;;  %1157 = vmatpush.msra.mxu3 %v6751_v15  ;;  %v7017_v48 = vand.u32 4294901760, %v409_v14  ;;  %10992 = vst [vmem:[#allocation12_spill] sm:$0xff] %v7124_v7  ;;  %v7130_v54 = vand.u32 4294901760, %v377_v8  ;;  %v7152_v25 = vsub.f32 %v235_v18, %v7124_v7 }
  0x89   : > { %1017 = vmatpush.msra.mxu0 %v6843_v36  ;;  %1049 = vmatpush.msra.mxu1 %v6751_v15  ;;  %v7012_v15 = vsub.f32 %v421_v51, %v6990_v56  ;;  %v397_v36 = vld [vmem:[%s6461_s5 + $0x500] sm:$0xff]  ;;  %v10786_v19 = vand.u32 4294901760, %v7024_v37 }
  0x8a   : > { %1116 = vmatpush.msra.mxu2 %v943_v21  ;;  %1159 = vmatpush.msra.mxu3 %v6764_v0  ;;  %v7064_v20 = vand.u32 4294901760, %v397_v36  ;;  %v373_v51 = vld [vmem:[%s6461_s5 + $0x440] sm:$0xff]  ;;  %10993 = vst [vmem:[#allocation21_spill] sm:$0xff] %v7152_v25 }
  0x8b   : > { %1020 = vmatpush.msra.mxu0 %v6858_v42  ;;  %1051 = vmatpush.msra.mxu1 %v6764_v0  ;;  %v10789_v0 = vand.u32 4294901760, %v7001_v2  ;;  %v10788_v21 = vand.u32 4294901760, %v7012_v15  ;;  %v1231_v6 = vsub.f32 %v7024_v37, %v10786_v19  ;;  %v473_v19 = vld [vmem:[%s6461_s5 + $0x760] sm:$0xff] }
  0x8c   : > { %1120 = vmatpush.msra.mxu2 %v949_v29  ;;  %1161 = vmatpush.msra.mxu3 %v6777_v45  ;;  %v7036_v29 = vsub.f32 %v413_v12, %v7009_v62  ;;  %v7093_v49 = vsub.f32 %v397_v36, %v7064_v20  ;;  %v7142_v36 = vand.u32 4294901760, %v373_v51 }
  0x8d   : > { %1023 = vmatpush.msra.mxu0 %v6872_v53  ;;  %1053 = vmatpush.msra.mxu1 %v6777_v45  ;;  %v401_v45 = vld [vmem:[%s6461_s5 + $0x520] sm:$0xff]  ;;  %v1219_v42 = vsub.f32 %v7001_v2, %v10789_v0  ;;  %v1225_v53 = vsub.f32 %v7012_v15, %v10788_v21  ;;  %v1232_v55 = vand.u32 4294901760, %v1231_v6 }
  0x8e   : > { %1124 = vmatpush.msra.mxu2 %v955_v40  ;;  %1163 = vmatpush.msra.mxu3 %v6790_v47  ;;  %v7050_v40 = vand.u32 4294901760, %v401_v45  ;;  %v10780_v31 = vand.u32 4294901760, %v7093_v49 }
  0x8f   : > { %1026 = vmatmul.f32.vlgmr.msra.gmra.mxu0 %v6898_v4  ;;  %1055 = vmatpush.msra.mxu1 %v6790_v47  ;;  %v7041_v47 = vsub.f32 %v409_v14, %v7017_v48  ;;  %v1220_v1 = vand.u32 4294901760, %v1219_v42  ;;  %v1226_v35 = vand.u32 4294901760, %v1225_v53  ;;  %v7134_v14 = vsub.f32 %v385_v52, %v7102_v57  ;;  %v369_v53 = vld [vmem:[%s6461_s5 + $0x420] sm:$0xff] }
  0x90   : > { %1176 = vmatpush.msrb.mxu0 %v6982_v38  ;;  %1128 = vmatpush.msra.mxu2 %v961_v9  ;;  %v10785_v9 = vand.u32 4294901760, %v7036_v29  ;;  %v7079_v28 = vsub.f32 %v401_v45, %v7050_v40  ;;  %v1261_v45 = vsub.f32 %v7093_v49, %v10780_v31  ;;  %v10777_v42 = vand.u32 4294901760, %v7119_v24 }
  0x91   : > { %1165 = vmatpush.msra.mxu3 %v6815_v3  ;;  %1057 = vmatpush.msra.mxu1 %v6815_v3  ;;  %v7056_v3 = vsub.f32 %v405_v34, %v7028_v60  ;;  %v10784_v44 = vand.u32 4294901760, %v7041_v47  ;;  %v10779_v52 = vand.u32 4294901760, %v7134_v14 }
  0x92   : > { %1178 = vmatpush.msrb.mxu0 %v6990_v56  ;;  %1132 = vmatpush.msra.mxu2 %v967_v10  ;;  %v7076_v10 = vand.u32 4294901760, %v393_v17  ;;  %v1237_v39 = vsub.f32 %v7036_v29, %v10785_v9  ;;  %v10781_v63 = vand.u32 4294901760, %v7079_v28  ;;  %v1273_v18 = vsub.f32 %v7119_v24, %v10777_v42 }
  0x93   : > { %1167 = vmatpush.msra.mxu3 %v6831_v22  ;;  %1134 = vmatmul.f32.vlgmr.msra.gmra.mxu2 %v6878_v27 }
  0x94   : > { %1180 = vmatpush.msrb.mxu0 %v6998_v61  ;;  %1319 = vmatpush.msrb.mxu2 %v7001_v2  ;;  %v7106_v16 = vsub.f32 %v393_v17, %v7076_v10  ;;  %v1238_v58 = vand.u32 4294901760, %v1237_v39  ;;  %v1255_v30 = vsub.f32 %v7079_v28, %v10781_v63  ;;  %v7146_v17 = vsub.f32 %v381_v50, %v7115_v33  ;;  %v489_v39 = vld [vmem:[%s6461_s5 + $0x7e0] sm:$0xff] }
  0x95   : > { %1059 = vmatpush.msra.mxu1 %v6831_v22  ;;  %1169 = vmatpush.msra.mxu3 %v6848_v46  ;;  %v10782_v22 = vand.u32 4294901760, %v7056_v3  ;;  %v365_v50 = vld [vmem:[%s6461_s5 + $0x400] sm:$0xff] }
  0x96   : > { %1171 = vmatmul.f32.vlgmr.msra.gmra.mxu3 %v6878_v27  ;;  %1182 = vmatpush.msrb.mxu0 %v7009_v62  ;;  %v10778_v12 = vand.u32 4294901760, %v7106_v16  ;;  %v10998_v27 = vand.u32 4294901760, %v7001_v2 }
  0x97   : > { %1322 = vmatpush.msrb.mxu2 %v7012_v15  ;;  %1372 = vmatpush.msrb.mxu3 %v6982_v38  ;;  %v1249_v43 = vsub.f32 %v7056_v3, %v10782_v22  ;;  %v477_v22 = vld [vmem:[%s6461_s5 + $0x780] sm:$0xff] }
  0x98   : > { %1061 = vmatpush.msra.mxu1 %v6848_v46  ;;  %1184 = vmatpush.msrb.mxu0 %v7017_v48  ;;  %v1243_v46 = vsub.f32 %v7041_v47, %v10784_v44  ;;  %v1267_v6 = vsub.f32 %v7106_v16, %v10778_v12 }
  0x99   : > { %1065 = vmatmul.f32.vlgmr.msra.gmra.mxu1 %v6913_v41  ;;  %1325 = vmatpush.msrb.mxu2 %v7024_v37  ;;  %v1250_v34 = vand.u32 4294901760, %v1249_v43  ;;  %v10783_v43 = vand.u32 4294901760, %v7146_v17 }
  0x9a   : > { %1221 = vmatpush.msrb.mxu1 %v1220_v1  ;;  %1374 = vmatpush.msrb.mxu3 %v6990_v56  ;;  %v1244_v23 = vand.u32 4294901760, %v1243_v46  ;;  %v1256_v1 = vand.u32 4294901760, %v1255_v30  ;;  %v7165_v46 = vand.u32 4294901760, %v369_v53  ;;  %v485_v30 = vld [vmem:[%s6461_s5 + $0x7c0] sm:$0xff] }
  0x9b   : > { %1186 = vmatpush.msrb.mxu0 %v7028_v60  ;;  %1328 = vmatpush.msrb.mxu2 %v7036_v29  ;;  %v7202_v63 = vand.u32 4294901760, %v485_v30 }
  0x9c   : > { %1227 = vmatpush.msrb.mxu1 %v1226_v35  ;;  %1376 = vmatpush.msrb.mxu3 %v6998_v61  ;;  %v7160_v35 = vsub.f32 %v377_v8, %v7130_v54  ;;  %v7174_v8 = vsub.f32 %v373_v51, %v7142_v36  ;;  %v1279_v51 = vsub.f32 %v7134_v14, %v10779_v52 }
  0x9d   : > { %1188 = vmatpush.msrb.mxu0 %v7050_v40  ;;  %1331 = vmatpush.msrb.mxu2 %v7041_v47  ;;  %v7194_v12 = vsub.f32 %v369_v53, %v7165_v46  ;;  %v1285_v52 = vsub.f32 %v7146_v17, %v10783_v43 }
  0x9e   : > { %1233 = vmatpush.msrb.mxu1 %v1232_v55  ;;  %1378 = vmatpush.msrb.mxu3 %v7009_v62  ;;  %v1262_v55 = vand.u32 4294901760, %v1261_v45  ;;  %v7188_v45 = vand.u32 4294901760, %v365_v50  ;;  %v10787_v42 = vand.u32 4294901760, %v7160_v35  ;;  %v10790_v31 = vand.u32 4294901760, %v7174_v8 }
  0x9f   : > { %1190 = vmatpush.msrb.mxu0 %v7064_v20  ;;  %1334 = vmatpush.msrb.mxu2 %v7056_v3 }
  0xa0   : > { %1239 = vmatpush.msrb.mxu1 %v1238_v58  ;;  %1380 = vmatpush.msrb.mxu3 %v7017_v48  ;;  %v7179_v58 = vand.u32 4294901760, %v7152_v25  ;;  %v1291_v43 = vsub.f32 %v7160_v35, %v10787_v42  ;;  %v7217_v44 = vsub.f32 %v365_v50, %v7188_v45  ;;  %v1297_v50 = vsub.f32 %v7174_v8, %v10790_v31 }
  0xa1   : > { %1192 = vmatpush.msrb.mxu0 %v7076_v10  ;;  %1337 = vmatpush.msrb.mxu2 %v7079_v28  ;;  %v7232_v42 = vsub.f32 %v485_v30, %v7202_v63 }
  0xa2   : > { %1245 = vmatpush.msrb.mxu1 %v1244_v23  ;;  %1382 = vmatpush.msrb.mxu3 %v7028_v60  ;;  %10994 = vst [vmem:[#allocation22_spill] sm:$0xff] %v7179_v58  ;;  %v7181_v23 = vand.u32 4294901760, %v489_v39  ;;  %v1210_v53 = vsub.f32 %v7152_v25, %v7179_v58 }
  0xa3   : > { %1194 = vmatpush.msrb.mxu0 %v7090_v5  ;;  %1340 = vmatpush.msrb.mxu2 %v7093_v49  ;;  %v11001_v2 = vand.u32 4294901760, %v7232_v42 }
  0xa4   : > { %1251 = vmatpush.msrb.mxu1 %v1250_v34  ;;  %1384 = vmatpush.msrb.mxu3 %v7050_v40  ;;  %v1268_v34 = vand.u32 4294901760, %v1267_v6  ;;  %v1274_v6 = vand.u32 4294901760, %v1273_v18  ;;  %v1280_v18 = vand.u32 4294901760, %v1279_v51  ;;  %v1286_v51 = vand.u32 4294901760, %v1285_v52 }
  0xa5   : > { %1196 = vmatpush.msrb.mxu0 %v7102_v57  ;;  %1343 = vmatpush.msrb.mxu2 %v7106_v16  ;;  %v7236_v21 = vand.u32 4294901760, %v1210_v53  ;;  %v1292_v52 = vand.u32 4294901760, %v1291_v43  ;;  %v10996_v53 = vand.u32 4294901760, %v7194_v12  ;;  %v1298_v43 = vand.u32 4294901760, %v1297_v50 }
  0xa6   : > { %1257 = vmatpush.msrb.mxu1 %v1256_v1  ;;  %1386 = vmatpush.msrb.mxu3 %v7064_v20  ;;  %v481_v1 = vld [vmem:[%s6461_s5 + $0x7a0] sm:$0xff]  ;;  %v10999_v50 = vand.u32 4294901760, %v7217_v44 }
  0xa7   : > { %1198 = vmatpush.msrb.mxu0 %v7115_v33  ;;  %1346 = vmatpush.msrb.mxu2 %v7119_v24  ;;  %v7219_v9 = vand.u32 4294901760, %v481_v1  ;;  %10995 = vst [vmem:[#allocation23_spill] sm:$0xff] %v7236_v21  ;;  %v1303_v0 = vsub.f32 %v7194_v12, %v10996_v53 }
  0xa8   : > { %1263 = vmatpush.msrb.mxu1 %v1262_v55  ;;  %1388 = vmatpush.msrb.mxu3 %v7076_v10  ;;  %v7210_v55 = vsub.f32 %v489_v39, %v7181_v23  ;;  %v469_v39 = vld [vmem:[%s6461_s5 + $0x740] sm:$0xff]  ;;  %v1309_v31 = vsub.f32 %v7217_v44, %v10999_v50 }
  0xa9   : > { %1200 = vmatpush.msrb.mxu0 %v7130_v54  ;;  %1349 = vmatpush.msrb.mxu2 %v7134_v14  ;;  %v7245_v30 = vsub.f32 %v481_v1, %v7219_v9  ;;  %v7258_v1 = vand.u32 4294901760, %v469_v39 }
  0xaa   : > { %1269 = vmatpush.msrb.mxu1 %v1268_v34  ;;  %1390 = vmatpush.msrb.mxu3 %v7090_v5  ;;  %v7225_v34 = vand.u32 4294901760, %v477_v22  ;;  %v10997_v4 = vand.u32 4294901760, %v7210_v55 }
  0xab   : > { %1202 = vmatpush.msrb.mxu0 %v7142_v36  ;;  %1352 = vmatpush.msrb.mxu2 %v7146_v17  ;;  %v7287_v50 = vsub.f32 %v469_v39, %v7258_v1  ;;  %v11003_v39 = vand.u32 4294901760, %v7245_v30 }
  0xac   : > { %1275 = vmatpush.msrb.mxu1 %v1274_v6  ;;  %1392 = vmatpush.msrb.mxu3 %v7102_v57  ;;  %v7239_v6 = vand.u32 4294901760, %v473_v19  ;;  %v7253_v41 = vsub.f32 %v477_v22, %v7225_v34  ;;  %v1560_v53 = vsub.f32 %v7210_v55, %v10997_v4  ;;  %v1304_v4 = vand.u32 4294901760, %v1303_v0 }
  0xad   : > { %1204 = vmatpush.msrb.mxu0 %v7165_v46  ;;  %1355 = vmatpush.msrb.mxu2 %v7160_v35 }
  0xae   : > { %1281 = vmatpush.msrb.mxu1 %v1280_v18  ;;  %1394 = vmatpush.msrb.mxu3 %v7115_v33  ;;  %v465_v18 = vld [vmem:[%s6461_s5 + $0x720] sm:$0xff]  ;;  %v7266_v22 = vsub.f32 %v473_v19, %v7239_v6  ;;  %v1561_v0 = vand.u32 4294901760, %v1560_v53  ;;  %v11004_v53 = vand.u32 4294901760, %v7253_v41 }
  0xaf   : > { %1206 = vmatpush.msrb.mxu0 %v7188_v45  ;;  %1358 = vmatpush.msrb.mxu2 %v7174_v8  ;;  %v7275_v11 = vand.u32 4294901760, %v465_v18 }
  0xb0   : > { %1287 = vmatpush.msrb.mxu1 %v1286_v51  ;;  %1396 = vmatpush.msrb.mxu3 %v7130_v54  ;;  %v461_v51 = vld [vmem:[%s6461_s5 + $0x700] sm:$0xff] }
  0xb1   : > { %1212 = vmatmul.f32.vlgmr.msrb.gmra.mxu0 %v7236_v21  ;;  %1361 = vmatpush.msrb.mxu2 %v7194_v12  ;;  %v7289_v21 = vand.u32 4294901760, %v461_v51  ;;  %v7302_v59 = vsub.f32 %v465_v18, %v7275_v11 }
  0xb2   : > { %1413 = vmatpush.msra.mxu0 %v10998_v27  ;;  %1293 = vmatpush.msrb.mxu1 %v1292_v52  ;;  %v11000_v27 = vand.u32 4294901760, %v7012_v15  ;;  %v1566_v52 = vsub.f32 %v7232_v42, %v11001_v2  ;;  %v453_v15 = vld [vmem:[%s6461_s5 + $0x6c0] sm:$0xff]  ;;  %v1572_v2 = vsub.f32 %v7245_v30, %v11003_v39 }
  0xb3   : > { %1398 = vmatpush.msrb.mxu3 %v7142_v36  ;;  %1364 = vmatpush.msrb.mxu2 %v7217_v44  ;;  %v7316_v18 = vsub.f32 %v461_v51, %v7289_v21  ;;  %v7329_v51 = vsub.f32 %v457_v13, %v7304_v32 }
  0xb4   : > { %1417 = vmatpush.msra.mxu0 %v11000_v27  ;;  %1299 = vmatpush.msrb.mxu1 %v1298_v43  ;;  %v11002_v43 = vand.u32 4294901760, %v7024_v37  ;;  %v1310_v27 = vand.u32 4294901760, %v1309_v31  ;;  %v1578_v37 = vsub.f32 %v7253_v41, %v11004_v53  ;;  %v11005_v31 = vand.u32 4294901760, %v7036_v29 }
  0xb5   : > { %1400 = vmatpush.msrb.mxu3 %v7165_v46  ;;  %1367 = vmatmul.f32.vlgmr.msrb.gmra.mxu2 %v7152_v25  ;;  %v1567_v39 = vand.u32 4294901760, %v1566_v52  ;;  %v11006_v53 = vand.u32 4294901760, %v7266_v22  ;;  %v11007_v29 = vand.u32 4294901760, %v7041_v47  ;;  %v1573_v52 = vand.u32 4294901760, %v1572_v2 }
  0xb6   : > { %1421 = vmatpush.msra.mxu0 %v11002_v43  ;;  %1517 = vmatpush.msra.mxu2 %v7181_v23  ;;  %v449_v43 = vld [vmem:[%s6461_s5 + $0x6a0] sm:$0xff]  ;;  %v11008_v47 = vand.u32 4294901760, %v7287_v50  ;;  %v10814_v2 = vand.u32 4294901760, %v7316_v18 }
  0xb7   : > { %1305 = vmatpush.msrb.mxu1 %v1304_v4  ;;  %1402 = vmatpush.msrb.mxu3 %v7188_v45  ;;  %v7318_v4 = vand.u32 4294901760, %v453_v15  ;;  %v1584_v25 = vsub.f32 %v7266_v22, %v11006_v53  ;;  %v7331_v19 = vand.u32 4294901760, %v449_v43 }
  0xb8   : > { %1406 = vmatmul.f32.vlgmr.msrb.gmra.mxu3 %v7179_v58  ;;  %1425 = vmatpush.msra.mxu0 %v11005_v31  ;;  %v445_v58 = vld [vmem:[%s6461_s5 + $0x680] sm:$0xff]  ;;  %v10813_v31 = vand.u32 4294901760, %v7302_v59 }
  0xb9   : > { %1519 = vmatpush.msra.mxu2 %v7202_v63  ;;  %1562 = vmatpush.msra.mxu3 %v1561_v0  ;;  %v1579_v0 = vand.u32 4294901760, %v1578_v37  ;;  %v7342_v13 = vsub.f32 %v453_v15, %v7318_v4  ;;  %v7344_v53 = vand.u32 4294901760, %v445_v58  ;;  %v1585_v37 = vand.u32 4294901760, %v1584_v25 }
  0xba   : > { %1311 = vmatpush.msrb.mxu1 %v1310_v27  ;;  %1429 = vmatpush.msra.mxu0 %v11007_v29  ;;  %v1590_v27 = vsub.f32 %v7287_v50, %v11008_v47  ;;  %v11009_v29 = vand.u32 4294901760, %v7056_v3  ;;  %v7355_v15 = vsub.f32 %v449_v43, %v7331_v19  ;;  %v7357_v47 = vand.u32 4294901760, %v441_v26  ;;  %v437_v3 = vld [vmem:[%s6461_s5 + $0x640] sm:$0xff] }
  0xbb   : > { %1313 = vmatmul.f32.vlgmr.msrb.gmra.mxu1 %v7124_v7  ;;  %1521 = vmatpush.msra.mxu2 %v7219_v9  ;;  %v1602_v25 = vsub.f32 %v7316_v18, %v10814_v2  ;;  %v429_v43 = vld [vmem:[%s6461_s5 + $0x600] sm:$0xff] }
  0xbc   : > { %1480 = vmatpush.msra.mxu1 %v6982_v38  ;;  %1568 = vmatpush.msra.mxu3 %v1567_v39  ;;  %v1596_v38 = vsub.f32 %v7302_v59, %v10813_v31  ;;  %v433_v31 = vld [vmem:[%s6461_s5 + $0x620] sm:$0xff]  ;;  %v236_v39 = vld [vmem:[#allocation3 + $0x18] sm:$0xff]  ;;  %v7383_v2 = vsub.f32 %v441_v26, %v7357_v47 }
  0xbd   : > { %1433 = vmatpush.msra.mxu0 %v11009_v29  ;;  %1523 = vmatpush.msra.mxu2 %v7225_v34  ;;  %v11010_v29 = vand.u32 4294901760, %v7079_v28  ;;  %v11011_v28 = vand.u32 4294901760, %v7093_v49  ;;  %v11013_v49 = vand.u32 4294901760, %v7106_v16 }
  0xbe   : > { %1482 = vmatpush.msra.mxu1 %v6990_v56  ;;  %1574 = vmatpush.msra.mxu3 %v1573_v52  ;;  %v1591_v56 = vand.u32 4294901760, %v1590_v27  ;;  %v7369_v52 = vsub.f32 %v445_v58, %v7344_v53  ;;  %v11012_v27 = vand.u32 4294901760, %v7329_v51  ;;  %v11016_v58 = vand.u32 4294901760, %v7119_v24 }
  0xbf   : > { %1437 = vmatpush.msra.mxu0 %v11010_v29  ;;  %1525 = vmatpush.msra.mxu2 %v7239_v6  ;;  %v11018_v24 = vand.u32 4294901760, %v7134_v14 }
  0xc0   : > { %1484 = vmatpush.msra.mxu1 %v6998_v61  ;;  %1580 = vmatpush.msra.mxu3 %v1579_v0  ;;  %v7375_v61 = vand.u32 4294901760, %v437_v3  ;;  %v1597_v0 = vand.u32 4294901760, %v1596_v38  ;;  %v1608_v29 = vsub.f32 %v7329_v51, %v11012_v27  ;;  %v11015_v38 = vand.u32 4294901760, %v7342_v13 }
  0xc1   : > { %1441 = vmatpush.msra.mxu0 %v11011_v28  ;;  %1527 = vmatpush.msra.mxu2 %v7258_v1  ;;  %v7389_v28 = vand.u32 4294901760, %v433_v31  ;;  %v1625_v26 = vand.u32 4294901760, %v7369_v52 }
  0xc2   : > { %1486 = vmatpush.msra.mxu1 %v7009_v62  ;;  %1586 = vmatpush.msra.mxu3 %v1585_v37  ;;  %v7391_v62 = vand.u32 4294901760, %v236_v39  ;;  %v1603_v37 = vand.u32 4294901760, %v1602_v25  ;;  %v1614_v27 = vsub.f32 %v7342_v13, %v11015_v38  ;;  %v7402_v16 = vsub.f32 %v437_v3, %v7375_v61 }
  0xc3   : > { %1445 = vmatpush.msra.mxu0 %v11013_v49  ;;  %1529 = vmatpush.msra.mxu2 %v7275_v11  ;;  %v7404_v49 = vand.u32 4294901760, %v429_v43  ;;  %v1631_v38 = vand.u32 4294901760, %v7383_v2  ;;  %v7415_v3 = vsub.f32 %v433_v31, %v7389_v28 }
  0xc4   : > { %11014 = vst [vmem:[#allocation24_spill] sm:$0xff] %v7391_v62  ;;  %1488 = vmatpush.msra.mxu1 %v7017_v48  ;;  %1592 = vmatpush.msra.mxu3 %v1591_v56  ;;  %v1609_v48 = vand.u32 4294901760, %v1608_v29  ;;  %v11017_v56 = vand.u32 4294901760, %v7355_v15  ;;  %v11020_v29 = vand.u32 4294901760, %v7146_v17  ;;  %v1637_v14 = vand.u32 4294901760, %v7402_v16 }
  0xc5   : > { %1449 = vmatpush.msra.mxu0 %v11016_v58  ;;  %1531 = vmatpush.msra.mxu2 %v7289_v21  ;;  %v7418_v58 = vsub.f32 %v236_v39, %v7391_v62  ;;  %v7429_v31 = vsub.f32 %v429_v43, %v7404_v49  ;;  %v1632_v39 = vsub.f32 %v7383_v2, %v1631_v38  ;;  %v1643_v17 = vand.u32 4294901760, %v7415_v3 }
  0xc6   : > { %1490 = vmatpush.msra.mxu1 %v7028_v60  ;;  %1598 = vmatpush.msra.mxu3 %v1597_v0  ;;  %v1620_v25 = vsub.f32 %v7355_v15, %v11017_v56  ;;  %v1615_v60 = vand.u32 4294901760, %v1614_v27  ;;  %v1626_v0 = vsub.f32 %v7369_v52, %v1625_v26  ;;  %v11023_v43 = vand.u32 4294901760, %v7174_v8 }
  0xc7   : > { %1453 = vmatpush.msra.mxu0 %v11018_v24  ;;  %1533 = vmatpush.msra.mxu2 %v7304_v32  ;;  %11019 = vst [vmem:[#allocation25_spill] sm:$0xff] %v7418_v58  ;;  %v7440_v27 = vand.u32 4294901760, %v7418_v58  ;;  %v1633_v56 = vand.u32 4294901760, %v1632_v39  ;;  %v11025_v24 = vand.u32 4294901760, %v7217_v44 }
  0xc8   : > { %1492 = vmatpush.msra.mxu1 %v7050_v40  ;;  %1604 = vmatpush.msra.mxu3 %v1603_v37  ;;  %v1621_v40 = vand.u32 4294901760, %v1620_v25  ;;  %v11021_v37 = vand.u32 4294901760, %v7160_v35  ;;  %v1638_v35 = vsub.f32 %v7402_v16, %v1637_v14  ;;  %v11024_v25 = vand.u32 4294901760, %v7194_v12 }
  0xc9   : > { %1457 = vmatpush.msra.mxu0 %v11020_v29  ;;  %1535 = vmatpush.msra.mxu2 %v7318_v4  ;;  %11022 = vst [vmem:[#allocation26_spill] sm:$0xff] %v7440_v27  ;;  %v1551_v8 = vsub.f32 %v7418_v58, %v7440_v27 }
  0xca   : > { %1494 = vmatpush.msra.mxu1 %v7064_v20  ;;  %1610 = vmatpush.msra.mxu3 %v1609_v48  ;;  %v1627_v20 = vand.u32 4294901760, %v1626_v0  ;;  %v1649_v48 = vand.u32 4294901760, %v7429_v31  ;;  %v266_v0 = vld [vmem:[%s6461_s5 + $0xe8] sm:$0xff] }
  0xcb   : > { %1461 = vmatpush.msra.mxu0 %v11021_v37  ;;  %1537 = vmatpush.msra.mxu2 %v7331_v19  ;;  %v7618_v39 = vand.u32 4294901760, %v266_v0 }
  0xcc   : > { %1496 = vmatpush.msra.mxu1 %v7076_v10  ;;  %1616 = vmatpush.msra.mxu3 %v1615_v60  ;;  %v1644_v10 = vsub.f32 %v7415_v3, %v1643_v17  ;;  %v1650_v12 = vsub.f32 %v7429_v31, %v1649_v48 }
  0xcd   : > { %1465 = vmatpush.msra.mxu0 %v11023_v43  ;;  %1539 = vmatpush.msra.mxu2 %v7344_v53 }
  0xce   : > { %1498 = vmatpush.msra.mxu1 %v7090_v5  ;;  %1622 = vmatpush.msra.mxu3 %v1621_v40  ;;  %v1639_v5 = vand.u32 4294901760, %v1638_v35  ;;  %v1645_v60 = vand.u32 4294901760, %v1644_v10  ;;  %v1651_v44 = vand.u32 4294901760, %v1650_v12  ;;  %v262_v40 = vld [vmem:[%s6461_s5 + $0xc8] sm:$0xff] }
  0xcf   : > { %1469 = vmatpush.msra.mxu0 %v11024_v25  ;;  %1541 = vmatpush.msra.mxu2 %v7357_v47  ;;  %v258_v35 = vld [vmem:[%s6461_s5 + $0xa8] sm:$0xff] }
  0xd0   : > { %1500 = vmatpush.msra.mxu1 %v7102_v57  ;;  %1628 = vmatpush.msra.mxu3 %v1627_v20  ;;  %v7469_v57 = vand.u32 4294901760, %v1551_v8  ;;  %v7646_v8 = vsub.f32 %v266_v0, %v7618_v39  ;;  %v7653_v12 = vand.u32 4294901760, %v258_v35 }
  0xd1   : > { %1473 = vmatpush.msra.mxu0 %v11025_v24  ;;  %1543 = vmatpush.msra.mxu2 %v7375_v61 }
  0xd2   : > { %1502 = vmatpush.msra.mxu1 %v7115_v33  ;;  %1634 = vmatpush.msra.mxu3 %v1633_v56  ;;  %11026 = vst [vmem:[#allocation27_spill] sm:$0xff] %v7469_v57  ;;  %v11027_v33 = vand.u32 4294901760, %v7210_v55 }
  0xd3   : > { %1475 = vmatmul.f32.vlgmr.msra.gmra.mxu0 %v7124_v7  ;;  %1545 = vmatpush.msra.mxu2 %v7389_v28 }
  0xd4   : > { %1660 = vmatpush.msrb.mxu0 %v7210_v55  ;;  %1504 = vmatpush.msra.mxu1 %v7130_v54  ;;  %v11028_v54 = vand.u32 4294901760, %v7232_v42  ;;  %v294_v55 = vld [vmem:[%s6461_s5 + $0x1c8] sm:$0xff] }
  0xd5   : > { %1640 = vmatpush.msra.mxu3 %v1639_v5  ;;  %1547 = vmatpush.msra.mxu2 %v7404_v49 }
  0xd6   : > { %1663 = vmatpush.msrb.mxu0 %v7232_v42  ;;  %1506 = vmatpush.msra.mxu1 %v7142_v36  ;;  %v11029_v36 = vand.u32 4294901760, %v7245_v30  ;;  %v11030_v42 = vand.u32 4294901760, %v7253_v41 }
  0xd7   : > { %1646 = vmatpush.msra.mxu3 %v1645_v60  ;;  %1553 = vmatmul.f32.vlgmr.msra.gmra.mxu2 %v7469_v57 }
  0xd8   : > { %1666 = vmatpush.msrb.mxu0 %v7245_v30  ;;  %1754 = vmatpush.msrb.mxu2 %v11027_v33  ;;  %v7538_v30 = vand.u32 4294901760, %v294_v55  ;;  %v250_v33 = vld [vmem:[%s6461_s5 + $0x68] sm:$0xff] }
  0xd9   : > { %1508 = vmatpush.msra.mxu1 %v7165_v46  ;;  %1652 = vmatpush.msra.mxu3 %v1651_v44  ;;  %v11031_v46 = vand.u32 4294901760, %v7266_v22 }
  0xda   : > { %1654 = vmatmul.f32.vlgmr.msra.gmra.mxu3 %v7391_v62  ;;  %1669 = vmatpush.msrb.mxu0 %v7253_v41  ;;  %v11033_v41 = vand.u32 4294901760, %v7302_v59 }
  0xdb   : > { %1758 = vmatpush.msrb.mxu2 %v11028_v54  ;;  %1821 = vmatpush.msrb.mxu3 %v7181_v23 }
  0xdc   : > { %1510 = vmatpush.msra.mxu1 %v7188_v45  ;;  %1672 = vmatpush.msrb.mxu0 %v7266_v22  ;;  %v11036_v45 = vand.u32 4294901760, %v7342_v13 }
  0xdd   : > { %1512 = vmatmul.f32.vlgmr.msra.gmra.mxu1 %v7124_v7  ;;  %1762 = vmatpush.msrb.mxu2 %v11029_v36  ;;  %v314_v7 = vld [vmem:[%s6461_s5 + $0x268] sm:$0xff] }
  0xde   : > { %1713 = vmatpush.msrb.mxu1 %v7181_v23  ;;  %1823 = vmatpush.msrb.mxu3 %v7202_v63  ;;  %v11032_v23 = vand.u32 4294901760, %v7287_v50 }
  0xdf   : > { %1675 = vmatpush.msrb.mxu0 %v7287_v50  ;;  %1766 = vmatpush.msrb.mxu2 %v11030_v42 }
  0xe0   : > { %1715 = vmatpush.msrb.mxu1 %v7202_v63  ;;  %1825 = vmatpush.msrb.mxu3 %v7219_v9  ;;  %v11035_v63 = vand.u32 4294901760, %v7329_v51 }
  0xe1   : > { %1678 = vmatpush.msrb.mxu0 %v7302_v59  ;;  %1770 = vmatpush.msrb.mxu2 %v11031_v46  ;;  %v298_v59 = vld [vmem:[%s6461_s5 + $0x1e8] sm:$0xff] }
  0xe2   : > { %1717 = vmatpush.msrb.mxu1 %v7219_v9  ;;  %1827 = vmatpush.msrb.mxu3 %v7225_v34  ;;  %v11034_v9 = vand.u32 4294901760, %v7316_v18 }
  0xe3   : > { %1681 = vmatpush.msrb.mxu0 %v7316_v18  ;;  %1774 = vmatpush.msrb.mxu2 %v11032_v23  ;;  %v7560_v18 = vsub.f32 %v294_v55, %v7538_v30  ;;  %v10817_v23 = vand.u32 4294901760, %v7646_v8 }
  0xe4   : > { %1719 = vmatpush.msrb.mxu1 %v7225_v34  ;;  %1829 = vmatpush.msrb.mxu3 %v7239_v6  ;;  %v7530_v34 = vand.u32 4294901760, %v298_v59 }
  0xe5   : > { %1684 = vmatpush.msrb.mxu0 %v7329_v51  ;;  %1778 = vmatpush.msrb.mxu2 %v11033_v41  ;;  %v246_v41 = vld [vmem:[%s6461_s5 + $0x48] sm:$0xff] }
  0xe6   : > { %1721 = vmatpush.msrb.mxu1 %v7239_v6  ;;  %1831 = vmatpush.msrb.mxu3 %v7258_v1  ;;  %v290_v6 = vld [vmem:[%s6461_s5 + $0x1a8] sm:$0xff]  ;;  %v7549_v22 = vsub.f32 %v298_v59, %v7530_v34  ;;  %v7677_v59 = vand.u32 4294901760, %v250_v33 }
  0xe7   : > { %1687 = vmatpush.msrb.mxu0 %v7342_v13  ;;  %1782 = vmatpush.msrb.mxu2 %v11034_v9  ;;  %v274_v13 = vld [vmem:[%s6461_s5 + $0x128] sm:$0xff] }
  0xe8   : > { %1723 = vmatpush.msrb.mxu1 %v7258_v1  ;;  %1833 = vmatpush.msrb.mxu3 %v7275_v11  ;;  %v7546_v1 = vand.u32 4294901760, %v290_v6 }
  0xe9   : > { %1690 = vmatpush.msrb.mxu0 %v7355_v15  ;;  %1786 = vmatpush.msrb.mxu2 %v11035_v63 }
  0xea   : > { %1725 = vmatpush.msrb.mxu1 %v7275_v11  ;;  %1835 = vmatpush.msrb.mxu3 %v7289_v21  ;;  %v11037_v11 = vand.u32 4294901760, %v7355_v15  ;;  %v10828_v15 = vand.u32 4294901760, %v7560_v18 }
  0xeb   : > { %1693 = vmatpush.msrb.mxu0 %v7369_v52  ;;  %1790 = vmatpush.msrb.mxu2 %v11036_v45  ;;  %v7680_v45 = vsub.f32 %v258_v35, %v7653_v12 }
  0xec   : > { %1727 = vmatpush.msrb.mxu1 %v7289_v21  ;;  %1837 = vmatpush.msrb.mxu3 %v7304_v32  ;;  %v286_v21 = vld [vmem:[%s6461_s5 + $0x188] sm:$0xff] }
  0xed   : > { %1696 = vmatpush.msrb.mxu0 %v7383_v2  ;;  %1794 = vmatpush.msrb.mxu2 %v11037_v11  ;;  %v7557_v50 = vand.u32 4294901760, %v286_v21  ;;  %v7572_v2 = vsub.f32 %v290_v6, %v7546_v1  ;;  %v242_v11 = vld [vmem:[%s6461_s5 + $0x28] sm:$0xff] }
  0xee   : > { %1729 = vmatpush.msrb.mxu1 %v7304_v32  ;;  %1839 = vmatpush.msrb.mxu3 %v7318_v4  ;;  %v282_v32 = vld [vmem:[%s6461_s5 + $0x168] sm:$0xff] }
  0xef   : > { %1699 = vmatpush.msrb.mxu0 %v7402_v16  ;;  %1798 = vmatpush.msrb.mxu2 %v1625_v26  ;;  %v7568_v51 = vand.u32 4294901760, %v282_v32  ;;  %v7584_v52 = vsub.f32 %v286_v21, %v7557_v50  ;;  %v270_v26 = vld [vmem:[%s6461_s5 + $0x108] sm:$0xff]  ;;  %v7595_v16 = vand.u32 4294901760, %v274_v13 }
  0xf0   : > { %1731 = vmatpush.msrb.mxu1 %v7318_v4  ;;  %1841 = vmatpush.msrb.mxu3 %v7331_v19  ;;  %v278_v4 = vld [vmem:[%s6461_s5 + $0x148] sm:$0xff]  ;;  %v7609_v29 = vand.u32 4294901760, %v270_v26 }
  0xf1   : > { %1702 = vmatpush.msrb.mxu0 %v7415_v3  ;;  %1802 = vmatpush.msrb.mxu2 %v1631_v38  ;;  %v10827_v38 = vand.u32 4294901760, %v7572_v2  ;;  %v7599_v3 = vsub.f32 %v282_v32, %v7568_v51  ;;  %v7627_v43 = vsub.f32 %v274_v13, %v7595_v16  ;;  %v7690_v32 = vand.u32 4294901760, %v246_v41  ;;  %v362_v13 = vld [vmem:[%s6461_s5 + $0x3e8] sm:$0xff] }
  0xf2   : > { %1733 = vmatpush.msrb.mxu1 %v7331_v19  ;;  %1843 = vmatpush.msrb.mxu3 %v7344_v53  ;;  %v1900_v19 = vand.u32 4294901760, %v7549_v22  ;;  %v7641_v10 = vsub.f32 %v270_v26, %v7609_v29  ;;  %v1949_v26 = vsub.f32 %v7646_v8, %v10817_v23  ;;  %v7714_v35 = vand.u32 4294901760, %v362_v13  ;;  %v346_v23 = vld [vmem:[%s6461_s5 + $0x368] sm:$0xff] }
  0xf3   : > { %1705 = vmatpush.msrb.mxu0 %v7429_v31  ;;  %1806 = vmatpush.msrb.mxu2 %v1637_v14  ;;  %v10825_v14 = vand.u32 4294901760, %v7584_v52  ;;  %v10823_v20 = vand.u32 4294901760, %v7599_v3  ;;  %v10820_v60 = vand.u32 4294901760, %v7627_v43 }
  0xf4   : > { %1735 = vmatpush.msrb.mxu1 %v7344_v53  ;;  %1845 = vmatpush.msrb.mxu3 %v7357_v47  ;;  %v7580_v53 = vand.u32 4294901760, %v278_v4  ;;  %v10819_v46 = vand.u32 4294901760, %v7641_v10 }
  0xf5   : > { %1708 = vmatmul.f32.vlgmr.msrb.gmra.mxu0 %v7418_v58  ;;  %1810 = vmatpush.msrb.mxu2 %v1643_v17  ;;  %v1913_v17 = vsub.f32 %v7572_v2, %v10827_v38  ;;  %v1919_v56 = vsub.f32 %v7584_v52, %v10825_v14  ;;  %v1925_v5 = vsub.f32 %v7599_v3, %v10823_v20 }
  0xf6   : > { %1858 = vmatpush.msra.mxu0 %v7530_v34  ;;  %1737 = vmatpush.msrb.mxu1 %v7357_v47  ;;  %v1901_v47 = vsub.f32 %v7549_v22, %v1900_v19  ;;  %v7613_v31 = vsub.f32 %v278_v4, %v7580_v53  ;;  %v1937_v63 = vsub.f32 %v7627_v43, %v10820_v60  ;;  %v342_v60 = vld [vmem:[%s6461_s5 + $0x348] sm:$0xff] }
  0xf7   : > { %1847 = vmatpush.msrb.mxu3 %v7375_v61  ;;  %1814 = vmatpush.msrb.mxu2 %v1649_v48  ;;  %v1914_v24 = vand.u32 4294901760, %v1913_v17  ;;  %v1920_v54 = vand.u32 4294901760, %v1919_v56  ;;  %v1926_v9 = vand.u32 4294901760, %v1925_v5  ;;  %v1943_v21 = vsub.f32 %v7641_v10, %v10819_v46 }
  0xf8   : > { %1860 = vmatpush.msra.mxu0 %v7538_v30  ;;  %1739 = vmatpush.msrb.mxu1 %v7375_v61  ;;  %v1907_v61 = vsub.f32 %v7560_v18, %v10828_v15  ;;  %v1902_v37 = vand.u32 4294901760, %v1901_v47  ;;  %v10822_v25 = vand.u32 4294901760, %v7613_v31  ;;  %v238_v47 = vld [vmem:[%s6461_s5 + $0x8] sm:$0xff]  ;;  %v1938_v0 = vand.u32 4294901760, %v1937_v63 }
  0xf9   : > { %1849 = vmatpush.msrb.mxu3 %v7389_v28  ;;  %1816 = vmatmul.f32.vlgmr.msrb.gmra.mxu2 %v7391_v62  ;;  %v1944_v56 = vand.u32 4294901760, %v1943_v21  ;;  %v7722_v5 = vsub.f32 %v246_v41, %v7690_v32 }
  0xfa   : > { %1862 = vmatpush.msra.mxu0 %v7546_v1  ;;  %2001 = vmatpush.msra.mxu2 %v7549_v22  ;;  %v1908_v48 = vand.u32 4294901760, %v1907_v61  ;;  %v1931_v36 = vsub.f32 %v7613_v31, %v10822_v25  ;;  %v7703_v61 = vand.u32 4294901760, %v242_v11  ;;  %v11039_v22 = vand.u32 4294901760, %v7560_v18 }
  0xfb   : > { %1741 = vmatpush.msrb.mxu1 %v7389_v28  ;;  %1851 = vmatpush.msrb.mxu3 %v7404_v49  ;;  %v7631_v28 = vand.u32 4294901760, %v262_v40 }
  0xfc   : > { %1853 = vmatmul.f32.vlgmr.msrb.gmra.mxu3 %v7391_v62  ;;  %1864 = vmatpush.msra.mxu0 %v7557_v50  ;;  %v1932_v6 = vand.u32 4294901760, %v1931_v36  ;;  %v7733_v63 = vsub.f32 %v242_v11, %v7703_v61  ;;  %v10824_v11 = vand.u32 4294901760, %v7722_v5 }
  0xfd   : > { %2004 = vmatpush.msra.mxu2 %v7560_v18  ;;  %2054 = vmatpush.msra.mxu3 %v7530_v34  ;;  %v7659_v44 = vsub.f32 %v262_v40, %v7631_v28  ;;  %v10815_v40 = vand.u32 4294901760, %v7680_v45 }
  0xfe   : > { %1743 = vmatpush.msrb.mxu1 %v7404_v49  ;;  %1866 = vmatpush.msra.mxu0 %v7568_v51  ;;  %v254_v49 = vld [vmem:[%s6461_s5 + $0x88] sm:$0xff] }
  0xff   : > { %1747 = vmatmul.f32.vlgmr.msrb.gmra.mxu1 %v7440_v27  ;;  %2007 = vmatpush.msra.mxu2 %v7572_v2  ;;  %v7666_v42 = vand.u32 4294901760, %v254_v49  ;;  %v10816_v55 = vand.u32 4294901760, %v7659_v44  ;;  %v1961_v36 = vsub.f32 %v7680_v45, %v10815_v40 }
 0x100   : > { %1903 = vmatpush.msra.mxu1 %v1902_v37  ;;  %2056 = vmatpush.msra.mxu3 %v7538_v30  ;;  %v7707_v37 = vsub.f32 %v250_v33, %v7677_v59  ;;  %v1950_v33 = vand.u32 4294901760, %v1949_v26  ;;  %v7741_v26 = vsub.f32 %v362_v13, %v7714_v35 }
 0x101   : > { %1868 = vmatpush.msra.mxu0 %v7580_v53  ;;  %2010 = vmatpush.msra.mxu2 %v7584_v52  ;;  %v7693_v4 = vsub.f32 %v254_v49, %v7666_v42  ;;  %v1955_v17 = vsub.f32 %v7659_v44, %v10816_v55  ;;  %v7718_v49 = vand.u32 4294901760, %v238_v47 }
 0x102   : > { %1909 = vmatpush.msra.mxu1 %v1908_v48  ;;  %2058 = vmatpush.msra.mxu3 %v7546_v1  ;;  %v358_v48 = vld [vmem:[%s6461_s5 + $0x3c8] sm:$0xff]  ;;  %v10829_v46 = vand.u32 4294901760, %v7741_v26 }
 0x103   : > { %1870 = vmatpush.msra.mxu0 %v7595_v16  ;;  %2013 = vmatpush.msra.mxu2 %v7599_v3  ;;  %v7735_v41 = vand.u32 4294901760, %v358_v48  ;;  %v1956_v21 = vand.u32 4294901760, %v1955_v17  ;;  %v7749_v40 = vsub.f32 %v238_v47, %v7718_v49  ;;  %v1962_v17 = vand.u32 4294901760, %v1961_v36 }
 0x104   : > { %1915 = vmatpush.msra.mxu1 %v1914_v24  ;;  %2060 = vmatpush.msra.mxu3 %v7557_v50  ;;  %v10818_v24 = vand.u32 4294901760, %v7693_v4  ;;  %v10826_v47 = vand.u32 4294901760, %v7733_v63 }
 0x105   : > { %1872 = vmatpush.msra.mxu0 %v7609_v29  ;;  %2016 = vmatpush.msra.mxu2 %v7613_v31 }
 0x106   : > { %1921 = vmatpush.msra.mxu1 %v1920_v54  ;;  %2062 = vmatpush.msra.mxu3 %v7568_v51  ;;  %v354_v54 = vld [vmem:[%s6461_s5 + $0x3a8] sm:$0xff] }
 0x107   : > { %1874 = vmatpush.msra.mxu0 %v7618_v39  ;;  %2019 = vmatpush.msra.mxu2 %v7627_v43  ;;  %v7751_v55 = vand.u32 4294901760, %v354_v54 }
 0x108   : > { %1927 = vmatpush.msra.mxu1 %v1926_v9  ;;  %2064 = vmatpush.msra.mxu3 %v7580_v53  ;;  %v10821_v9 = vand.u32 4294901760, %v7707_v37 }
 0x109   : > { %1876 = vmatpush.msra.mxu0 %v7631_v28  ;;  %2022 = vmatpush.msra.mxu2 %v7641_v10  ;;  %v7778_v25 = vsub.f32 %v354_v54, %v7751_v55  ;;  %v7791_v54 = vand.u32 4294901760, %v342_v60 }
 0x10a   : > { %1933 = vmatpush.msra.mxu1 %v1932_v6  ;;  %2066 = vmatpush.msra.mxu3 %v7595_v16  ;;  %v350_v6 = vld [vmem:[%s6461_s5 + $0x388] sm:$0xff] }
 0x10b   : > { %1878 = vmatpush.msra.mxu0 %v7653_v12  ;;  %2025 = vmatpush.msra.mxu2 %v7646_v8  ;;  %v7756_v13 = vand.u32 4294901760, %v350_v6  ;;  %v7819_v15 = vsub.f32 %v342_v60, %v7791_v54 }
 0x10c   : > { %1939 = vmatpush.msra.mxu1 %v1938_v0  ;;  %2068 = vmatpush.msra.mxu3 %v7609_v29  ;;  %v1967_v0 = vsub.f32 %v7693_v4, %v10818_v24  ;;  %v7764_v24 = vsub.f32 %v358_v48, %v7735_v41  ;;  %v10830_v48 = vand.u32 4294901760, %v7749_v40 }
 0x10d   : > { %1880 = vmatpush.msra.mxu0 %v7666_v42  ;;  %2028 = vmatpush.msra.mxu2 %v7659_v44  ;;  %v7783_v20 = vsub.f32 %v350_v6, %v7756_v13  ;;  %v2242_v6 = vsub.f32 %v7741_v26, %v10829_v46 }
 0x10e   : > { %1945 = vmatpush.msra.mxu1 %v1944_v56  ;;  %2070 = vmatpush.msra.mxu3 %v7618_v39  ;;  %v1973_v56 = vsub.f32 %v7707_v37, %v10821_v9  ;;  %v1968_v36 = vand.u32 4294901760, %v1967_v0  ;;  %v1979_v9 = vsub.f32 %v7722_v5, %v10824_v11  ;;  %v1985_v11 = vsub.f32 %v7733_v63, %v10826_v47 }
 0x10f   : > { %1882 = vmatpush.msra.mxu0 %v7677_v59  ;;  %2031 = vmatpush.msra.mxu2 %v7680_v45  ;;  %v1991_v38 = vsub.f32 %v7749_v40, %v10830_v48  ;;  %v11038_v46 = vand.u32 4294901760, %v7764_v24 }
 0x110   : > { %1951 = vmatpush.msra.mxu1 %v1950_v33  ;;  %2072 = vmatpush.msra.mxu3 %v7631_v28  ;;  %v7769_v33 = vand.u32 4294901760, %v346_v23  ;;  %v1974_v0 = vand.u32 4294901760, %v1973_v56  ;;  %v334_v56 = vld [vmem:[%s6461_s5 + $0x308] sm:$0xff]  ;;  %v1980_v47 = vand.u32 4294901760, %v1979_v9  ;;  %v1986_v9 = vand.u32 4294901760, %v1985_v11 }
 0x111   : > { %1884 = vmatpush.msra.mxu0 %v7690_v32  ;;  %2034 = vmatpush.msra.mxu2 %v7693_v4  ;;  %v2248_v48 = vsub.f32 %v7764_v24, %v11038_v46  ;;  %v7821_v27 = vand.u32 4294901760, %v334_v56  ;;  %v1992_v11 = vand.u32 4294901760, %v1991_v38  ;;  %v11040_v46 = vand.u32 4294901760, %v7778_v25  ;;  %v322_v38 = vld [vmem:[%s6461_s5 + $0x2a8] sm:$0xff] }
 0x112   : > { %1957 = vmatpush.msra.mxu1 %v1956_v21  ;;  %2074 = vmatpush.msra.mxu3 %v7653_v12  ;;  %v338_v21 = vld [vmem:[%s6461_s5 + $0x328] sm:$0xff]  ;;  %v7862_v57 = vand.u32 4294901760, %v322_v38 }
 0x113   : > { %1886 = vmatpush.msra.mxu0 %v7703_v61  ;;  %2037 = vmatpush.msra.mxu2 %v7707_v37  ;;  %v7807_v14 = vand.u32 4294901760, %v338_v21  ;;  %v2254_v60 = vsub.f32 %v7778_v25, %v11040_v46  ;;  %v2249_v46 = vand.u32 4294901760, %v2248_v48 }
 0x114   : > { %1963 = vmatpush.msra.mxu1 %v1962_v17  ;;  %2076 = vmatpush.msra.mxu3 %v7666_v42  ;;  %v7799_v17 = vsub.f32 %v346_v23, %v7769_v33  ;;  %v326_v23 = vld [vmem:[%s6461_s5 + $0x2c8] sm:$0xff] }
 0x115   : > { %1888 = vmatpush.msra.mxu0 %v7718_v49  ;;  %2040 = vmatpush.msra.mxu2 %v7722_v5  ;;  %v7833_v58 = vsub.f32 %v338_v21, %v7807_v14  ;;  %v7847_v21 = vsub.f32 %v334_v56, %v7821_v27  ;;  %v7849_v62 = vand.u32 4294901760, %v326_v23  ;;  %v2255_v48 = vand.u32 4294901760, %v2254_v60 }
 0x116   : > { %1969 = vmatpush.msra.mxu1 %v1968_v36  ;;  %2078 = vmatpush.msra.mxu3 %v7677_v59  ;;  %v330_v36 = vld [vmem:[%s6461_s5 + $0x2e8] sm:$0xff] }
 0x117   : > { %2095 = vmatpush.msrb.mxu0 %v1900_v19  ;;  %2043 = vmatpush.msra.mxu2 %v7733_v63  ;;  %v2243_v19 = vand.u32 4294901760, %v2242_v6  ;;  %v7835_v18 = vand.u32 4294901760, %v330_v36  ;;  %v7874_v60 = vsub.f32 %v326_v23, %v7849_v62  ;;  %v7887_v23 = vsub.f32 %v322_v38, %v7862_v57 }
 0x118   : > { %1975 = vmatpush.msra.mxu1 %v1974_v0  ;;  %2080 = vmatpush.msra.mxu3 %v7690_v32  ;;  %v2277_v0 = vand.u32 4294901760, %v7833_v58 }
 0x119   : > { %2099 = vmatpush.msrb.mxu0 %v11039_v22  ;;  %2046 = vmatpush.msra.mxu2 %v7749_v40  ;;  %v11041_v22 = vand.u32 4294901760, %v7572_v2  ;;  %v11043_v2 = vand.u32 4294901760, %v7584_v52  ;;  %v7860_v56 = vsub.f32 %v330_v36, %v7835_v18  ;;  %v11045_v52 = vand.u32 4294901760, %v7599_v3 }
 0x11a   : > { %1981 = vmatpush.msra.mxu1 %v1980_v47  ;;  %2082 = vmatpush.msra.mxu3 %v7703_v61  ;;  %v11042_v47 = vand.u32 4294901760, %v7783_v20  ;;  %v2283_v36 = vand.u32 4294901760, %v7847_v21  ;;  %v11047_v3 = vand.u32 4294901760, %v7613_v31  ;;  %v310_v31 = vld [vmem:[%s6461_s5 + $0x248] sm:$0xff]  ;;  %v2295_v38 = vand.u32 4294901760, %v7874_v60 }
 0x11b   : > { %2103 = vmatpush.msrb.mxu0 %v11041_v22  ;;  %2199 = vmatpush.msrb.mxu2 %v7714_v35  ;;  %v11044_v22 = vand.u32 4294901760, %v7799_v17 }
 0x11c   : > { %v2260_v6 = vsub.f32 %v7783_v20, %v11042_v47  ;;  %1987 = vmatpush.msra.mxu1 %v1986_v9  ;;  %2084 = vmatpush.msra.mxu3 %v7718_v49  ;;  %v318_v47 = vld [vmem:[%s6461_s5 + $0x288] sm:$0xff] }
 0x11d   : > { %2107 = vmatpush.msrb.mxu0 %v11043_v2  ;;  %2201 = vmatpush.msrb.mxu2 %v7735_v41  ;;  %v2266_v9 = vsub.f32 %v7799_v17, %v11044_v22  ;;  %v7876_v22 = vand.u32 4294901760, %v318_v47 }
 0x11e   : > { %2244 = vmatpush.msrb.mxu3 %v2243_v19  ;;  %1993 = vmatpush.msra.mxu1 %v1992_v11  ;;  %v2261_v2 = vand.u32 4294901760, %v2260_v6  ;;  %v11046_v19 = vand.u32 4294901760, %v7819_v15  ;;  %v2278_v6 = vsub.f32 %v7833_v58, %v2277_v0 }
 0x11f   : > { %2111 = vmatpush.msrb.mxu0 %v11045_v52  ;;  %2203 = vmatpush.msrb.mxu2 %v7751_v55  ;;  %v7889_v52 = vand.u32 4294901760, %v314_v7 }
 0x120   : > { %2162 = vmatpush.msrb.mxu1 %v7530_v34  ;;  %2250 = vmatpush.msrb.mxu3 %v2249_v46  ;;  %v2272_v11 = vsub.f32 %v7819_v15, %v11046_v19  ;;  %v2267_v34 = vand.u32 4294901760, %v2266_v9  ;;  %v10841_v46 = vand.u32 4294901760, %v7860_v56  ;;  %v11048_v19 = vand.u32 4294901760, %v7627_v43 }
 0x121   : > { %2115 = vmatpush.msrb.mxu0 %v11047_v3  ;;  %2205 = vmatpush.msrb.mxu2 %v7756_v13  ;;  %v2284_v9 = vsub.f32 %v7847_v21, %v2283_v36  ;;  %v306_v3 = vld [vmem:[%s6461_s5 + $0x228] sm:$0xff]  ;;  %v11049_v43 = vand.u32 4294901760, %v7641_v10  ;;  %v11050_v10 = vand.u32 4294901760, %v7646_v8 }
 0x122   : > { %2164 = vmatpush.msrb.mxu1 %v7538_v30  ;;  %2256 = vmatpush.msrb.mxu3 %v2255_v48  ;;  %v2273_v30 = vand.u32 4294901760, %v2272_v11  ;;  %v7901_v48 = vsub.f32 %v318_v47, %v7876_v22  ;;  %v2290_v11 = vsub.f32 %v7860_v56, %v10841_v46  ;;  %v7915_v47 = vsub.f32 %v314_v7, %v7889_v52 }
 0x123   : > { %2119 = vmatpush.msrb.mxu0 %v11048_v19  ;;  %2207 = vmatpush.msrb.mxu2 %v7769_v33  ;;  %v2301_v19 = vand.u32 4294901760, %v7887_v23  ;;  %v11051_v7 = vand.u32 4294901760, %v7659_v44  ;;  %v11052_v44 = vand.u32 4294901760, %v7680_v45 }
 0x124   : > { %2166 = vmatpush.msrb.mxu1 %v7546_v1  ;;  %2262 = vmatpush.msrb.mxu3 %v2261_v2  ;;  %v7907_v1 = vand.u32 4294901760, %v310_v31  ;;  %v2279_v2 = vand.u32 4294901760, %v2278_v6  ;;  %v2296_v6 = vsub.f32 %v7874_v60, %v2295_v38  ;;  %v2307_v46 = vand.u32 4294901760, %v7901_v48 }
 0x125   : > { %2123 = vmatpush.msrb.mxu0 %v11049_v43  ;;  %2209 = vmatpush.msrb.mxu2 %v7791_v54  ;;  %v302_v43 = vld [vmem:[%s6461_s5 + $0x208] sm:$0xff]  ;;  %v2291_v8 = vand.u32 4294901760, %v2290_v11  ;;  %v11053_v11 = vand.u32 4294901760, %v7693_v4 }
 0x126   : > { %2168 = vmatpush.msrb.mxu1 %v7557_v50  ;;  %2268 = vmatpush.msrb.mxu3 %v2267_v34  ;;  %v7920_v50 = vand.u32 4294901760, %v306_v3  ;;  %v2285_v34 = vand.u32 4294901760, %v2284_v9  ;;  %v2313_v9 = vand.u32 4294901760, %v7915_v47 }
 0x127   : > { %2127 = vmatpush.msrb.mxu0 %v11050_v10  ;;  %2211 = vmatpush.msrb.mxu2 %v7807_v14  ;;  %v7939_v10 = vand.u32 4294901760, %v302_v43 }
 0x128   : > { %2170 = vmatpush.msrb.mxu1 %v7568_v51  ;;  %2274 = vmatpush.msrb.mxu3 %v2273_v30  ;;  %v7932_v51 = vsub.f32 %v310_v31, %v7907_v1  ;;  %v2302_v30 = vsub.f32 %v7887_v23, %v2301_v19  ;;  %v2297_v31 = vand.u32 4294901760, %v2296_v6  ;;  %v11054_v6 = vand.u32 4294901760, %v7707_v37 }
 0x129   : > { %2131 = vmatpush.msrb.mxu0 %v11051_v7  ;;  %2213 = vmatpush.msrb.mxu2 %v7821_v27  ;;  %v11055_v7 = vand.u32 4294901760, %v7722_v5 }
 0x12a   : > { %2172 = vmatpush.msrb.mxu1 %v7580_v53  ;;  %2280 = vmatpush.msrb.mxu3 %v2279_v2  ;;  %v7945_v53 = vsub.f32 %v306_v3, %v7920_v50  ;;  %v2308_v2 = vsub.f32 %v7901_v48, %v2307_v46  ;;  %v2319_v45 = vand.u32 4294901760, %v7932_v51  ;;  %v2314_v3 = vsub.f32 %v7915_v47, %v2313_v9 }
 0x12b   : > { %2135 = vmatpush.msrb.mxu0 %v11052_v44  ;;  %2215 = vmatpush.msrb.mxu2 %v7835_v18 }
 0x12c   : > { %2174 = vmatpush.msrb.mxu1 %v7595_v16  ;;  %2286 = vmatpush.msrb.mxu3 %v2285_v34  ;;  %v2303_v16 = vand.u32 4294901760, %v2302_v30  ;;  %v7960_v34 = vsub.f32 %v302_v43, %v7939_v10  ;;  %v2309_v4 = vand.u32 4294901760, %v2308_v2  ;;  %v2320_v43 = vsub.f32 %v7932_v51, %v2319_v45  ;;  %v531_v2 = vpop.f32.mrf.mxu0 }
 0x12d   : > { %2139 = vmatpush.msrb.mxu0 %v11053_v11  ;;  %2217 = vmatpush.msrb.mxu2 %v7849_v62  ;;  %v2315_v37 = vand.u32 4294901760, %v2314_v3  ;;  %v11060_v11 = vld [vmem:[#allocation15_spill] sm:$0xff]  ;;  %v686_v3 = vpop.f32.mrf.mxu2 }
 0x12e   : > { %2176 = vmatpush.msrb.mxu1 %v7609_v29  ;;  %2292 = vmatpush.msrb.mxu3 %v2291_v8  ;;  %v2325_v29 = vand.u32 4294901760, %v7945_v53  ;;  %v11056_v8 = vand.u32 4294901760, %v7733_v63  ;;  %v2321_v30 = vand.u32 4294901760, %v2320_v43  ;;  %v11058_v63 = vld [vmem:[#allocation17_spill] sm:$0xff]  ;;  %v11067_v43 = vld [vmem:[#allocation16_spill] sm:$0xff] }
 0x12f   : > { %2143 = vmatpush.msrb.mxu0 %v11054_v6  ;;  %2219 = vmatpush.msrb.mxu2 %v7862_v57  ;;  %v11062_v6 = vld [vmem:[#allocation13_spill] sm:$0xff] }
 0x130   : > { %2178 = vmatpush.msrb.mxu1 %v7618_v39  ;;  %2298 = vmatpush.msrb.mxu3 %v2297_v31  ;;  %v2331_v39 = vand.u32 4294901760, %v7960_v34  ;;  %v2326_v5 = vsub.f32 %v7945_v53, %v2325_v29 }
 0x131   : > { %2147 = vmatpush.msrb.mxu0 %v11055_v7  ;;  %2221 = vmatpush.msrb.mxu2 %v7876_v22  ;;  %v11065_v7 = vld [vmem:[#allocation20_spill] sm:$0xff] }
 0x132   : > { %2180 = vmatpush.msrb.mxu1 %v7631_v28  ;;  %2304 = vmatpush.msrb.mxu3 %v2303_v16  ;;  %v11057_v28 = vand.u32 4294901760, %v7749_v40  ;;  %v2327_v44 = vand.u32 4294901760, %v2326_v5  ;;  %v11059_v40 = vld [vmem:[#allocation14_spill] sm:$0xff]  ;;  %v11061_v16 = vand.u32 4294901760, %v7741_v26 }
 0x133   : > { %2151 = vmatpush.msrb.mxu0 %v11056_v8  ;;  %2223 = vmatpush.msrb.mxu2 %v7889_v52 }
 0x134   : > { %2182 = vmatpush.msrb.mxu1 %v7653_v12  ;;  %2310 = vmatpush.msrb.mxu3 %v2309_v4  ;;  %v2332_v12 = vsub.f32 %v7960_v34, %v2331_v39 }
 0x135   : > { %2155 = vmatpush.msrb.mxu0 %v11057_v28  ;;  %2225 = vmatpush.msrb.mxu2 %v7907_v1  ;;  %v11071_v28 = vld [vmem:[#allocation18_spill] sm:$0xff] }
 0x136   : > { %2184 = vmatpush.msrb.mxu1 %v7666_v42  ;;  %2316 = vmatpush.msrb.mxu3 %v2315_v37  ;;  %v632_v42 = vpop.f32.mrf.mxu1  ;;  %v2333_v31 = vand.u32 4294901760, %v2332_v12  ;;  %v11069_v37 = vand.u32 4294901760, %v7819_v15 }
 0x137   : > { %1894 = vmatmul.f32.vlgmr.msra.gmra.mxu0 %v11058_v63  ;;  %2227 = vmatpush.msrb.mxu2 %v7920_v50  ;;  %v442_v63 = vld [vmem:[%s6461_s5 + $0x668] sm:$0xff] }
 0x138   : > { %2186 = vmatpush.msrb.mxu1 %v7677_v59  ;;  %2342 = vmatpush.msra.mxu0 %v7741_v26  ;;  %v633_v59 = vadd.f32 %v632_v42, %v531_v2  ;;  %v725_v26 = vpop.f32.mrf.mxu3  ;;  %v394_v2 = vld [vmem:[%s6461_s5 + $0x4e8] sm:$0xff] }
 0x139   : > { %2322 = vmatpush.msrb.mxu3 %v2321_v30  ;;  %2049 = vmatmul.f32.vlgmr.msra.gmra.mxu2 %v11059_v40 }
 0x13a   : > { %2345 = vmatpush.msra.mxu0 %v7764_v24  ;;  %2188 = vmatpush.msrb.mxu1 %v7690_v32  ;;  %v11063_v32 = vand.u32 4294901760, %v7764_v24  ;;  %v687_v4 = vadd.f32 %v686_v3, %v633_v59  ;;  %v11066_v24 = vand.u32 4294901760, %v7783_v20 }
 0x13b   : > { %2229 = vmatpush.msrb.mxu2 %v7939_v10  ;;  %2328 = vmatpush.msrb.mxu3 %v2327_v44  ;;  %v398_v44 = vld [vmem:[%s6461_s5 + $0x508] sm:$0xff] }
 0x13c   : > { %2088 = vmatmul.f32.vlgmr.msra.gmra.mxu3 %v11060_v11  ;;  %2348 = vmatpush.msra.mxu0 %v7778_v25 }
 0x13d   : > { %2436 = vmatpush.msra.mxu2 %v11061_v16  ;;  %2190 = vmatpush.msrb.mxu1 %v7703_v61  ;;  %v11064_v61 = vand.u32 4294901760, %v7778_v25  ;;  %v11068_v25 = vand.u32 4294901760, %v7799_v17 }
 0x13e   : > { %2334 = vmatpush.msrb.mxu3 %v2333_v31  ;;  %1995 = vmatmul.f32.vlgmr.msra.gmra.mxu1 %v11062_v6 }
 0x13f   : > { %2351 = vmatpush.msra.mxu0 %v7783_v20  ;;  %2440 = vmatpush.msra.mxu2 %v11063_v32 }
 0x140   : > { %2503 = vmatpush.msra.mxu3 %v7714_v35  ;;  %2192 = vmatpush.msrb.mxu1 %v7718_v49  ;;  %v726_v49 = vadd.f32 %v725_v26, %v687_v4  ;;  %v390_v4 = vld [vmem:[%s6461_s5 + $0x4c8] sm:$0xff] }
 0x141   : > { %2354 = vmatpush.msra.mxu0 %v7799_v17  ;;  %2444 = vmatpush.msra.mxu2 %v11064_v61  ;;  %v973_v17 = vpop.f32.mrf.mxu3 }
 0x142   : > { %2395 = vmatpush.msra.mxu1 %v7714_v35  ;;  %2505 = vmatpush.msra.mxu3 %v7735_v41  ;;  %v794_v35 = vpop.f32.mrf.mxu0 }
 0x143   : > { %2235 = vmatmul.f32.vlgmr.msrb.gmra.mxu2 %v11065_v7  ;;  %2357 = vmatpush.msra.mxu0 %v7819_v15  ;;  %v795_v20 = vadd.f32 %v794_v35, %v726_v49  ;;  %v11070_v15 = vand.u32 4294901760, %v7860_v56  ;;  %v8148_v49 = vand.u32 4294901760, %v394_v2 }
 0x144   : > { %2397 = vmatpush.msra.mxu1 %v7735_v41  ;;  %2448 = vmatpush.msra.mxu2 %v11066_v24  ;;  %v831_v41 = vpop.f32.mrf.mxu1 }
 0x145   : > { %2507 = vmatpush.msra.mxu3 %v7751_v55  ;;  %2157 = vmatmul.f32.vlgmr.msrb.gmra.mxu0 %v11062_v6 }
 0x146   : > { %2336 = vmatmul.f32.vlgmr.msrb.gmra.mxu3 %v11067_v43  ;;  %2360 = vmatpush.msra.mxu0 %v7833_v58  ;;  %v426_v58 = vld [vmem:[%s6461_s5 + $0x5e8] sm:$0xff] }
 0x147   : > { %2399 = vmatpush.msra.mxu1 %v7751_v55  ;;  %2452 = vmatpush.msra.mxu2 %v11068_v25  ;;  %v832_v55 = vadd.f32 %v831_v41, %v795_v20  ;;  %v386_v20 = vld [vmem:[%s6461_s5 + $0x4a8] sm:$0xff] }
 0x148   : > { %2509 = vmatpush.msra.mxu3 %v7756_v13  ;;  %2194 = vmatmul.f32.vlgmr.msrb.gmra.mxu1 %v11062_v6 }
 0x149   : > { %2363 = vmatpush.msra.mxu0 %v7847_v21  ;;  %2401 = vmatpush.msra.mxu1 %v7756_v13  ;;  %v872_v13 = vpop.f32.mrf.mxu2  ;;  %v1172_v42 = vpop.f32.mrf.mxu3 }
 0x14a   : > { %2456 = vmatpush.msra.mxu2 %v11069_v37  ;;  %2511 = vmatpush.msra.mxu3 %v7769_v33  ;;  %v1027_v21 = vpop.f32.mrf.mxu0 }
 0x14b   : > { %2366 = vmatpush.msra.mxu0 %v7860_v56  ;;  %2403 = vmatpush.msra.mxu1 %v7769_v33  ;;  %v873_v33 = vadd.f32 %v872_v13, %v832_v55  ;;  %v8162_v55 = vand.u32 4294901760, %v390_v4 }
 0x14c   : > { %2460 = vmatpush.msra.mxu2 %v2277_v0  ;;  %2513 = vmatpush.msra.mxu3 %v7791_v54  ;;  %v418_v0 = vld [vmem:[%s6461_s5 + $0x5a8] sm:$0xff] }
 0x14d   : > { %2369 = vmatpush.msra.mxu0 %v7874_v60  ;;  %2405 = vmatpush.msra.mxu1 %v7791_v54  ;;  %v422_v54 = vld [vmem:[%s6461_s5 + $0x5c8] sm:$0xff]  ;;  %v974_v56 = vadd.f32 %v973_v17, %v873_v33  ;;  %v1066_v60 = vpop.f32.mrf.mxu1 }
 0x14e   : > { %2464 = vmatpush.msra.mxu2 %v2283_v36  ;;  %2515 = vmatpush.msra.mxu3 %v7807_v14  ;;  %v414_v36 = vld [vmem:[%s6461_s5 + $0x588] sm:$0xff] }
 0x14f   : > { %2372 = vmatpush.msra.mxu0 %v7887_v23  ;;  %2407 = vmatpush.msra.mxu1 %v7807_v14  ;;  %v8054_v14 = vand.u32 4294901760, %v426_v58  ;;  %v382_v33 = vld [vmem:[%s6461_s5 + $0x488] sm:$0xff] }
 0x150   : > { %2468 = vmatpush.msra.mxu2 %v11070_v15  ;;  %2517 = vmatpush.msra.mxu3 %v7821_v27  ;;  %v11072_v15 = vld [vmem:[#allocation19_spill] sm:$0xff] }
 0x151   : > { %2375 = vmatpush.msra.mxu0 %v7901_v48  ;;  %2409 = vmatpush.msra.mxu1 %v7821_v27  ;;  %v8062_v27 = vand.u32 4294901760, %v422_v54  ;;  %v8073_v23 = vsub.f32 %v426_v58, %v8054_v14  ;;  %v406_v48 = vld [vmem:[%s6461_s5 + $0x548] sm:$0xff] }
 0x152   : > { %2472 = vmatpush.msra.mxu2 %v2295_v38  ;;  %2519 = vmatpush.msra.mxu3 %v7835_v18  ;;  %v410_v38 = vld [vmem:[%s6461_s5 + $0x568] sm:$0xff]  ;;  %v8100_v30 = vand.u32 4294901760, %v406_v48  ;;  %v1213_v59 = vpop.f32.mrf.mxu0 }
 0x153   : > { %2378 = vmatpush.msra.mxu0 %v7915_v47  ;;  %2411 = vmatpush.msra.mxu1 %v7835_v18  ;;  %v8070_v18 = vand.u32 4294901760, %v418_v0  ;;  %v8089_v5 = vand.u32 4294901760, %v410_v38  ;;  %v10854_v47 = vand.u32 4294901760, %v8073_v23 }
 0x154   : > { %2476 = vmatpush.msra.mxu2 %v2301_v19  ;;  %2521 = vmatpush.msra.mxu3 %v7849_v62  ;;  %v1028_v19 = vadd.f32 %v1027_v21, %v974_v56  ;;  %v8178_v56 = vsub.f32 %v394_v2, %v8148_v49 }
 0x155   : > { %2381 = vmatpush.msra.mxu0 %v7932_v51  ;;  %2413 = vmatpush.msra.mxu1 %v7849_v62  ;;  %v8081_v62 = vand.u32 4294901760, %v414_v36  ;;  %v1314_v26 = vpop.f32.mrf.mxu1 }
 0x156   : > { %2480 = vmatpush.msra.mxu2 %v2307_v46  ;;  %2523 = vmatpush.msra.mxu3 %v7862_v57  ;;  %v8084_v46 = vsub.f32 %v422_v54, %v8062_v27  ;;  %v1067_v8 = vadd.f32 %v1066_v60, %v1028_v19  ;;  %v378_v60 = vld [vmem:[%s6461_s5 + $0x468] sm:$0xff]  ;;  %v8187_v19 = vand.u32 4294901760, %v382_v33  ;;  %v10844_v2 = vand.u32 4294901760, %v8178_v56 }
 0x157   : > { %2384 = vmatpush.msra.mxu0 %v7945_v53  ;;  %2415 = vmatpush.msra.mxu1 %v7862_v57  ;;  %v1135_v57 = vpop.f32.mrf.mxu2  ;;  %v2583_v53 = vsub.f32 %v8073_v23, %v10854_v47  ;;  %v470_v47 = vld [vmem:[%s6461_s5 + $0x748] sm:$0xff] }
 0x158   : > { %2484 = vmatpush.msra.mxu2 %v2313_v9  ;;  %2525 = vmatpush.msra.mxu3 %v7876_v22  ;;  %v8096_v9 = vsub.f32 %v418_v0, %v8070_v18  ;;  %v10853_v51 = vand.u32 4294901760, %v8084_v46  ;;  %v1136_v12 = vadd.f32 %v1135_v57, %v1067_v8  ;;  %v8174_v0 = vand.u32 4294901760, %v386_v20 }
 0x159   : > { %2387 = vmatpush.msra.mxu0 %v7960_v34  ;;  %2417 = vmatpush.msra.mxu1 %v7876_v22  ;;  %v402_v22 = vld [vmem:[%s6461_s5 + $0x528] sm:$0xff]  ;;  %v2584_v61 = vand.u32 4294901760, %v2583_v53  ;;  %v8191_v8 = vsub.f32 %v390_v4, %v8162_v55  ;;  %v8200_v53 = vand.u32 4294901760, %v378_v60 }
 0x15a   : > { %2488 = vmatpush.msra.mxu2 %v2319_v45  ;;  %2527 = vmatpush.msra.mxu3 %v7889_v52  ;;  %v8108_v45 = vsub.f32 %v414_v36, %v8081_v62  ;;  %v10852_v31 = vand.u32 4294901760, %v8096_v9  ;;  %v2589_v34 = vsub.f32 %v8084_v46, %v10853_v51  ;;  %v1173_v3 = vadd.f32 %v1172_v42, %v1136_v12  ;;  %v374_v12 = vld [vmem:[%s6461_s5 + $0x448] sm:$0xff] }
 0x15b   : > { %2390 = vmatmul.f32.vlgmr.msra.gmra.mxu0 %v11071_v28  ;;  %2419 = vmatpush.msra.mxu1 %v7889_v52  ;;  %v8113_v52 = vsub.f32 %v410_v38, %v8089_v5  ;;  %v8318_v28 = vand.u32 4294901760, %v470_v47 }
 0x15c   : > { %2540 = vmatpush.msrb.mxu0 %v8054_v14  ;;  %2492 = vmatpush.msra.mxu2 %v2325_v29  ;;  %v8122_v29 = vand.u32 4294901760, %v402_v22  ;;  %v10851_v16 = vand.u32 4294901760, %v8108_v45  ;;  %v2595_v24 = vsub.f32 %v8096_v9, %v10852_v31  ;;  %v2590_v41 = vand.u32 4294901760, %v2589_v34 }
 0x15d   : > { %2529 = vmatpush.msra.mxu3 %v7907_v1  ;;  %2421 = vmatpush.msra.mxu1 %v7907_v1  ;;  %v8128_v1 = vsub.f32 %v406_v48, %v8100_v30  ;;  %v10849_v32 = vand.u32 4294901760, %v8113_v52  ;;  %v8348_v7 = vsub.f32 %v470_v47, %v8318_v28 }
 0x15e   : > { %2542 = vmatpush.msrb.mxu0 %v8062_v27  ;;  %2496 = vmatpush.msra.mxu2 %v2331_v39  ;;  %v8136_v39 = vand.u32 4294901760, %v398_v44  ;;  %v8151_v35 = vsub.f32 %v402_v22, %v8122_v29  ;;  %v2601_v37 = vsub.f32 %v8108_v45, %v10851_v16  ;;  %v2596_v17 = vand.u32 4294901760, %v2595_v24 }
 0x15f   : > { %2531 = vmatpush.msra.mxu3 %v7920_v50  ;;  %2498 = vmatmul.f32.vlgmr.msra.gmra.mxu2 %v11067_v43  ;;  %v10847_v25 = vand.u32 4294901760, %v8128_v1  ;;  %v1368_v54 = vpop.f32.mrf.mxu2  ;;  %v8216_v24 = vsub.f32 %v382_v33, %v8187_v19  ;;  %v8227_v33 = vsub.f32 %v378_v60, %v8200_v53 }
 0x160   : > { %2544 = vmatpush.msrb.mxu0 %v8070_v18  ;;  %2683 = vmatpush.msrb.mxu2 %v8073_v23  ;;  %v8165_v13 = vsub.f32 %v398_v44, %v8136_v39  ;;  %v10846_v21 = vand.u32 4294901760, %v8151_v35  ;;  %v2602_v38 = vand.u32 4294901760, %v2601_v37  ;;  %v1407_v44 = vpop.f32.mrf.mxu3 }
 0x161   : > { %2423 = vmatpush.msra.mxu1 %v7920_v50  ;;  %2533 = vmatpush.msra.mxu3 %v7939_v10  ;;  %v1214_v50 = vadd.f32 %v1213_v59, %v1173_v3  ;;  %v2613_v36 = vsub.f32 %v8128_v1, %v10847_v25  ;;  %v8204_v59 = vsub.f32 %v386_v20, %v8174_v0  ;;  %v1476_v3 = vpop.f32.mrf.mxu0  ;;  %v10848_v60 = vand.u32 4294901760, %v8216_v24 }
 0x162   : > { %2535 = vmatmul.f32.vlgmr.msra.gmra.mxu3 %v11067_v43  ;;  %2546 = vmatpush.msrb.mxu0 %v8081_v62  ;;  %v10845_v48 = vand.u32 4294901760, %v8165_v13  ;;  %v2619_v42 = vsub.f32 %v8151_v35, %v10846_v21  ;;  %v478_v21 = vld [vmem:[%s6461_s5 + $0x788] sm:$0xff] }
 0x163   : > { %2686 = vmatpush.msrb.mxu2 %v8084_v46  ;;  %2736 = vmatpush.msrb.mxu3 %v8054_v14  ;;  %v1315_v58 = vadd.f32 %v1314_v26, %v1214_v50  ;;  %v2614_v34 = vand.u32 4294901760, %v2613_v36  ;;  %v8212_v26 = vand.u32 4294901760, %v374_v12  ;;  %v370_v50 = vld [vmem:[%s6461_s5 + $0x428] sm:$0xff] }
 0x164   : > { %2425 = vmatpush.msra.mxu1 %v7939_v10  ;;  %2548 = vmatpush.msrb.mxu0 %v8089_v5  ;;  %v2607_v10 = vsub.f32 %v8113_v52, %v10849_v32  ;;  %v2625_v4 = vsub.f32 %v8165_v13, %v10845_v48  ;;  %v2620_v37 = vand.u32 4294901760, %v2619_v42  ;;  %v8232_v36 = vand.u32 4294901760, %v370_v50 }
 0x165   : > { %2429 = vmatmul.f32.vlgmr.msra.gmra.mxu1 %v11072_v15  ;;  %2689 = vmatpush.msrb.mxu2 %v8096_v9  ;;  %v1369_v57 = vadd.f32 %v1368_v54, %v1315_v58  ;;  %v2631_v58 = vsub.f32 %v8178_v56, %v10844_v2  ;;  %v490_v54 = vld [vmem:[%s6461_s5 + $0x7e8] sm:$0xff] }
 0x166   : > { %2585 = vmatpush.msrb.mxu1 %v2584_v61  ;;  %2738 = vmatpush.msrb.mxu3 %v8062_v27  ;;  %v2608_v22 = vand.u32 4294901760, %v2607_v10  ;;  %v10842_v61 = vand.u32 4294901760, %v8191_v8  ;;  %v10843_v10 = vand.u32 4294901760, %v8204_v59 }
 0x167   : > { %2550 = vmatpush.msrb.mxu0 %v8100_v30  ;;  %2692 = vmatpush.msrb.mxu2 %v8108_v45  ;;  %v1408_v20 = vadd.f32 %v1407_v44, %v1369_v57  ;;  %v2626_v57 = vand.u32 4294901760, %v2625_v4  ;;  %v8241_v44 = vsub.f32 %v374_v12, %v8212_v26  ;;  %v2632_v4 = vand.u32 4294901760, %v2631_v58 }
 0x168   : > { %2591 = vmatpush.msrb.mxu1 %v2590_v41  ;;  %2740 = vmatpush.msrb.mxu3 %v8070_v18  ;;  %v1513_v41 = vpop.f32.mrf.mxu1  ;;  %v2643_v12 = vsub.f32 %v8204_v59, %v10843_v10  ;;  %v2649_v10 = vsub.f32 %v8216_v24, %v10848_v60 }
 0x169   : > { %2552 = vmatpush.msrb.mxu0 %v8122_v29  ;;  %2695 = vmatpush.msrb.mxu2 %v8113_v52  ;;  %v10855_v2 = vand.u32 4294901760, %v8241_v44 }
 0x16a   : > { %2597 = vmatpush.msrb.mxu1 %v2596_v17  ;;  %2742 = vmatpush.msrb.mxu3 %v8081_v62  ;;  %v1477_v17 = vadd.f32 %v1476_v3, %v1408_v20  ;;  %v8245_v3 = vand.u32 4294901760, %v490_v54  ;;  %v1554_v20 = vpop.f32.mrf.mxu2 }
 0x16b   : > { %2554 = vmatpush.msrb.mxu0 %v8136_v39  ;;  %2698 = vmatpush.msrb.mxu2 %v8128_v1 }
 0x16c   : > { %2603 = vmatpush.msrb.mxu1 %v2602_v38  ;;  %2744 = vmatpush.msrb.mxu3 %v8089_v5  ;;  %v366_v38 = vld [vmem:[%s6461_s5 + $0x408] sm:$0xff]  ;;  %v1514_v42 = vadd.f32 %v1513_v41, %v1477_v17  ;;  %v10850_v41 = vand.u32 4294901760, %v8227_v33  ;;  %v8258_v17 = vsub.f32 %v370_v50, %v8232_v36  ;;  %v8272_v50 = vsub.f32 %v490_v54, %v8245_v3 }
 0x16d   : > { %2556 = vmatpush.msrb.mxu0 %v8148_v49  ;;  %2701 = vmatpush.msrb.mxu2 %v8151_v35 }
 0x16e   : > { %2609 = vmatpush.msrb.mxu1 %v2608_v22  ;;  %2746 = vmatpush.msrb.mxu3 %v8100_v30  ;;  %v2637_v22 = vsub.f32 %v8191_v8, %v10842_v61  ;;  %v8252_v61 = vand.u32 4294901760, %v366_v38  ;;  %v1555_v25 = vadd.f32 %v1554_v20, %v1514_v42  ;;  %v2655_v60 = vsub.f32 %v8227_v33, %v10850_v41  ;;  %v474_v20 = vld [vmem:[%s6461_s5 + $0x768] sm:$0xff] }
 0x16f   : > { %2558 = vmatpush.msrb.mxu0 %v8162_v55  ;;  %2704 = vmatpush.msrb.mxu2 %v8165_v13  ;;  %v10856_v54 = vand.u32 4294901760, %v8258_v17 }
 0x170   : > { %2615 = vmatpush.msrb.mxu1 %v2614_v34  ;;  %2748 = vmatpush.msrb.mxu3 %v8122_v29  ;;  %v486_v34 = vld [vmem:[%s6461_s5 + $0x7c8] sm:$0xff]  ;;  %v2638_v58 = vand.u32 4294901760, %v2637_v22  ;;  %v2644_v22 = vand.u32 4294901760, %v2643_v12  ;;  %v8279_v32 = vsub.f32 %v366_v38, %v8252_v61  ;;  %v2650_v12 = vand.u32 4294901760, %v2649_v10 }
 0x171   : > { %2560 = vmatpush.msrb.mxu0 %v8174_v0  ;;  %2707 = vmatpush.msrb.mxu2 %v8178_v56  ;;  %v8266_v48 = vand.u32 4294901760, %v486_v34  ;;  %v2661_v38 = vsub.f32 %v8241_v44, %v10855_v2  ;;  %v2656_v10 = vand.u32 4294901760, %v2655_v60  ;;  %v466_v60 = vld [vmem:[%s6461_s5 + $0x728] sm:$0xff]  ;;  %v11075_v2 = vand.u32 4294901760, %v8073_v23 }
 0x172   : > { %2621 = vmatpush.msrb.mxu1 %v2620_v37  ;;  %2750 = vmatpush.msrb.mxu3 %v8136_v39  ;;  %v482_v37 = vld [vmem:[%s6461_s5 + $0x7a8] sm:$0xff]  ;;  %v1709_v41 = vpop.f32.mrf.mxu0  ;;  %v11076_v43 = vand.u32 4294901760, %v8279_v32  ;;  %v8336_v6 = vand.u32 4294901760, %v466_v60 }
 0x173   : > { %2562 = vmatpush.msrb.mxu0 %v8187_v19  ;;  %2710 = vmatpush.msrb.mxu2 %v8191_v8  ;;  %v8281_v42 = vand.u32 4294901760, %v482_v37  ;;  %v8294_v16 = vsub.f32 %v486_v34, %v8266_v48 }
 0x174   : > { %2627 = vmatpush.msrb.mxu1 %v2626_v57  ;;  %2752 = vmatpush.msrb.mxu3 %v8148_v49  ;;  %v1655_v57 = vpop.f32.mrf.mxu3  ;;  %v8363_v40 = vsub.f32 %v466_v60, %v8336_v6  ;;  %v11084_v60 = vand.u32 4294901760, %v8108_v45  ;;  %v11085_v45 = vand.u32 4294901760, %v8113_v52  ;;  %v11087_v52 = vand.u32 4294901760, %v8348_v7 }
 0x175   : > { %2564 = vmatpush.msrb.mxu0 %v8200_v53  ;;  %2713 = vmatpush.msrb.mxu2 %v8204_v59  ;;  %v1656_v31 = vadd.f32 %v1655_v57, %v1555_v25  ;;  %v8305_v34 = vsub.f32 %v482_v37, %v8281_v42  ;;  %v2667_v57 = vsub.f32 %v8258_v17, %v10856_v54  ;;  %v2662_v37 = vand.u32 4294901760, %v2661_v38  ;;  %v462_v38 = vld [vmem:[%s6461_s5 + $0x708] sm:$0xff] }
 0x176   : > { %2633 = vmatpush.msrb.mxu1 %v2632_v4  ;;  %2754 = vmatpush.msrb.mxu3 %v8162_v55  ;;  %v8287_v4 = vand.u32 4294901760, %v478_v21  ;;  %v8350_v11 = vand.u32 4294901760, %v462_v38 }
 0x177   : > { %2566 = vmatpush.msrb.mxu0 %v8212_v26  ;;  %2716 = vmatpush.msrb.mxu2 %v8216_v24  ;;  %v1710_v25 = vadd.f32 %v1709_v41, %v1656_v31  ;;  %v11073_v31 = vld [vmem:[#allocation23_spill] sm:$0xff]  ;;  %v11074_v41 = vand.u32 4294901760, %v8272_v50 }
 0x178   : > { %2639 = vmatpush.msrb.mxu1 %v2638_v58  ;;  %2756 = vmatpush.msrb.mxu3 %v8174_v0  ;;  %v8299_v58 = vand.u32 4294901760, %v474_v20 }
 0x179   : > { %2568 = vmatpush.msrb.mxu0 %v8232_v36  ;;  %2719 = vmatpush.msrb.mxu2 %v8227_v33 }
 0x17a   : > { %2645 = vmatpush.msrb.mxu1 %v2644_v22  ;;  %2758 = vmatpush.msrb.mxu3 %v8187_v19  ;;  %v8313_v22 = vsub.f32 %v478_v21, %v8287_v4  ;;  %v2924_v21 = vsub.f32 %v8272_v50, %v11074_v41 }
 0x17b   : > { %2570 = vmatpush.msrb.mxu0 %v8252_v61  ;;  %2722 = vmatpush.msrb.mxu2 %v8241_v44 }
 0x17c   : > { %2651 = vmatpush.msrb.mxu1 %v2650_v12  ;;  %2760 = vmatpush.msrb.mxu3 %v8200_v53  ;;  %v1748_v51 = vpop.f32.mrf.mxu1  ;;  %v1817_v15 = vpop.f32.mrf.mxu2  ;;  %v8327_v12 = vsub.f32 %v474_v20, %v8299_v58 }
 0x17d   : > { %2576 = vmatmul.f32.vlgmr.msrb.gmra.mxu0 %v11073_v31  ;;  %2725 = vmatpush.msrb.mxu2 %v8258_v17  ;;  %v1749_v54 = vadd.f32 %v1748_v51, %v1710_v25  ;;  %v2673_v31 = vsub.f32 %v8279_v32, %v11076_v43  ;;  %v2668_v51 = vand.u32 4294901760, %v2667_v57  ;;  %v11078_v43 = vand.u32 4294901760, %v8294_v16 }
 0x17e   : > { %2777 = vmatpush.msra.mxu0 %v11075_v2  ;;  %2657 = vmatpush.msrb.mxu1 %v2656_v10  ;;  %v458_v2 = vld [vmem:[%s6461_s5 + $0x6e8] sm:$0xff]  ;;  %v11077_v10 = vand.u32 4294901760, %v8084_v46  ;;  %v10859_v46 = vand.u32 4294901760, %v8327_v12 }
 0x17f   : > { %2762 = vmatpush.msrb.mxu3 %v8212_v26  ;;  %2728 = vmatpush.msrb.mxu2 %v8279_v32  ;;  %v1818_v20 = vadd.f32 %v1817_v15, %v1749_v54  ;;  %v1854_v23 = vpop.f32.mrf.mxu3  ;;  %v2930_v41 = vsub.f32 %v8294_v16, %v11078_v43  ;;  %v11079_v15 = vld [vmem:[#allocation21_spill] sm:$0xff]  ;;  %v2925_v54 = vand.u32 4294901760, %v2924_v21  ;;  %v2674_v47 = vand.u32 4294901760, %v2673_v31 }
 0x180   : > { %2781 = vmatpush.msra.mxu0 %v11077_v10  ;;  %2663 = vmatpush.msrb.mxu1 %v2662_v37  ;;  %v454_v37 = vld [vmem:[%s6461_s5 + $0x6c8] sm:$0xff]  ;;  %v11080_v10 = vand.u32 4294901760, %v8096_v9  ;;  %v11081_v43 = vand.u32 4294901760, %v8305_v34  ;;  %v11082_v21 = vand.u32 4294901760, %v8313_v22 }
 0x181   : > { %2764 = vmatpush.msrb.mxu3 %v8232_v36  ;;  %2731 = vmatmul.f32.vlgmr.msrb.gmra.mxu2 %v11079_v15  ;;  %v1855_v57 = vadd.f32 %v1854_v23, %v1818_v20  ;;  %v8365_v15 = vand.u32 4294901760, %v458_v2  ;;  %v450_v31 = vld [vmem:[%s6461_s5 + $0x6a8] sm:$0xff]  ;;  %v11083_v20 = vld [vmem:[#allocation22_spill] sm:$0xff]  ;;  %v2931_v23 = vand.u32 4294901760, %v2930_v41 }
 0x182   : > { %2785 = vmatpush.msra.mxu0 %v11080_v10  ;;  %2881 = vmatpush.msra.mxu2 %v8245_v3  ;;  %v2936_v25 = vsub.f32 %v8305_v34, %v11081_v43  ;;  %v2942_v9 = vsub.f32 %v8313_v22, %v11082_v21  ;;  %v8382_v10 = vsub.f32 %v462_v38, %v8350_v11  ;;  %v8384_v43 = vand.u32 4294901760, %v454_v37  ;;  %v446_v21 = vld [vmem:[%s6461_s5 + $0x688] sm:$0xff] }
 0x183   : > { %2669 = vmatpush.msrb.mxu1 %v2668_v51  ;;  %2766 = vmatpush.msrb.mxu3 %v8252_v61  ;;  %5964 = vst [vmem:[%s8373_s18] sm:$0xff] %v1855_v57  ;;  %v2948_v57 = vsub.f32 %v8327_v12, %v10859_v46  ;;  %v8395_v38 = vsub.f32 %v458_v2, %v8365_v15  ;;  %v8397_v51 = vand.u32 4294901760, %v450_v31  ;;  %v11088_v46 = vand.u32 4294901760, %v8128_v1  ;;  %v438_v1 = vld [vmem:[%s6461_s5 + $0x648] sm:$0xff] }
 0x184   : > { %2770 = vmatmul.f32.vlgmr.msrb.gmra.mxu3 %v11083_v20  ;;  %2789 = vmatpush.msra.mxu0 %v11084_v60  ;;  %v2937_v41 = vand.u32 4294901760, %v2936_v25  ;;  %v10860_v60 = vand.u32 4294901760, %v8363_v40  ;;  %v11086_v20 = vld [vmem:[#allocation12_spill] sm:$0xff]  ;;  %v2954_v25 = vsub.f32 %v8348_v7, %v11087_v52  ;;  %v8408_v2 = vsub.f32 %v454_v37, %v8384_v43 }
 0x185   : > { %2883 = vmatpush.msra.mxu2 %v8266_v48  ;;  %2926 = vmatpush.msra.mxu3 %v2925_v54  ;;  %v2943_v54 = vand.u32 4294901760, %v2942_v9  ;;  %v2949_v9 = vand.u32 4294901760, %v2948_v57  ;;  %v8421_v37 = vsub.f32 %v450_v31, %v8397_v51  ;;  %v8423_v52 = vand.u32 4294901760, %v442_v63 }
 0x186   : > { %2675 = vmatpush.msrb.mxu1 %v2674_v47  ;;  %2793 = vmatpush.msra.mxu0 %v11085_v45  ;;  %v10861_v47 = vand.u32 4294901760, %v8382_v10  ;;  %v8410_v45 = vand.u32 4294901760, %v446_v21  ;;  %v2977_v31 = vand.u32 4294901760, %v8408_v2 }
 0x187   : > { %2677 = vmatmul.f32.vlgmr.msrb.gmra.mxu1 %v11086_v20  ;;  %2885 = vmatpush.msra.mxu2 %v8281_v42 }
 0x188   : > { %2844 = vmatpush.msra.mxu1 %v8054_v14  ;;  %2932 = vmatpush.msra.mxu3 %v2931_v23  ;;  %v2960_v14 = vsub.f32 %v8363_v40, %v10860_v60  ;;  %v2971_v23 = vand.u32 4294901760, %v8395_v38  ;;  %v2966_v57 = vsub.f32 %v8382_v10, %v10861_v47  ;;  %v434_v60 = vld [vmem:[%s6461_s5 + $0x628] sm:$0xff] }
 0x189   : > { %2797 = vmatpush.msra.mxu0 %v11088_v46  ;;  %2887 = vmatpush.msra.mxu2 %v8287_v4  ;;  %v11089_v46 = vand.u32 4294901760, %v8151_v35  ;;  %v11090_v35 = vand.u32 4294901760, %v8165_v13  ;;  %v430_v47 = vld [vmem:[%s6461_s5 + $0x608] sm:$0xff]  ;;  %v11091_v13 = vand.u32 4294901760, %v8178_v56 }
 0x18a   : > { %2846 = vmatpush.msra.mxu1 %v8062_v27  ;;  %2938 = vmatpush.msra.mxu3 %v2937_v41  ;;  %v2955_v27 = vand.u32 4294901760, %v2954_v25  ;;  %v8435_v41 = vsub.f32 %v446_v21, %v8410_v45  ;;  %v2983_v25 = vand.u32 4294901760, %v8421_v37  ;;  %v8449_v21 = vsub.f32 %v442_v63, %v8423_v52 }
 0x18b   : > { %2801 = vmatpush.msra.mxu0 %v11089_v46  ;;  %2889 = vmatpush.msra.mxu2 %v8299_v58  ;;  %v8441_v46 = vand.u32 4294901760, %v438_v1  ;;  %v11092_v63 = vand.u32 4294901760, %v8191_v8  ;;  %v11093_v8 = vand.u32 4294901760, %v8204_v59 }
 0x18c   : > { %2848 = vmatpush.msra.mxu1 %v8070_v18  ;;  %2944 = vmatpush.msra.mxu3 %v2943_v54  ;;  %v2961_v18 = vand.u32 4294901760, %v2960_v14  ;;  %v2972_v54 = vsub.f32 %v8395_v38, %v2971_v23  ;;  %v2989_v14 = vand.u32 4294901760, %v8435_v41 }
 0x18d   : > { %2805 = vmatpush.msra.mxu0 %v11090_v35  ;;  %2891 = vmatpush.msra.mxu2 %v8318_v28  ;;  %v8455_v35 = vand.u32 4294901760, %v434_v60  ;;  %v8466_v56 = vsub.f32 %v438_v1, %v8441_v46 }
 0x18e   : > { %2850 = vmatpush.msra.mxu1 %v8081_v62  ;;  %2950 = vmatpush.msra.mxu3 %v2949_v9  ;;  %v2967_v62 = vand.u32 4294901760, %v2966_v57  ;;  %v2978_v9 = vsub.f32 %v8408_v2, %v2977_v31  ;;  %v2995_v57 = vand.u32 4294901760, %v8449_v21 }
 0x18f   : > { %2809 = vmatpush.msra.mxu0 %v11091_v13  ;;  %2893 = vmatpush.msra.mxu2 %v8336_v6  ;;  %v8468_v13 = vand.u32 4294901760, %v430_v47  ;;  %v8479_v1 = vsub.f32 %v434_v60, %v8455_v35  ;;  %v3001_v59 = vand.u32 4294901760, %v8466_v56 }
 0x190   : > { %2852 = vmatpush.msra.mxu1 %v8089_v5  ;;  %2956 = vmatpush.msra.mxu3 %v2955_v27  ;;  %v2973_v5 = vand.u32 4294901760, %v2972_v54  ;;  %v2984_v27 = vsub.f32 %v8421_v37, %v2983_v25  ;;  %v11094_v54 = vand.u32 4294901760, %v8216_v24  ;;  %v2996_v60 = vsub.f32 %v8449_v21, %v2995_v57 }
 0x191   : > { %2813 = vmatpush.msra.mxu0 %v11092_v63  ;;  %2895 = vmatpush.msra.mxu2 %v8350_v11  ;;  %v8490_v63 = vsub.f32 %v430_v47, %v8468_v13  ;;  %v3007_v24 = vand.u32 4294901760, %v8479_v1 }
 0x192   : > { %2854 = vmatpush.msra.mxu1 %v8100_v30  ;;  %2962 = vmatpush.msra.mxu3 %v2961_v18  ;;  %v2979_v30 = vand.u32 4294901760, %v2978_v9  ;;  %v2990_v18 = vsub.f32 %v8435_v41, %v2989_v14  ;;  %v11096_v9 = vand.u32 4294901760, %v8241_v44  ;;  %v11098_v44 = vand.u32 4294901760, %v8279_v32 }
 0x193   : > { %2817 = vmatpush.msra.mxu0 %v11093_v8  ;;  %2897 = vmatpush.msra.mxu2 %v8365_v15 }
 0x194   : > { %2856 = vmatpush.msra.mxu1 %v8122_v29  ;;  %2968 = vmatpush.msra.mxu3 %v2967_v62  ;;  %v2985_v29 = vand.u32 4294901760, %v2984_v27  ;;  %v11095_v62 = vand.u32 4294901760, %v8227_v33  ;;  %v2991_v47 = vand.u32 4294901760, %v2990_v18  ;;  %v3013_v33 = vand.u32 4294901760, %v8490_v63 }
 0x195   : > { %2821 = vmatpush.msra.mxu0 %v11094_v54  ;;  %2899 = vmatpush.msra.mxu2 %v8384_v43  ;;  %v11097_v27 = vand.u32 4294901760, %v8258_v17 }
 0x196   : > { %2858 = vmatpush.msra.mxu1 %v8136_v39  ;;  %2974 = vmatpush.msra.mxu3 %v2973_v5  ;;  %v3002_v39 = vsub.f32 %v8466_v56, %v3001_v59  ;;  %v2997_v5 = vand.u32 4294901760, %v2996_v60  ;;  %v3014_v17 = vsub.f32 %v8490_v63, %v3013_v33  ;;  %v259_v60 = vld [vmem:[%s6461_s5 + $0xb0] sm:$0xff] }
 0x197   : > { %2825 = vmatpush.msra.mxu0 %v11095_v62  ;;  %2901 = vmatpush.msra.mxu2 %v8397_v51 }
 0x198   : > { %2860 = vmatpush.msra.mxu1 %v8148_v49  ;;  %2980 = vmatpush.msra.mxu3 %v2979_v30  ;;  %v3008_v49 = vsub.f32 %v8479_v1, %v3007_v24  ;;  %v3015_v32 = vand.u32 4294901760, %v3014_v17  ;;  %v11102_v30 = vand.u32 4294901760, %v8294_v16  ;;  %v251_v17 = vld [vmem:[%s6461_s5 + $0x70] sm:$0xff] }
 0x199   : > { %2829 = vmatpush.msra.mxu0 %v11096_v9  ;;  %2903 = vmatpush.msra.mxu2 %v8410_v45 }
 0x19a   : > { %2862 = vmatpush.msra.mxu1 %v8162_v55  ;;  %2986 = vmatpush.msra.mxu3 %v2985_v29  ;;  %v3003_v55 = vand.u32 4294901760, %v3002_v39  ;;  %v3009_v8 = vand.u32 4294901760, %v3008_v49  ;;  %v11110_v39 = vld [vmem:[#allocation26_spill] sm:$0xff]  ;;  %v8707_v49 = vand.u32 4294901760, %v259_v60 }
 0x19b   : > { %2833 = vmatpush.msra.mxu0 %v11097_v27  ;;  %2905 = vmatpush.msra.mxu2 %v8423_v52 }
 0x19c   : > { %2864 = vmatpush.msra.mxu1 %v8174_v0  ;;  %2992 = vmatpush.msra.mxu3 %v2991_v47  ;;  %v11099_v0 = vld [vmem:[#allocation27_spill] sm:$0xff] }
 0x19d   : > { %2837 = vmatpush.msra.mxu0 %v11098_v44  ;;  %2907 = vmatpush.msra.mxu2 %v8441_v46 }
 0x19e   : > { %2866 = vmatpush.msra.mxu1 %v8187_v19  ;;  %2998 = vmatpush.msra.mxu3 %v2997_v5  ;;  %v11100_v19 = vand.u32 4294901760, %v8272_v50 }
 0x19f   : > { %2839 = vmatmul.f32.vlgmr.msra.gmra.mxu0 %v11086_v20  ;;  %2909 = vmatpush.msra.mxu2 %v8455_v35 }
 0x1a0   : > { %3024 = vmatpush.msrb.mxu0 %v8272_v50  ;;  %2868 = vmatpush.msra.mxu1 %v8200_v53  ;;  %v11101_v53 = vld [vmem:[#allocation24_spill] sm:$0xff] }
 0x1a1   : > { %3004 = vmatpush.msra.mxu3 %v3003_v55  ;;  %2911 = vmatpush.msra.mxu2 %v8468_v13 }
 0x1a2   : > { %3027 = vmatpush.msrb.mxu0 %v8294_v16  ;;  %2870 = vmatpush.msra.mxu1 %v8212_v26  ;;  %v11103_v26 = vand.u32 4294901760, %v8305_v34  ;;  %v11104_v16 = vand.u32 4294901760, %v8313_v22 }
 0x1a3   : > { %3010 = vmatpush.msra.mxu3 %v3009_v8  ;;  %2917 = vmatmul.f32.vlgmr.msra.gmra.mxu2 %v11099_v0 }
 0x1a4   : > { %3030 = vmatpush.msrb.mxu0 %v8305_v34  ;;  %3118 = vmatpush.msrb.mxu2 %v11100_v19 }
 0x1a5   : > { %2872 = vmatpush.msra.mxu1 %v8232_v36  ;;  %3016 = vmatpush.msra.mxu3 %v3015_v32  ;;  %v11106_v36 = vand.u32 4294901760, %v8348_v7 }
 0x1a6   : > { %3018 = vmatmul.f32.vlgmr.msra.gmra.mxu3 %v11101_v53  ;;  %3033 = vmatpush.msrb.mxu0 %v8313_v22 }
 0x1a7   : > { %3122 = vmatpush.msrb.mxu2 %v11102_v30  ;;  %3185 = vmatpush.msrb.mxu3 %v8245_v3 }
 0x1a8   : > { %2874 = vmatpush.msra.mxu1 %v8252_v61  ;;  %3036 = vmatpush.msrb.mxu0 %v8327_v12  ;;  %v11105_v61 = vand.u32 4294901760, %v8327_v12  ;;  %v279_v12 = vld [vmem:[%s6461_s5 + $0x150] sm:$0xff] }
 0x1a9   : > { %2876 = vmatmul.f32.vlgmr.msra.gmra.mxu1 %v11086_v20  ;;  %3126 = vmatpush.msrb.mxu2 %v11103_v26  ;;  %v315_v20 = vld [vmem:[%s6461_s5 + $0x270] sm:$0xff] }
 0x1aa   : > { %3077 = vmatpush.msrb.mxu1 %v8245_v3  ;;  %3187 = vmatpush.msrb.mxu3 %v8266_v48  ;;  %v11108_v3 = vand.u32 4294901760, %v8382_v10 }
 0x1ab   : > { %3039 = vmatpush.msrb.mxu0 %v8348_v7  ;;  %3130 = vmatpush.msrb.mxu2 %v11104_v16  ;;  %v295_v7 = vld [vmem:[%s6461_s5 + $0x1d0] sm:$0xff] }
 0x1ac   : > { %3079 = vmatpush.msrb.mxu1 %v8266_v48  ;;  %3189 = vmatpush.msrb.mxu3 %v8281_v42  ;;  %v11107_v48 = vand.u32 4294901760, %v8363_v40  ;;  %v8592_v50 = vand.u32 4294901760, %v295_v7  ;;  %v247_v16 = vld [vmem:[%s6461_s5 + $0x50] sm:$0xff] }
 0x1ad   : > { %3042 = vmatpush.msrb.mxu0 %v8363_v40  ;;  %3134 = vmatpush.msrb.mxu2 %v11105_v61  ;;  %v299_v40 = vld [vmem:[%s6461_s5 + $0x1f0] sm:$0xff] }
 0x1ae   : > { %3081 = vmatpush.msrb.mxu1 %v8281_v42  ;;  %3191 = vmatpush.msrb.mxu3 %v8287_v4  ;;  %v8614_v22 = vsub.f32 %v295_v7, %v8592_v50  ;;  %v243_v7 = vld [vmem:[%s6461_s5 + $0x30] sm:$0xff] }
 0x1af   : > { %3045 = vmatpush.msrb.mxu0 %v8382_v10  ;;  %3138 = vmatpush.msrb.mxu2 %v11106_v36 }
 0x1b0   : > { %3083 = vmatpush.msrb.mxu1 %v8287_v4  ;;  %3193 = vmatpush.msrb.mxu3 %v8299_v58 }
 0x1b1   : > { %3048 = vmatpush.msrb.mxu0 %v8395_v38  ;;  %3142 = vmatpush.msrb.mxu2 %v11107_v48  ;;  %v275_v38 = vld [vmem:[%s6461_s5 + $0x130] sm:$0xff]  ;;  %v8731_v48 = vand.u32 4294901760, %v251_v17 }
 0x1b2   : > { %3085 = vmatpush.msrb.mxu1 %v8299_v58  ;;  %3195 = vmatpush.msrb.mxu3 %v8318_v28  ;;  %v283_v58 = vld [vmem:[%s6461_s5 + $0x170] sm:$0xff] }
 0x1b3   : > { %3051 = vmatpush.msrb.mxu0 %v8408_v2  ;;  %3146 = vmatpush.msrb.mxu2 %v11108_v3  ;;  %v8634_v2 = vand.u32 4294901760, %v279_v12  ;;  %v8734_v3 = vsub.f32 %v259_v60, %v8707_v49 }
 0x1b4   : > { %3087 = vmatpush.msrb.mxu1 %v8318_v28  ;;  %3197 = vmatpush.msrb.mxu3 %v8336_v6  ;;  %v8584_v28 = vand.u32 4294901760, %v299_v40 }
 0x1b5   : > { %3054 = vmatpush.msrb.mxu0 %v8421_v37  ;;  %3150 = vmatpush.msrb.mxu2 %v2971_v23  ;;  %v271_v37 = vld [vmem:[%s6461_s5 + $0x110] sm:$0xff] }
 0x1b6   : > { %3089 = vmatpush.msrb.mxu1 %v8336_v6  ;;  %3199 = vmatpush.msrb.mxu3 %v8350_v11  ;;  %v291_v6 = vld [vmem:[%s6461_s5 + $0x1b0] sm:$0xff]  ;;  %v8603_v4 = vsub.f32 %v299_v40, %v8584_v28 }
 0x1b7   : > { %3057 = vmatpush.msrb.mxu0 %v8435_v41  ;;  %3154 = vmatpush.msrb.mxu2 %v2977_v31  ;;  %v8600_v42 = vand.u32 4294901760, %v291_v6  ;;  %v8649_v31 = vand.u32 4294901760, %v275_v38 }
 0x1b8   : > { %3091 = vmatpush.msrb.mxu1 %v8350_v11  ;;  %3201 = vmatpush.msrb.mxu3 %v8365_v15  ;;  %v287_v11 = vld [vmem:[%s6461_s5 + $0x190] sm:$0xff] }
 0x1b9   : > { %3060 = vmatpush.msrb.mxu0 %v8449_v21  ;;  %3158 = vmatpush.msrb.mxu2 %v2983_v25  ;;  %v8611_v34 = vand.u32 4294901760, %v287_v11  ;;  %v8626_v10 = vsub.f32 %v291_v6, %v8600_v42  ;;  %v267_v21 = vld [vmem:[%s6461_s5 + $0xf0] sm:$0xff]  ;;  %v8681_v29 = vsub.f32 %v275_v38, %v8649_v31 }
 0x1ba   : > { %3093 = vmatpush.msrb.mxu1 %v8365_v15  ;;  %3203 = vmatpush.msrb.mxu3 %v8384_v43  ;;  %v8622_v15 = vand.u32 4294901760, %v283_v58  ;;  %v8672_v18 = vand.u32 4294901760, %v267_v21  ;;  %v363_v38 = vld [vmem:[%s6461_s5 + $0x3f0] sm:$0xff] }
 0x1bb   : > { %3063 = vmatpush.msrb.mxu0 %v8466_v56  ;;  %3162 = vmatpush.msrb.mxu2 %v2989_v14  ;;  %v8638_v23 = vsub.f32 %v287_v11, %v8611_v34  ;;  %v10874_v41 = vand.u32 4294901760, %v8626_v10  ;;  %v8663_v14 = vand.u32 4294901760, %v271_v37  ;;  %v10867_v44 = vand.u32 4294901760, %v8681_v29 }
 0x1bc   : > { %3095 = vmatpush.msrb.mxu1 %v8384_v43  ;;  %3205 = vmatpush.msrb.mxu3 %v8397_v51  ;;  %v11109_v43 = vld [vmem:[#allocation25_spill] sm:$0xff]  ;;  %v8653_v25 = vsub.f32 %v283_v58, %v8622_v15  ;;  %v8744_v58 = vand.u32 4294901760, %v247_v16  ;;  %v8768_v60 = vand.u32 4294901760, %v363_v38 }
 0x1bd   : > { %3066 = vmatpush.msrb.mxu0 %v8479_v1  ;;  %3166 = vmatpush.msrb.mxu2 %v2995_v57  ;;  %v10872_v56 = vand.u32 4294901760, %v8638_v23  ;;  %v8667_v57 = vsub.f32 %v279_v12, %v8634_v2  ;;  %v263_v1 = vld [vmem:[%s6461_s5 + $0xd0] sm:$0xff]  ;;  %v8695_v9 = vsub.f32 %v271_v37, %v8663_v14  ;;  %v3301_v36 = vsub.f32 %v8681_v29, %v10867_v44 }
 0x1be   : > { %3097 = vmatpush.msrb.mxu1 %v8397_v51  ;;  %3207 = vmatpush.msrb.mxu3 %v8410_v45  ;;  %v3264_v51 = vand.u32 4294901760, %v8603_v4  ;;  %v343_v44 = vld [vmem:[%s6461_s5 + $0x350] sm:$0xff] }
 0x1bf   : > { %3069 = vmatpush.msrb.mxu0 %v8490_v63  ;;  %3170 = vmatpush.msrb.mxu2 %v3001_v59  ;;  %v3277_v59 = vsub.f32 %v8626_v10, %v10874_v41  ;;  %v10870_v63 = vand.u32 4294901760, %v8653_v25  ;;  %v10869_v47 = vand.u32 4294901760, %v8667_v57  ;;  %v10866_v30 = vand.u32 4294901760, %v8695_v9 }
 0x1c0   : > { %3099 = vmatpush.msrb.mxu1 %v8410_v45  ;;  %3209 = vmatpush.msrb.mxu3 %v8423_v52  ;;  %v10875_v45 = vand.u32 4294901760, %v8614_v22 }
 0x1c1   : > { %3072 = vmatmul.f32.vlgmr.msrb.gmra.mxu0 %v11109_v43  ;;  %3174 = vmatpush.msrb.mxu2 %v3007_v24  ;;  %v3283_v24 = vsub.f32 %v8638_v23, %v10872_v56  ;;  %v3278_v5 = vand.u32 4294901760, %v3277_v59  ;;  %v3289_v27 = vsub.f32 %v8653_v25, %v10870_v63  ;;  %v3295_v32 = vsub.f32 %v8667_v57, %v10869_v47 }
 0x1c2   : > { %3222 = vmatpush.msra.mxu0 %v8584_v28  ;;  %3101 = vmatpush.msrb.mxu1 %v8423_v52  ;;  %v3265_v52 = vsub.f32 %v8603_v4, %v3264_v51  ;;  %v3307_v11 = vsub.f32 %v8695_v9, %v10866_v30 }
 0x1c3   : > { %3211 = vmatpush.msrb.mxu3 %v8441_v46  ;;  %3178 = vmatpush.msrb.mxu2 %v3013_v33  ;;  %v8700_v33 = vsub.f32 %v267_v21, %v8672_v18  ;;  %v3284_v8 = vand.u32 4294901760, %v3283_v24  ;;  %v3290_v61 = vand.u32 4294901760, %v3289_v27  ;;  %v3296_v6 = vand.u32 4294901760, %v3295_v32 }
 0x1c4   : > { %3224 = vmatpush.msra.mxu0 %v8592_v50  ;;  %3103 = vmatpush.msrb.mxu1 %v8441_v46  ;;  %v3271_v46 = vsub.f32 %v8614_v22, %v10875_v45  ;;  %v3266_v54 = vand.u32 4294901760, %v3265_v52  ;;  %v239_v52 = vld [vmem:[%s6461_s5 + $0x10] sm:$0xff]  ;;  %v3302_v21 = vand.u32 4294901760, %v3301_v36  ;;  %v3308_v24 = vand.u32 4294901760, %v3307_v11 }
 0x1c5   : > { %3213 = vmatpush.msrb.mxu3 %v8455_v35  ;;  %3180 = vmatmul.f32.vlgmr.msrb.gmra.mxu2 %v11101_v53  ;;  %v10864_v26 = vand.u32 4294901760, %v8700_v33  ;;  %v8776_v27 = vsub.f32 %v247_v16, %v8744_v58 }
 0x1c6   : > { %3226 = vmatpush.msra.mxu0 %v8600_v42  ;;  %3365 = vmatpush.msra.mxu2 %v8603_v4  ;;  %v3272_v62 = vand.u32 4294901760, %v3271_v46  ;;  %v8757_v46 = vand.u32 4294901760, %v243_v7  ;;  %v11112_v4 = vand.u32 4294901760, %v8614_v22 }
 0x1c7   : > { %3105 = vmatpush.msrb.mxu1 %v8455_v35  ;;  %3215 = vmatpush.msrb.mxu3 %v8468_v13  ;;  %v8685_v35 = vand.u32 4294901760, %v263_v1  ;;  %v3313_v37 = vsub.f32 %v8700_v33, %v10864_v26  ;;  %v347_v26 = vld [vmem:[%s6461_s5 + $0x370] sm:$0xff] }
 0x1c8   : > { %3217 = vmatmul.f32.vlgmr.msrb.gmra.mxu3 %v11101_v53  ;;  %3228 = vmatpush.msra.mxu0 %v8611_v34  ;;  %v8787_v36 = vsub.f32 %v243_v7, %v8757_v46  ;;  %v10871_v7 = vand.u32 4294901760, %v8776_v27 }
 0x1c9   : > { %3368 = vmatpush.msra.mxu2 %v8614_v22  ;;  %3418 = vmatpush.msra.mxu3 %v8584_v28  ;;  %v8713_v55 = vsub.f32 %v263_v1, %v8685_v35  ;;  %v10862_v1 = vand.u32 4294901760, %v8734_v3 }
 0x1ca   : > { %3107 = vmatpush.msrb.mxu1 %v8468_v13  ;;  %3230 = vmatpush.msra.mxu0 %v8622_v15  ;;  %v255_v13 = vld [vmem:[%s6461_s5 + $0x90] sm:$0xff] }
 0x1cb   : > { %3111 = vmatmul.f32.vlgmr.msrb.gmra.mxu1 %v11110_v39  ;;  %3371 = vmatpush.msra.mxu2 %v8626_v10  ;;  %v8720_v19 = vand.u32 4294901760, %v255_v13  ;;  %v10863_v40 = vand.u32 4294901760, %v8713_v55  ;;  %v3325_v32 = vsub.f32 %v8734_v3, %v10862_v1 }
 0x1cc   : > { %3267 = vmatpush.msra.mxu1 %v3266_v54  ;;  %3420 = vmatpush.msra.mxu3 %v8592_v50  ;;  %v8761_v54 = vsub.f32 %v251_v17, %v8731_v48  ;;  %v3314_v17 = vand.u32 4294901760, %v3313_v37  ;;  %v8795_v37 = vsub.f32 %v363_v38, %v8768_v60 }
 0x1cd   : > { %3232 = vmatpush.msra.mxu0 %v8634_v2  ;;  %3374 = vmatpush.msra.mxu2 %v8638_v23  ;;  %v8747_v12 = vsub.f32 %v255_v13, %v8720_v19  ;;  %v3319_v59 = vsub.f32 %v8713_v55, %v10863_v40  ;;  %v8772_v13 = vand.u32 4294901760, %v239_v52 }
 0x1ce   : > { %3273 = vmatpush.msra.mxu1 %v3272_v62  ;;  %3422 = vmatpush.msra.mxu3 %v8600_v42  ;;  %v359_v62 = vld [vmem:[%s6461_s5 + $0x3d0] sm:$0xff]  ;;  %v10876_v30 = vand.u32 4294901760, %v8795_v37 }
 0x1cf   : > { %3234 = vmatpush.msra.mxu0 %v8649_v31  ;;  %3377 = vmatpush.msra.mxu2 %v8653_v25  ;;  %v8789_v16 = vand.u32 4294901760, %v359_v62  ;;  %v3320_v11 = vand.u32 4294901760, %v3319_v59  ;;  %v8803_v1 = vsub.f32 %v239_v52, %v8772_v13  ;;  %v3326_v59 = vand.u32 4294901760, %v3325_v32 }
 0x1d0   : > { %3279 = vmatpush.msra.mxu1 %v3278_v5  ;;  %3424 = vmatpush.msra.mxu3 %v8611_v34  ;;  %v10865_v5 = vand.u32 4294901760, %v8747_v12  ;;  %v10873_v52 = vand.u32 4294901760, %v8787_v36 }
 0x1d1   : > { %3236 = vmatpush.msra.mxu0 %v8663_v14  ;;  %3380 = vmatpush.msra.mxu2 %v8667_v57 }
 0x1d2   : > { %3285 = vmatpush.msra.mxu1 %v3284_v8  ;;  %3426 = vmatpush.msra.mxu3 %v8622_v15  ;;  %v355_v8 = vld [vmem:[%s6461_s5 + $0x3b0] sm:$0xff] }
 0x1d3   : > { %3238 = vmatpush.msra.mxu0 %v8672_v18  ;;  %3383 = vmatpush.msra.mxu2 %v8681_v29  ;;  %v8805_v40 = vand.u32 4294901760, %v355_v8 }
 0x1d4   : > { %3291 = vmatpush.msra.mxu1 %v3290_v61  ;;  %3428 = vmatpush.msra.mxu3 %v8634_v2  ;;  %v10868_v61 = vand.u32 4294901760, %v8761_v54 }
 0x1d5   : > { %3240 = vmatpush.msra.mxu0 %v8685_v35  ;;  %3386 = vmatpush.msra.mxu2 %v8695_v9  ;;  %v8832_v47 = vsub.f32 %v355_v8, %v8805_v40  ;;  %v8845_v8 = vand.u32 4294901760, %v343_v44 }
 0x1d6   : > { %3297 = vmatpush.msra.mxu1 %v3296_v6  ;;  %3430 = vmatpush.msra.mxu3 %v8649_v31  ;;  %v351_v6 = vld [vmem:[%s6461_s5 + $0x390] sm:$0xff] }
 0x1d7   : > { %3242 = vmatpush.msra.mxu0 %v8707_v49  ;;  %3389 = vmatpush.msra.mxu2 %v8700_v33  ;;  %v8810_v38 = vand.u32 4294901760, %v351_v6  ;;  %v8873_v45 = vsub.f32 %v343_v44, %v8845_v8 }
 0x1d8   : > { %3303 = vmatpush.msra.mxu1 %v3302_v21  ;;  %3432 = vmatpush.msra.mxu3 %v8663_v14  ;;  %v3331_v21 = vsub.f32 %v8747_v12, %v10865_v5  ;;  %v8818_v5 = vsub.f32 %v359_v62, %v8789_v16  ;;  %v10877_v62 = vand.u32 4294901760, %v8803_v1 }
 0x1d9   : > { %3244 = vmatpush.msra.mxu0 %v8720_v19  ;;  %3392 = vmatpush.msra.mxu2 %v8713_v55  ;;  %v8837_v63 = vsub.f32 %v351_v6, %v8810_v38  ;;  %v3606_v6 = vsub.f32 %v8795_v37, %v10876_v30 }
 0x1da   : > { %3309 = vmatpush.msra.mxu1 %v3308_v24  ;;  %3434 = vmatpush.msra.mxu3 %v8672_v18  ;;  %v3337_v24 = vsub.f32 %v8761_v54, %v10868_v61  ;;  %v3332_v32 = vand.u32 4294901760, %v3331_v21  ;;  %v3343_v61 = vsub.f32 %v8776_v27, %v10871_v7  ;;  %v3349_v7 = vsub.f32 %v8787_v36, %v10873_v52 }
 0x1db   : > { %3246 = vmatpush.msra.mxu0 %v8731_v48  ;;  %3395 = vmatpush.msra.mxu2 %v8734_v3  ;;  %v3355_v41 = vsub.f32 %v8803_v1, %v10877_v62  ;;  %v11111_v30 = vand.u32 4294901760, %v8818_v5 }
 0x1dc   : > { %3315 = vmatpush.msra.mxu1 %v3314_v17  ;;  %3436 = vmatpush.msra.mxu3 %v8685_v35  ;;  %v8823_v17 = vand.u32 4294901760, %v347_v26  ;;  %v3338_v21 = vand.u32 4294901760, %v3337_v24  ;;  %v335_v24 = vld [vmem:[%s6461_s5 + $0x310] sm:$0xff]  ;;  %v3344_v52 = vand.u32 4294901760, %v3343_v61  ;;  %v3350_v61 = vand.u32 4294901760, %v3349_v7 }
 0x1dd   : > { %3248 = vmatpush.msra.mxu0 %v8744_v58  ;;  %3398 = vmatpush.msra.mxu2 %v8747_v12  ;;  %v3612_v62 = vsub.f32 %v8818_v5, %v11111_v30  ;;  %v8875_v39 = vand.u32 4294901760, %v335_v24  ;;  %v3356_v7 = vand.u32 4294901760, %v3355_v41  ;;  %v11113_v30 = vand.u32 4294901760, %v8832_v47  ;;  %v323_v41 = vld [vmem:[%s6461_s5 + $0x2b0] sm:$0xff] }
 0x1de   : > { %3321 = vmatpush.msra.mxu1 %v3320_v11  ;;  %3438 = vmatpush.msra.mxu3 %v8707_v49  ;;  %v339_v11 = vld [vmem:[%s6461_s5 + $0x330] sm:$0xff]  ;;  %v8916_v0 = vand.u32 4294901760, %v323_v41 }
 0x1df   : > { %3250 = vmatpush.msra.mxu0 %v8757_v46  ;;  %3401 = vmatpush.msra.mxu2 %v8761_v54  ;;  %v8861_v56 = vand.u32 4294901760, %v339_v11  ;;  %v3618_v44 = vsub.f32 %v8832_v47, %v11113_v30  ;;  %v3613_v30 = vand.u32 4294901760, %v3612_v62 }
 0x1e0   : > { %3327 = vmatpush.msra.mxu1 %v3326_v59  ;;  %3440 = vmatpush.msra.mxu3 %v8720_v19  ;;  %v8853_v59 = vsub.f32 %v347_v26, %v8823_v17  ;;  %v327_v26 = vld [vmem:[%s6461_s5 + $0x2d0] sm:$0xff] }
 0x1e1   : > { %3252 = vmatpush.msra.mxu0 %v8772_v13  ;;  %3404 = vmatpush.msra.mxu2 %v8776_v27  ;;  %v8887_v43 = vsub.f32 %v339_v11, %v8861_v56  ;;  %v8901_v11 = vsub.f32 %v335_v24, %v8875_v39  ;;  %v8903_v53 = vand.u32 4294901760, %v327_v26  ;;  %v3619_v62 = vand.u32 4294901760, %v3618_v44 }
 0x1e2   : > { %3333 = vmatpush.msra.mxu1 %v3332_v32  ;;  %3442 = vmatpush.msra.mxu3 %v8731_v48  ;;  %v331_v32 = vld [vmem:[%s6461_s5 + $0x2f0] sm:$0xff] }
 0x1e3   : > { %3459 = vmatpush.msrb.mxu0 %v3264_v51  ;;  %3407 = vmatpush.msra.mxu2 %v8787_v36  ;;  %v3607_v51 = vand.u32 4294901760, %v3606_v6  ;;  %v8889_v22 = vand.u32 4294901760, %v331_v32  ;;  %v8928_v44 = vsub.f32 %v327_v26, %v8903_v53  ;;  %v8941_v26 = vsub.f32 %v323_v41, %v8916_v0 }
 0x1e4   : > { %3339 = vmatpush.msra.mxu1 %v3338_v21  ;;  %3444 = vmatpush.msra.mxu3 %v8744_v58  ;;  %v3641_v21 = vand.u32 4294901760, %v8887_v43 }
 0x1e5   : > { %3463 = vmatpush.msrb.mxu0 %v11112_v4  ;;  %3410 = vmatpush.msra.mxu2 %v8803_v1  ;;  %v11114_v4 = vand.u32 4294901760, %v8626_v10  ;;  %v11116_v10 = vand.u32 4294901760, %v8638_v23  ;;  %v8914_v24 = vsub.f32 %v331_v32, %v8889_v22  ;;  %v11118_v23 = vand.u32 4294901760, %v8653_v25 }
 0x1e6   : > { %3345 = vmatpush.msra.mxu1 %v3344_v52  ;;  %3446 = vmatpush.msra.mxu3 %v8757_v46  ;;  %v11115_v52 = vand.u32 4294901760, %v8837_v63  ;;  %v3647_v32 = vand.u32 4294901760, %v8901_v11  ;;  %v11120_v25 = vand.u32 4294901760, %v8667_v57  ;;  %v311_v57 = vld [vmem:[%s6461_s5 + $0x250] sm:$0xff]  ;;  %v3659_v41 = vand.u32 4294901760, %v8928_v44 }
 0x1e7   : > { %3467 = vmatpush.msrb.mxu0 %v11114_v4  ;;  %3563 = vmatpush.msrb.mxu2 %v8768_v60  ;;  %v11117_v4 = vand.u32 4294901760, %v8853_v59 }
 0x1e8   : > { %v3624_v6 = vsub.f32 %v8837_v63, %v11115_v52  ;;  %3351 = vmatpush.msra.mxu1 %v3350_v61  ;;  %3448 = vmatpush.msra.mxu3 %v8772_v13  ;;  %v319_v52 = vld [vmem:[%s6461_s5 + $0x290] sm:$0xff] }
 0x1e9   : > { %3471 = vmatpush.msrb.mxu0 %v11116_v10  ;;  %3565 = vmatpush.msrb.mxu2 %v8789_v16  ;;  %v3630_v61 = vsub.f32 %v8853_v59, %v11117_v4  ;;  %v8930_v4 = vand.u32 4294901760, %v319_v52 }
 0x1ea   : > { %3608 = vmatpush.msrb.mxu3 %v3607_v51  ;;  %3357 = vmatpush.msra.mxu1 %v3356_v7  ;;  %v3625_v10 = vand.u32 4294901760, %v3624_v6  ;;  %v11119_v51 = vand.u32 4294901760, %v8873_v45  ;;  %v3642_v6 = vsub.f32 %v8887_v43, %v3641_v21 }
 0x1eb   : > { %3475 = vmatpush.msrb.mxu0 %v11118_v23  ;;  %3567 = vmatpush.msrb.mxu2 %v8805_v40  ;;  %v8943_v23 = vand.u32 4294901760, %v315_v20 }
 0x1ec   : > { %3526 = vmatpush.msrb.mxu1 %v8584_v28  ;;  %3614 = vmatpush.msrb.mxu3 %v3613_v30  ;;  %v3636_v7 = vsub.f32 %v8873_v45, %v11119_v51  ;;  %v3631_v28 = vand.u32 4294901760, %v3630_v61  ;;  %v10880_v30 = vand.u32 4294901760, %v8914_v24  ;;  %v11121_v51 = vand.u32 4294901760, %v8681_v29 }
 0x1ed   : > { %3479 = vmatpush.msrb.mxu0 %v11120_v25  ;;  %3569 = vmatpush.msrb.mxu2 %v8810_v38  ;;  %v3648_v61 = vsub.f32 %v8901_v11, %v3647_v32  ;;  %v307_v25 = vld [vmem:[%s6461_s5 + $0x230] sm:$0xff]  ;;  %v11122_v29 = vand.u32 4294901760, %v8695_v9  ;;  %v11123_v9 = vand.u32 4294901760, %v8700_v33 }
 0x1ee   : > { %3528 = vmatpush.msrb.mxu1 %v8592_v50  ;;  %3620 = vmatpush.msrb.mxu3 %v3619_v62  ;;  %v3637_v50 = vand.u32 4294901760, %v3636_v7  ;;  %v8955_v62 = vsub.f32 %v319_v52, %v8930_v4  ;;  %v3654_v7 = vsub.f32 %v8914_v24, %v10880_v30  ;;  %v8969_v52 = vsub.f32 %v315_v20, %v8943_v23 }
 0x1ef   : > { %3483 = vmatpush.msrb.mxu0 %v11121_v51  ;;  %3571 = vmatpush.msrb.mxu2 %v8823_v17  ;;  %v3665_v51 = vand.u32 4294901760, %v8941_v26  ;;  %v11124_v20 = vand.u32 4294901760, %v8713_v55  ;;  %v11125_v55 = vand.u32 4294901760, %v8734_v3 }
 0x1f0   : > { %3530 = vmatpush.msrb.mxu1 %v8600_v42  ;;  %3626 = vmatpush.msrb.mxu3 %v3625_v10  ;;  %v8961_v42 = vand.u32 4294901760, %v311_v57  ;;  %v3643_v10 = vand.u32 4294901760, %v3642_v6  ;;  %v3660_v6 = vsub.f32 %v8928_v44, %v3659_v41  ;;  %v3671_v30 = vand.u32 4294901760, %v8955_v62 }
 0x1f1   : > { %3487 = vmatpush.msrb.mxu0 %v11122_v29  ;;  %3573 = vmatpush.msrb.mxu2 %v8845_v8  ;;  %v303_v29 = vld [vmem:[%s6461_s5 + $0x210] sm:$0xff]  ;;  %v3655_v33 = vand.u32 4294901760, %v3654_v7  ;;  %v11126_v7 = vand.u32 4294901760, %v8747_v12 }
 0x1f2   : > { %3532 = vmatpush.msrb.mxu1 %v8611_v34  ;;  %3632 = vmatpush.msrb.mxu3 %v3631_v28  ;;  %v8974_v34 = vand.u32 4294901760, %v307_v25  ;;  %v3649_v28 = vand.u32 4294901760, %v3648_v61  ;;  %v3677_v61 = vand.u32 4294901760, %v8969_v52 }
 0x1f3   : > { %3491 = vmatpush.msrb.mxu0 %v11123_v9  ;;  %3575 = vmatpush.msrb.mxu2 %v8861_v56  ;;  %v8993_v9 = vand.u32 4294901760, %v303_v29 }
 0x1f4   : > { %3534 = vmatpush.msrb.mxu1 %v8622_v15  ;;  %3638 = vmatpush.msrb.mxu3 %v3637_v50  ;;  %v8986_v15 = vsub.f32 %v311_v57, %v8961_v42  ;;  %v3666_v50 = vsub.f32 %v8941_v26, %v3665_v51  ;;  %v3661_v57 = vand.u32 4294901760, %v3660_v6  ;;  %v11127_v6 = vand.u32 4294901760, %v8761_v54 }
 0x1f5   : > { %3495 = vmatpush.msrb.mxu0 %v11124_v20  ;;  %3577 = vmatpush.msrb.mxu2 %v8875_v39  ;;  %v11128_v20 = vand.u32 4294901760, %v8776_v27 }
 0x1f6   : > { %3536 = vmatpush.msrb.mxu1 %v8634_v2  ;;  %3644 = vmatpush.msrb.mxu3 %v3643_v10  ;;  %v8999_v2 = vsub.f32 %v307_v25, %v8974_v34  ;;  %v3672_v10 = vsub.f32 %v8955_v62, %v3671_v30  ;;  %v3683_v3 = vand.u32 4294901760, %v8986_v15  ;;  %v3678_v25 = vsub.f32 %v8969_v52, %v3677_v61 }
 0x1f7   : > { %3499 = vmatpush.msrb.mxu0 %v11125_v55  ;;  %3579 = vmatpush.msrb.mxu2 %v8889_v22 }
 0x1f8   : > { %3538 = vmatpush.msrb.mxu1 %v8649_v31  ;;  %3650 = vmatpush.msrb.mxu3 %v3649_v28  ;;  %v3667_v31 = vand.u32 4294901760, %v3666_v50  ;;  %v9014_v28 = vsub.f32 %v303_v29, %v8993_v9  ;;  %v3673_v12 = vand.u32 4294901760, %v3672_v10  ;;  %v3684_v29 = vsub.f32 %v8986_v15, %v3683_v3  ;;  %v1895_v10 = vpop.f32.mrf.mxu0 }
 0x1f9   : > { %3503 = vmatpush.msrb.mxu0 %v11126_v7  ;;  %3581 = vmatpush.msrb.mxu2 %v8903_v53  ;;  %v3679_v54 = vand.u32 4294901760, %v3678_v25  ;;  %v11133_v7 = vld [vmem:[#allocation15_spill] sm:$0xff]  ;;  %v2050_v25 = vpop.f32.mrf.mxu2 }
 0x1fa   : > { %3540 = vmatpush.msrb.mxu1 %v8663_v14  ;;  %3656 = vmatpush.msrb.mxu3 %v3655_v33  ;;  %v3689_v14 = vand.u32 4294901760, %v8999_v2  ;;  %v11129_v33 = vand.u32 4294901760, %v8787_v36  ;;  %v3685_v50 = vand.u32 4294901760, %v3684_v29  ;;  %v11131_v36 = vld [vmem:[#allocation17_spill] sm:$0xff]  ;;  %v11140_v29 = vld [vmem:[#allocation16_spill] sm:$0xff] }
 0x1fb   : > { %3507 = vmatpush.msrb.mxu0 %v11127_v6  ;;  %3583 = vmatpush.msrb.mxu2 %v8916_v0  ;;  %v11135_v6 = vld [vmem:[#allocation13_spill] sm:$0xff] }
 0x1fc   : > { %3542 = vmatpush.msrb.mxu1 %v8672_v18  ;;  %3662 = vmatpush.msrb.mxu3 %v3661_v57  ;;  %v3695_v18 = vand.u32 4294901760, %v9014_v28  ;;  %v3690_v27 = vsub.f32 %v8999_v2, %v3689_v14 }
 0x1fd   : > { %3511 = vmatpush.msrb.mxu0 %v11128_v20  ;;  %3585 = vmatpush.msrb.mxu2 %v8930_v4  ;;  %v11138_v20 = vld [vmem:[#allocation20_spill] sm:$0xff] }
 0x1fe   : > { %3544 = vmatpush.msrb.mxu1 %v8685_v35  ;;  %3668 = vmatpush.msrb.mxu3 %v3667_v31  ;;  %v11130_v35 = vand.u32 4294901760, %v8803_v1  ;;  %v3691_v55 = vand.u32 4294901760, %v3690_v27  ;;  %v11132_v1 = vld [vmem:[#allocation14_spill] sm:$0xff]  ;;  %v11134_v31 = vand.u32 4294901760, %v8795_v37 }
 0x1ff   : > { %3515 = vmatpush.msrb.mxu0 %v11129_v33  ;;  %3587 = vmatpush.msrb.mxu2 %v8943_v23 }
 0x200   : > { %3546 = vmatpush.msrb.mxu1 %v8707_v49  ;;  %3674 = vmatpush.msrb.mxu3 %v3673_v12  ;;  %v3696_v49 = vsub.f32 %v9014_v28, %v3695_v18 }
 0x201   : > { %3519 = vmatpush.msrb.mxu0 %v11130_v35  ;;  %3589 = vmatpush.msrb.mxu2 %v8961_v42  ;;  %v11144_v35 = vld [vmem:[#allocation18_spill] sm:$0xff] }
 0x202   : > { %3548 = vmatpush.msrb.mxu1 %v8720_v19  ;;  %3680 = vmatpush.msrb.mxu3 %v3679_v54  ;;  %v1996_v19 = vpop.f32.mrf.mxu1  ;;  %v3697_v57 = vand.u32 4294901760, %v3696_v49  ;;  %v11142_v54 = vand.u32 4294901760, %v8873_v45 }
 0x203   : > { %3258 = vmatmul.f32.vlgmr.msra.gmra.mxu0 %v11131_v36  ;;  %3591 = vmatpush.msrb.mxu2 %v8974_v34  ;;  %v443_v36 = vld [vmem:[%s6461_s5 + $0x670] sm:$0xff] }
 0x204   : > { %3550 = vmatpush.msrb.mxu1 %v8731_v48  ;;  %3706 = vmatpush.msra.mxu0 %v8795_v37  ;;  %v1997_v48 = vadd.f32 %v1996_v19, %v1895_v10  ;;  %v2089_v37 = vpop.f32.mrf.mxu3  ;;  %v395_v10 = vld [vmem:[%s6461_s5 + $0x4f0] sm:$0xff] }
 0x205   : > { %3686 = vmatpush.msrb.mxu3 %v3685_v50  ;;  %3413 = vmatmul.f32.vlgmr.msra.gmra.mxu2 %v11132_v1 }
 0x206   : > { %3709 = vmatpush.msra.mxu0 %v8818_v5  ;;  %3552 = vmatpush.msrb.mxu1 %v8744_v58  ;;  %v11136_v58 = vand.u32 4294901760, %v8818_v5  ;;  %v2051_v12 = vadd.f32 %v2050_v25, %v1997_v48  ;;  %v11139_v5 = vand.u32 4294901760, %v8837_v63 }
 0x207   : > { %3593 = vmatpush.msrb.mxu2 %v8993_v9  ;;  %3692 = vmatpush.msrb.mxu3 %v3691_v55  ;;  %v399_v55 = vld [vmem:[%s6461_s5 + $0x510] sm:$0xff] }
 0x208   : > { %3452 = vmatmul.f32.vlgmr.msra.gmra.mxu3 %v11133_v7  ;;  %3712 = vmatpush.msra.mxu0 %v8832_v47 }
 0x209   : > { %3800 = vmatpush.msra.mxu2 %v11134_v31  ;;  %3554 = vmatpush.msrb.mxu1 %v8757_v46  ;;  %v11137_v46 = vand.u32 4294901760, %v8832_v47  ;;  %v11141_v47 = vand.u32 4294901760, %v8853_v59 }
 0x20a   : > { %3698 = vmatpush.msrb.mxu3 %v3697_v57  ;;  %3359 = vmatmul.f32.vlgmr.msra.gmra.mxu1 %v11135_v6 }
 0x20b   : > { %3715 = vmatpush.msra.mxu0 %v8837_v63  ;;  %3804 = vmatpush.msra.mxu2 %v11136_v58 }
 0x20c   : > { %3867 = vmatpush.msra.mxu3 %v8768_v60  ;;  %3556 = vmatpush.msrb.mxu1 %v8772_v13  ;;  %v2090_v13 = vadd.f32 %v2089_v37, %v2051_v12  ;;  %v391_v12 = vld [vmem:[%s6461_s5 + $0x4d0] sm:$0xff] }
 0x20d   : > { %3718 = vmatpush.msra.mxu0 %v8853_v59  ;;  %3808 = vmatpush.msra.mxu2 %v11137_v46  ;;  %v2337_v59 = vpop.f32.mrf.mxu3 }
 0x20e   : > { %3759 = vmatpush.msra.mxu1 %v8768_v60  ;;  %3869 = vmatpush.msra.mxu3 %v8789_v16  ;;  %v2158_v60 = vpop.f32.mrf.mxu0 }
 0x20f   : > { %3599 = vmatmul.f32.vlgmr.msrb.gmra.mxu2 %v11138_v20  ;;  %3721 = vmatpush.msra.mxu0 %v8873_v45  ;;  %v2159_v63 = vadd.f32 %v2158_v60, %v2090_v13  ;;  %v11143_v45 = vand.u32 4294901760, %v8914_v24  ;;  %v9202_v13 = vand.u32 4294901760, %v395_v10 }
 0x210   : > { %3761 = vmatpush.msra.mxu1 %v8789_v16  ;;  %3812 = vmatpush.msra.mxu2 %v11139_v5  ;;  %v2195_v16 = vpop.f32.mrf.mxu1 }
 0x211   : > { %3871 = vmatpush.msra.mxu3 %v8805_v40  ;;  %3521 = vmatmul.f32.vlgmr.msrb.gmra.mxu0 %v11135_v6 }
 0x212   : > { %3700 = vmatmul.f32.vlgmr.msrb.gmra.mxu3 %v11140_v29  ;;  %3724 = vmatpush.msra.mxu0 %v8887_v43  ;;  %v427_v43 = vld [vmem:[%s6461_s5 + $0x5f0] sm:$0xff] }
 0x213   : > { %3763 = vmatpush.msra.mxu1 %v8805_v40  ;;  %3816 = vmatpush.msra.mxu2 %v11141_v47  ;;  %v2196_v40 = vadd.f32 %v2195_v16, %v2159_v63  ;;  %v387_v63 = vld [vmem:[%s6461_s5 + $0x4b0] sm:$0xff] }
 0x214   : > { %3873 = vmatpush.msra.mxu3 %v8810_v38  ;;  %3558 = vmatmul.f32.vlgmr.msrb.gmra.mxu1 %v11135_v6 }
 0x215   : > { %3727 = vmatpush.msra.mxu0 %v8901_v11  ;;  %3765 = vmatpush.msra.mxu1 %v8810_v38  ;;  %v2236_v38 = vpop.f32.mrf.mxu2  ;;  %v2536_v19 = vpop.f32.mrf.mxu3 }
 0x216   : > { %3820 = vmatpush.msra.mxu2 %v11142_v54  ;;  %3875 = vmatpush.msra.mxu3 %v8823_v17  ;;  %v2391_v11 = vpop.f32.mrf.mxu0 }
 0x217   : > { %3730 = vmatpush.msra.mxu0 %v8914_v24  ;;  %3767 = vmatpush.msra.mxu1 %v8823_v17  ;;  %v2237_v17 = vadd.f32 %v2236_v38, %v2196_v40  ;;  %v9216_v40 = vand.u32 4294901760, %v391_v12 }
 0x218   : > { %3824 = vmatpush.msra.mxu2 %v3641_v21  ;;  %3877 = vmatpush.msra.mxu3 %v8845_v8  ;;  %v419_v21 = vld [vmem:[%s6461_s5 + $0x5b0] sm:$0xff] }
 0x219   : > { %3733 = vmatpush.msra.mxu0 %v8928_v44  ;;  %3769 = vmatpush.msra.mxu1 %v8845_v8  ;;  %v423_v8 = vld [vmem:[%s6461_s5 + $0x5d0] sm:$0xff]  ;;  %v2338_v24 = vadd.f32 %v2337_v59, %v2237_v17  ;;  %v2430_v44 = vpop.f32.mrf.mxu1 }
 0x21a   : > { %3828 = vmatpush.msra.mxu2 %v3647_v32  ;;  %3879 = vmatpush.msra.mxu3 %v8861_v56  ;;  %v415_v32 = vld [vmem:[%s6461_s5 + $0x590] sm:$0xff] }
 0x21b   : > { %3736 = vmatpush.msra.mxu0 %v8941_v26  ;;  %3771 = vmatpush.msra.mxu1 %v8861_v56  ;;  %v9108_v56 = vand.u32 4294901760, %v427_v43  ;;  %v383_v17 = vld [vmem:[%s6461_s5 + $0x490] sm:$0xff] }
 0x21c   : > { %3832 = vmatpush.msra.mxu2 %v11143_v45  ;;  %3881 = vmatpush.msra.mxu3 %v8875_v39  ;;  %v11145_v45 = vld [vmem:[#allocation19_spill] sm:$0xff] }
 0x21d   : > { %3739 = vmatpush.msra.mxu0 %v8955_v62  ;;  %3773 = vmatpush.msra.mxu1 %v8875_v39  ;;  %v9116_v39 = vand.u32 4294901760, %v423_v8  ;;  %v9127_v26 = vsub.f32 %v427_v43, %v9108_v56  ;;  %v407_v62 = vld [vmem:[%s6461_s5 + $0x550] sm:$0xff] }
 0x21e   : > { %3836 = vmatpush.msra.mxu2 %v3659_v41  ;;  %3883 = vmatpush.msra.mxu3 %v8889_v22  ;;  %v411_v41 = vld [vmem:[%s6461_s5 + $0x570] sm:$0xff]  ;;  %v9154_v50 = vand.u32 4294901760, %v407_v62  ;;  %v2577_v48 = vpop.f32.mrf.mxu0 }
 0x21f   : > { %3742 = vmatpush.msra.mxu0 %v8969_v52  ;;  %3775 = vmatpush.msra.mxu1 %v8889_v22  ;;  %v9124_v22 = vand.u32 4294901760, %v419_v21  ;;  %v9143_v27 = vand.u32 4294901760, %v411_v41  ;;  %v10893_v52 = vand.u32 4294901760, %v9127_v26 }
 0x220   : > { %3840 = vmatpush.msra.mxu2 %v3665_v51  ;;  %3885 = vmatpush.msra.mxu3 %v8903_v53  ;;  %v2392_v51 = vadd.f32 %v2391_v11, %v2338_v24  ;;  %v9232_v24 = vsub.f32 %v395_v10, %v9202_v13 }
 0x221   : > { %3745 = vmatpush.msra.mxu0 %v8986_v15  ;;  %3777 = vmatpush.msra.mxu1 %v8903_v53  ;;  %v9135_v53 = vand.u32 4294901760, %v415_v32  ;;  %v2678_v37 = vpop.f32.mrf.mxu1 }
 0x222   : > { %3844 = vmatpush.msra.mxu2 %v3671_v30  ;;  %3887 = vmatpush.msra.mxu3 %v8916_v0  ;;  %v9138_v30 = vsub.f32 %v423_v8, %v9116_v39  ;;  %v2431_v33 = vadd.f32 %v2430_v44, %v2392_v51  ;;  %v379_v44 = vld [vmem:[%s6461_s5 + $0x470] sm:$0xff]  ;;  %v9241_v51 = vand.u32 4294901760, %v383_v17  ;;  %v10883_v10 = vand.u32 4294901760, %v9232_v24 }
 0x223   : > { %3748 = vmatpush.msra.mxu0 %v8999_v2  ;;  %3779 = vmatpush.msra.mxu1 %v8916_v0  ;;  %v2499_v0 = vpop.f32.mrf.mxu2  ;;  %v3947_v2 = vsub.f32 %v9127_v26, %v10893_v52  ;;  %v471_v52 = vld [vmem:[%s6461_s5 + $0x750] sm:$0xff] }
 0x224   : > { %3848 = vmatpush.msra.mxu2 %v3677_v61  ;;  %3889 = vmatpush.msra.mxu3 %v8930_v4  ;;  %v9150_v61 = vsub.f32 %v419_v21, %v9124_v22  ;;  %v10892_v15 = vand.u32 4294901760, %v9138_v30  ;;  %v2500_v49 = vadd.f32 %v2499_v0, %v2431_v33  ;;  %v9228_v21 = vand.u32 4294901760, %v387_v63 }
 0x225   : > { %3751 = vmatpush.msra.mxu0 %v9014_v28  ;;  %3781 = vmatpush.msra.mxu1 %v8930_v4  ;;  %v403_v4 = vld [vmem:[%s6461_s5 + $0x530] sm:$0xff]  ;;  %v3948_v46 = vand.u32 4294901760, %v3947_v2  ;;  %v9245_v33 = vsub.f32 %v391_v12, %v9216_v40  ;;  %v9254_v2 = vand.u32 4294901760, %v379_v44 }
 0x226   : > { %3852 = vmatpush.msra.mxu2 %v3683_v3  ;;  %3891 = vmatpush.msra.mxu3 %v8943_v23  ;;  %v9162_v3 = vsub.f32 %v415_v32, %v9135_v53  ;;  %v10891_v57 = vand.u32 4294901760, %v9150_v61  ;;  %v3953_v28 = vsub.f32 %v9138_v30, %v10892_v15  ;;  %v2537_v25 = vadd.f32 %v2536_v19, %v2500_v49  ;;  %v375_v49 = vld [vmem:[%s6461_s5 + $0x450] sm:$0xff] }
 0x227   : > { %3754 = vmatmul.f32.vlgmr.msra.gmra.mxu0 %v11144_v35  ;;  %3783 = vmatpush.msra.mxu1 %v8943_v23  ;;  %v9167_v23 = vsub.f32 %v411_v41, %v9143_v27  ;;  %v467_v15 = vld [vmem:[%s6461_s5 + $0x730] sm:$0xff]  ;;  %v9372_v35 = vand.u32 4294901760, %v471_v52 }
 0x228   : > { %3904 = vmatpush.msrb.mxu0 %v9108_v56  ;;  %3856 = vmatpush.msra.mxu2 %v3689_v14  ;;  %v9176_v14 = vand.u32 4294901760, %v403_v4  ;;  %v10890_v31 = vand.u32 4294901760, %v9162_v3  ;;  %v3959_v5 = vsub.f32 %v9150_v61, %v10891_v57  ;;  %v3954_v16 = vand.u32 4294901760, %v3953_v28 }
 0x229   : > { %3893 = vmatpush.msra.mxu3 %v8961_v42  ;;  %3785 = vmatpush.msra.mxu1 %v8961_v42  ;;  %v9182_v42 = vsub.f32 %v407_v62, %v9154_v50  ;;  %v10888_v58 = vand.u32 4294901760, %v9167_v23  ;;  %v9389_v6 = vand.u32 4294901760, %v467_v15  ;;  %v9401_v20 = vsub.f32 %v471_v52, %v9372_v35 }
 0x22a   : > { %3906 = vmatpush.msrb.mxu0 %v9116_v39  ;;  %3860 = vmatpush.msra.mxu2 %v3695_v18  ;;  %v9190_v18 = vand.u32 4294901760, %v399_v55  ;;  %v9205_v60 = vsub.f32 %v403_v4, %v9176_v14  ;;  %v3965_v54 = vsub.f32 %v9162_v3, %v10890_v31  ;;  %v3960_v59 = vand.u32 4294901760, %v3959_v5 }
 0x22b   : > { %3895 = vmatpush.msra.mxu3 %v8974_v34  ;;  %3862 = vmatmul.f32.vlgmr.msra.gmra.mxu2 %v11140_v29  ;;  %v10886_v47 = vand.u32 4294901760, %v9182_v42  ;;  %v2732_v8 = vpop.f32.mrf.mxu2  ;;  %v9270_v5 = vsub.f32 %v383_v17, %v9241_v51  ;;  %v9281_v17 = vsub.f32 %v379_v44, %v9254_v2  ;;  %v9416_v1 = vsub.f32 %v467_v15, %v9389_v6 }
 0x22c   : > { %3908 = vmatpush.msrb.mxu0 %v9124_v22  ;;  %4047 = vmatpush.msrb.mxu2 %v9127_v26  ;;  %v9219_v38 = vsub.f32 %v399_v55, %v9190_v18  ;;  %v10885_v11 = vand.u32 4294901760, %v9205_v60  ;;  %v3966_v41 = vand.u32 4294901760, %v3965_v54  ;;  %v2771_v55 = vpop.f32.mrf.mxu3 }
 0x22d   : > { %3787 = vmatpush.msra.mxu1 %v8974_v34  ;;  %3897 = vmatpush.msra.mxu3 %v8993_v9  ;;  %v2578_v34 = vadd.f32 %v2577_v48, %v2537_v25  ;;  %v3977_v32 = vsub.f32 %v9182_v42, %v10886_v47  ;;  %v9258_v48 = vsub.f32 %v387_v63, %v9228_v21  ;;  %v2840_v25 = vpop.f32.mrf.mxu0  ;;  %v10887_v44 = vand.u32 4294901760, %v9270_v5 }
 0x22e   : > { %3899 = vmatmul.f32.vlgmr.msra.gmra.mxu3 %v11140_v29  ;;  %3910 = vmatpush.msrb.mxu0 %v9135_v53  ;;  %v10884_v62 = vand.u32 4294901760, %v9219_v38  ;;  %v3983_v19 = vsub.f32 %v9205_v60, %v10885_v11  ;;  %v479_v11 = vld [vmem:[%s6461_s5 + $0x790] sm:$0xff] }
 0x22f   : > { %4050 = vmatpush.msrb.mxu2 %v9138_v30  ;;  %4100 = vmatpush.msrb.mxu3 %v9108_v56  ;;  %v2679_v43 = vadd.f32 %v2678_v37, %v2578_v34  ;;  %v3978_v28 = vand.u32 4294901760, %v3977_v32  ;;  %v9266_v37 = vand.u32 4294901760, %v375_v49  ;;  %v371_v34 = vld [vmem:[%s6461_s5 + $0x430] sm:$0xff] }
 0x230   : > { %3789 = vmatpush.msra.mxu1 %v8993_v9  ;;  %3912 = vmatpush.msrb.mxu0 %v9143_v27  ;;  %v3971_v9 = vsub.f32 %v9167_v23, %v10888_v58  ;;  %v3989_v12 = vsub.f32 %v9219_v38, %v10884_v62  ;;  %v3984_v54 = vand.u32 4294901760, %v3983_v19  ;;  %v9286_v32 = vand.u32 4294901760, %v371_v34 }
 0x231   : > { %3793 = vmatmul.f32.vlgmr.msra.gmra.mxu1 %v11145_v45  ;;  %4053 = vmatpush.msrb.mxu2 %v9150_v61  ;;  %v2733_v0 = vadd.f32 %v2732_v8, %v2679_v43  ;;  %v3995_v43 = vsub.f32 %v9232_v24, %v10883_v10  ;;  %v491_v8 = vld [vmem:[%s6461_s5 + $0x7f0] sm:$0xff] }
 0x232   : > { %3949 = vmatpush.msrb.mxu1 %v3948_v46  ;;  %4102 = vmatpush.msrb.mxu3 %v9116_v39  ;;  %v3972_v4 = vand.u32 4294901760, %v3971_v9  ;;  %v10881_v46 = vand.u32 4294901760, %v9245_v33  ;;  %v10882_v9 = vand.u32 4294901760, %v9258_v48 }
 0x233   : > { %3914 = vmatpush.msrb.mxu0 %v9154_v50  ;;  %4056 = vmatpush.msrb.mxu2 %v9162_v3  ;;  %v2772_v63 = vadd.f32 %v2771_v55, %v2733_v0  ;;  %v3990_v0 = vand.u32 4294901760, %v3989_v12  ;;  %v9295_v55 = vsub.f32 %v375_v49, %v9266_v37  ;;  %v3996_v12 = vand.u32 4294901760, %v3995_v43 }
 0x234   : > { %3955 = vmatpush.msrb.mxu1 %v3954_v16  ;;  %4104 = vmatpush.msrb.mxu3 %v9124_v22  ;;  %v2877_v16 = vpop.f32.mrf.mxu1  ;;  %v4007_v49 = vsub.f32 %v9258_v48, %v10882_v9  ;;  %v4013_v9 = vsub.f32 %v9270_v5, %v10887_v44 }
 0x235   : > { %3916 = vmatpush.msrb.mxu0 %v9176_v14  ;;  %4059 = vmatpush.msrb.mxu2 %v9167_v23  ;;  %v10894_v10 = vand.u32 4294901760, %v9295_v55 }
 0x236   : > { %3961 = vmatpush.msrb.mxu1 %v3960_v59  ;;  %4106 = vmatpush.msrb.mxu3 %v9135_v53  ;;  %v2841_v59 = vadd.f32 %v2840_v25, %v2772_v63  ;;  %v9299_v25 = vand.u32 4294901760, %v491_v8  ;;  %v2918_v63 = vpop.f32.mrf.mxu2 }
 0x237   : > { %3918 = vmatpush.msrb.mxu0 %v9190_v18  ;;  %4062 = vmatpush.msrb.mxu2 %v9182_v42 }
 0x238   : > { %3967 = vmatpush.msrb.mxu1 %v3966_v41  ;;  %4108 = vmatpush.msrb.mxu3 %v9143_v27  ;;  %v367_v41 = vld [vmem:[%s6461_s5 + $0x410] sm:$0xff]  ;;  %v2878_v19 = vadd.f32 %v2877_v16, %v2841_v59  ;;  %v10889_v16 = vand.u32 4294901760, %v9281_v17  ;;  %v9312_v59 = vsub.f32 %v371_v34, %v9286_v32  ;;  %v9326_v34 = vsub.f32 %v491_v8, %v9299_v25 }
 0x239   : > { %3920 = vmatpush.msrb.mxu0 %v9202_v13  ;;  %4065 = vmatpush.msrb.mxu2 %v9205_v60 }
 0x23a   : > { %3973 = vmatpush.msrb.mxu1 %v3972_v4  ;;  %4110 = vmatpush.msrb.mxu3 %v9154_v50  ;;  %v4001_v4 = vsub.f32 %v9245_v33, %v10881_v46  ;;  %v9306_v46 = vand.u32 4294901760, %v367_v41  ;;  %v2919_v47 = vadd.f32 %v2918_v63, %v2878_v19  ;;  %v4019_v44 = vsub.f32 %v9281_v17, %v10889_v16  ;;  %v475_v63 = vld [vmem:[%s6461_s5 + $0x770] sm:$0xff] }
 0x23b   : > { %3922 = vmatpush.msrb.mxu0 %v9216_v40  ;;  %4068 = vmatpush.msrb.mxu2 %v9219_v38  ;;  %v10895_v8 = vand.u32 4294901760, %v9312_v59 }
 0x23c   : > { %3979 = vmatpush.msrb.mxu1 %v3978_v28  ;;  %4112 = vmatpush.msrb.mxu3 %v9176_v14  ;;  %v487_v28 = vld [vmem:[%s6461_s5 + $0x7d0] sm:$0xff]  ;;  %v4002_v43 = vand.u32 4294901760, %v4001_v4  ;;  %v4008_v4 = vand.u32 4294901760, %v4007_v49  ;;  %v9333_v58 = vsub.f32 %v367_v41, %v9306_v46  ;;  %v4014_v49 = vand.u32 4294901760, %v4013_v9 }
 0x23d   : > { %3924 = vmatpush.msrb.mxu0 %v9228_v21  ;;  %4071 = vmatpush.msrb.mxu2 %v9232_v24  ;;  %v9320_v62 = vand.u32 4294901760, %v487_v28  ;;  %v4025_v41 = vsub.f32 %v9295_v55, %v10894_v10  ;;  %v4020_v9 = vand.u32 4294901760, %v4019_v44 }
 0x23e   : > { %3985 = vmatpush.msrb.mxu1 %v3984_v54  ;;  %4114 = vmatpush.msrb.mxu3 %v9190_v18  ;;  %v483_v54 = vld [vmem:[%s6461_s5 + $0x7b0] sm:$0xff]  ;;  %v3073_v16 = vpop.f32.mrf.mxu0  ;;  %v11149_v29 = vand.u32 4294901760, %v9333_v58 }
 0x23f   : > { %3926 = vmatpush.msrb.mxu0 %v9241_v51  ;;  %4074 = vmatpush.msrb.mxu2 %v9245_v33  ;;  %v9335_v19 = vand.u32 4294901760, %v483_v54  ;;  %v9348_v31 = vsub.f32 %v487_v28, %v9320_v62  ;;  %v4026_v44 = vand.u32 4294901760, %v4025_v41  ;;  %v463_v41 = vld [vmem:[%s6461_s5 + $0x710] sm:$0xff] }
 0x240   : > { %3991 = vmatpush.msrb.mxu1 %v3990_v0  ;;  %4116 = vmatpush.msrb.mxu3 %v9202_v13  ;;  %v3019_v0 = vpop.f32.mrf.mxu3  ;;  %v9403_v7 = vand.u32 4294901760, %v463_v41 }
 0x241   : > { %3928 = vmatpush.msrb.mxu0 %v9254_v2  ;;  %4077 = vmatpush.msrb.mxu2 %v9258_v48  ;;  %v3020_v57 = vadd.f32 %v3019_v0, %v2919_v47  ;;  %v9359_v28 = vsub.f32 %v483_v54, %v9335_v19  ;;  %v4031_v0 = vsub.f32 %v9312_v59, %v10895_v8  ;;  %v11148_v54 = vand.u32 4294901760, %v9127_v26 }
 0x242   : > { %3997 = vmatpush.msrb.mxu1 %v3996_v12  ;;  %4118 = vmatpush.msrb.mxu3 %v9216_v40  ;;  %v9341_v12 = vand.u32 4294901760, %v479_v11 }
 0x243   : > { %3930 = vmatpush.msrb.mxu0 %v9266_v37  ;;  %4080 = vmatpush.msrb.mxu2 %v9270_v5  ;;  %v3074_v47 = vadd.f32 %v3073_v16, %v3020_v57  ;;  %v11146_v57 = vld [vmem:[#allocation23_spill] sm:$0xff]  ;;  %v11147_v16 = vand.u32 4294901760, %v9326_v34 }
 0x244   : > { %4003 = vmatpush.msrb.mxu1 %v4002_v43  ;;  %4120 = vmatpush.msrb.mxu3 %v9228_v21  ;;  %v9353_v43 = vand.u32 4294901760, %v475_v63 }
 0x245   : > { %3932 = vmatpush.msrb.mxu0 %v9286_v32  ;;  %4083 = vmatpush.msrb.mxu2 %v9281_v17 }
 0x246   : > { %4009 = vmatpush.msrb.mxu1 %v4008_v4  ;;  %4122 = vmatpush.msrb.mxu3 %v9241_v51  ;;  %v9367_v4 = vsub.f32 %v479_v11, %v9341_v12  ;;  %v4288_v11 = vsub.f32 %v9326_v34, %v11147_v16 }
 0x247   : > { %3934 = vmatpush.msrb.mxu0 %v9306_v46  ;;  %4086 = vmatpush.msrb.mxu2 %v9295_v55 }
 0x248   : > { %4015 = vmatpush.msrb.mxu1 %v4014_v49  ;;  %4124 = vmatpush.msrb.mxu3 %v9254_v2  ;;  %v3112_v10 = vpop.f32.mrf.mxu1  ;;  %v3181_v45 = vpop.f32.mrf.mxu2  ;;  %v9380_v49 = vsub.f32 %v475_v63, %v9353_v43 }
 0x249   : > { %3940 = vmatmul.f32.vlgmr.msrb.gmra.mxu0 %v11146_v57  ;;  %4089 = vmatpush.msrb.mxu2 %v9312_v59  ;;  %v3113_v8 = vadd.f32 %v3112_v10, %v3074_v47  ;;  %v4037_v57 = vsub.f32 %v9333_v58, %v11149_v29  ;;  %v4032_v10 = vand.u32 4294901760, %v4031_v0  ;;  %v11151_v29 = vand.u32 4294901760, %v9348_v31 }
 0x24a   : > { %4141 = vmatpush.msra.mxu0 %v11148_v54  ;;  %4021 = vmatpush.msrb.mxu1 %v4020_v9  ;;  %v459_v54 = vld [vmem:[%s6461_s5 + $0x6f0] sm:$0xff]  ;;  %v11150_v9 = vand.u32 4294901760, %v9138_v30  ;;  %v10898_v30 = vand.u32 4294901760, %v9380_v49 }
 0x24b   : > { %4126 = vmatpush.msrb.mxu3 %v9266_v37  ;;  %4092 = vmatpush.msrb.mxu2 %v9333_v58  ;;  %v3182_v63 = vadd.f32 %v3181_v45, %v3113_v8  ;;  %v3218_v26 = vpop.f32.mrf.mxu3  ;;  %v4294_v16 = vsub.f32 %v9348_v31, %v11151_v29  ;;  %v11152_v45 = vld [vmem:[#allocation21_spill] sm:$0xff]  ;;  %v4289_v8 = vand.u32 4294901760, %v4288_v11  ;;  %v4038_v52 = vand.u32 4294901760, %v4037_v57  ;;  %v11156_v57 = vld [vmem:[#allocation22_spill] sm:$0xff] }
 0x24c   : > { %4145 = vmatpush.msra.mxu0 %v11150_v9  ;;  %4027 = vmatpush.msrb.mxu1 %v4026_v44  ;;  %v455_v44 = vld [vmem:[%s6461_s5 + $0x6d0] sm:$0xff]  ;;  %v11153_v9 = vand.u32 4294901760, %v9150_v61  ;;  %v11154_v29 = vand.u32 4294901760, %v9359_v28  ;;  %v11155_v11 = vand.u32 4294901760, %v9367_v4 }
 0x24d   : > { %4128 = vmatpush.msrb.mxu3 %v9286_v32  ;;  %4095 = vmatmul.f32.vlgmr.msrb.gmra.mxu2 %v11152_v45  ;;  %v3219_v0 = vadd.f32 %v3218_v26, %v3182_v63  ;;  %v9418_v45 = vand.u32 4294901760, %v459_v54  ;;  %v451_v63 = vld [vmem:[%s6461_s5 + $0x6b0] sm:$0xff]  ;;  %v11157_v26 = vand.u32 4294901760, %v9162_v3  ;;  %v11158_v3 = vand.u32 4294901760, %v9167_v23 }
 0x24e   : > { %4149 = vmatpush.msra.mxu0 %v11153_v9  ;;  %4245 = vmatpush.msra.mxu2 %v9299_v25  ;;  %v4300_v47 = vsub.f32 %v9359_v28, %v11154_v29  ;;  %v4306_v61 = vsub.f32 %v9367_v4, %v11155_v11  ;;  %v4295_v9 = vand.u32 4294901760, %v4294_v16  ;;  %v9431_v29 = vsub.f32 %v463_v41, %v9403_v7  ;;  %v447_v11 = vld [vmem:[%s6461_s5 + $0x690] sm:$0xff] }
 0x24f   : > { %4033 = vmatpush.msrb.mxu1 %v4032_v10  ;;  %4130 = vmatpush.msrb.mxu3 %v9306_v46  ;;  %5965 = vst [vmem:[%s8373_s18 + $0x8] sm:$0xff] %v3219_v0  ;;  %v9433_v10 = vand.u32 4294901760, %v455_v44  ;;  %v4312_v0 = vsub.f32 %v9380_v49, %v10898_v30  ;;  %v9444_v41 = vsub.f32 %v459_v54, %v9418_v45  ;;  %v9446_v15 = vand.u32 4294901760, %v451_v63 }
 0x250   : > { %4134 = vmatmul.f32.vlgmr.msrb.gmra.mxu3 %v11156_v57  ;;  %4153 = vmatpush.msra.mxu0 %v11157_v26  ;;  %v4301_v16 = vand.u32 4294901760, %v4300_v47  ;;  %v10899_v26 = vand.u32 4294901760, %v9416_v1  ;;  %v11159_v57 = vld [vmem:[#allocation12_spill] sm:$0xff]  ;;  %v11160_v23 = vand.u32 4294901760, %v9401_v20  ;;  %v11161_v30 = vand.u32 4294901760, %v9182_v42  ;;  %v439_v42 = vld [vmem:[%s6461_s5 + $0x650] sm:$0xff] }
 0x251   : > { %4247 = vmatpush.msra.mxu2 %v9320_v62  ;;  %4290 = vmatpush.msra.mxu3 %v4289_v8  ;;  %v4307_v8 = vand.u32 4294901760, %v4306_v61  ;;  %v9457_v54 = vsub.f32 %v455_v44, %v9433_v10  ;;  %v4313_v61 = vand.u32 4294901760, %v4312_v0  ;;  %v9470_v44 = vsub.f32 %v451_v63, %v9446_v15 }
 0x252   : > { %4039 = vmatpush.msrb.mxu1 %v4038_v52  ;;  %4157 = vmatpush.msra.mxu0 %v11158_v3  ;;  %v4318_v47 = vsub.f32 %v9401_v20, %v11160_v23  ;;  %v10900_v52 = vand.u32 4294901760, %v9431_v29  ;;  %v9459_v3 = vand.u32 4294901760, %v447_v11  ;;  %v9472_v23 = vand.u32 4294901760, %v443_v36 }
 0x253   : > { %4041 = vmatmul.f32.vlgmr.msrb.gmra.mxu1 %v11159_v57  ;;  %4249 = vmatpush.msra.mxu2 %v9335_v19  ;;  %v4341_v63 = vand.u32 4294901760, %v9457_v54 }
 0x254   : > { %4208 = vmatpush.msra.mxu1 %v9108_v56  ;;  %4296 = vmatpush.msra.mxu3 %v4295_v9  ;;  %v4324_v56 = vsub.f32 %v9416_v1, %v10899_v26  ;;  %v4335_v9 = vand.u32 4294901760, %v9444_v41  ;;  %v4330_v0 = vsub.f32 %v9431_v29, %v10900_v52  ;;  %v435_v26 = vld [vmem:[%s6461_s5 + $0x630] sm:$0xff] }
 0x255   : > { %4161 = vmatpush.msra.mxu0 %v11161_v30  ;;  %4251 = vmatpush.msra.mxu2 %v9341_v12  ;;  %v11162_v30 = vand.u32 4294901760, %v9205_v60  ;;  %v11163_v60 = vand.u32 4294901760, %v9219_v38  ;;  %v431_v52 = vld [vmem:[%s6461_s5 + $0x610] sm:$0xff]  ;;  %v11164_v38 = vand.u32 4294901760, %v9232_v24 }
 0x256   : > { %4210 = vmatpush.msra.mxu1 %v9116_v39  ;;  %4302 = vmatpush.msra.mxu3 %v4301_v16  ;;  %v4319_v39 = vand.u32 4294901760, %v4318_v47  ;;  %v9484_v16 = vsub.f32 %v447_v11, %v9459_v3  ;;  %v4347_v47 = vand.u32 4294901760, %v9470_v44  ;;  %v9498_v11 = vsub.f32 %v443_v36, %v9472_v23 }
 0x257   : > { %4165 = vmatpush.msra.mxu0 %v11162_v30  ;;  %4253 = vmatpush.msra.mxu2 %v9353_v43  ;;  %v9490_v30 = vand.u32 4294901760, %v439_v42  ;;  %v11165_v36 = vand.u32 4294901760, %v9245_v33  ;;  %v11166_v33 = vand.u32 4294901760, %v9258_v48 }
 0x258   : > { %4212 = vmatpush.msra.mxu1 %v9124_v22  ;;  %4308 = vmatpush.msra.mxu3 %v4307_v8  ;;  %v4325_v22 = vand.u32 4294901760, %v4324_v56  ;;  %v4336_v8 = vsub.f32 %v9444_v41, %v4335_v9  ;;  %v4353_v56 = vand.u32 4294901760, %v9484_v16 }
 0x259   : > { %4169 = vmatpush.msra.mxu0 %v11163_v60  ;;  %4255 = vmatpush.msra.mxu2 %v9372_v35  ;;  %v9504_v60 = vand.u32 4294901760, %v435_v26  ;;  %v9515_v24 = vsub.f32 %v439_v42, %v9490_v30 }
 0x25a   : > { %4214 = vmatpush.msra.mxu1 %v9135_v53  ;;  %4314 = vmatpush.msra.mxu3 %v4313_v61  ;;  %v4331_v53 = vand.u32 4294901760, %v4330_v0  ;;  %v4342_v61 = vsub.f32 %v9457_v54, %v4341_v63  ;;  %v4359_v0 = vand.u32 4294901760, %v9498_v11 }
 0x25b   : > { %4173 = vmatpush.msra.mxu0 %v11164_v38  ;;  %4257 = vmatpush.msra.mxu2 %v9389_v6  ;;  %v9517_v38 = vand.u32 4294901760, %v431_v52  ;;  %v9528_v42 = vsub.f32 %v435_v26, %v9504_v60  ;;  %v4365_v48 = vand.u32 4294901760, %v9515_v24 }
 0x25c   : > { %4216 = vmatpush.msra.mxu1 %v9143_v27  ;;  %4320 = vmatpush.msra.mxu3 %v4319_v39  ;;  %v4337_v27 = vand.u32 4294901760, %v4336_v8  ;;  %v4348_v39 = vsub.f32 %v9470_v44, %v4347_v47  ;;  %v11167_v8 = vand.u32 4294901760, %v9270_v5  ;;  %v4360_v26 = vsub.f32 %v9498_v11, %v4359_v0 }
 0x25d   : > { %4177 = vmatpush.msra.mxu0 %v11165_v36  ;;  %4259 = vmatpush.msra.mxu2 %v9403_v7  ;;  %v9539_v36 = vsub.f32 %v431_v52, %v9517_v38  ;;  %v4371_v5 = vand.u32 4294901760, %v9528_v42 }
 0x25e   : > { %4218 = vmatpush.msra.mxu1 %v9154_v50  ;;  %4326 = vmatpush.msra.mxu3 %v4325_v22  ;;  %v4343_v50 = vand.u32 4294901760, %v4342_v61  ;;  %v4354_v22 = vsub.f32 %v9484_v16, %v4353_v56  ;;  %v11169_v61 = vand.u32 4294901760, %v9295_v55  ;;  %v11171_v55 = vand.u32 4294901760, %v9333_v58 }
 0x25f   : > { %4181 = vmatpush.msra.mxu0 %v11166_v33  ;;  %4261 = vmatpush.msra.mxu2 %v9418_v45 }
 0x260   : > { %4220 = vmatpush.msra.mxu1 %v9176_v14  ;;  %4332 = vmatpush.msra.mxu3 %v4331_v53  ;;  %v4349_v14 = vand.u32 4294901760, %v4348_v39  ;;  %v11168_v53 = vand.u32 4294901760, %v9281_v17  ;;  %v4355_v52 = vand.u32 4294901760, %v4354_v22  ;;  %v4377_v17 = vand.u32 4294901760, %v9539_v36 }
 0x261   : > { %4185 = vmatpush.msra.mxu0 %v11167_v8  ;;  %4263 = vmatpush.msra.mxu2 %v9433_v10  ;;  %v11170_v39 = vand.u32 4294901760, %v9312_v59 }
 0x262   : > { %4222 = vmatpush.msra.mxu1 %v9190_v18  ;;  %4338 = vmatpush.msra.mxu3 %v4337_v27  ;;  %v4366_v18 = vsub.f32 %v9515_v24, %v4365_v48  ;;  %v4361_v27 = vand.u32 4294901760, %v4360_v26  ;;  %v4378_v59 = vsub.f32 %v9539_v36, %v4377_v17  ;;  %v260_v26 = vld [vmem:[%s6461_s5 + $0xb8] sm:$0xff] }
 0x263   : > { %4189 = vmatpush.msra.mxu0 %v11168_v53  ;;  %4265 = vmatpush.msra.mxu2 %v9446_v15 }
 0x264   : > { %4224 = vmatpush.msra.mxu1 %v9202_v13  ;;  %4344 = vmatpush.msra.mxu3 %v4343_v50  ;;  %v4372_v13 = vsub.f32 %v9528_v42, %v4371_v5  ;;  %v4379_v58 = vand.u32 4294901760, %v4378_v59  ;;  %v11175_v50 = vand.u32 4294901760, %v9348_v31  ;;  %v252_v59 = vld [vmem:[%s6461_s5 + $0x78] sm:$0xff] }
 0x265   : > { %4193 = vmatpush.msra.mxu0 %v11169_v61  ;;  %4267 = vmatpush.msra.mxu2 %v9459_v3 }
 0x266   : > { %4226 = vmatpush.msra.mxu1 %v9216_v40  ;;  %4350 = vmatpush.msra.mxu3 %v4349_v14  ;;  %v4367_v40 = vand.u32 4294901760, %v4366_v18  ;;  %v4373_v33 = vand.u32 4294901760, %v4372_v13  ;;  %v11183_v18 = vld [vmem:[#allocation26_spill] sm:$0xff]  ;;  %v9756_v13 = vand.u32 4294901760, %v260_v26 }
 0x267   : > { %4197 = vmatpush.msra.mxu0 %v11170_v39  ;;  %4269 = vmatpush.msra.mxu2 %v9472_v23 }
 0x268   : > { %4228 = vmatpush.msra.mxu1 %v9228_v21  ;;  %4356 = vmatpush.msra.mxu3 %v4355_v52  ;;  %v11172_v21 = vld [vmem:[#allocation27_spill] sm:$0xff] }
 0x269   : > { %4201 = vmatpush.msra.mxu0 %v11171_v55  ;;  %4271 = vmatpush.msra.mxu2 %v9490_v30 }
 0x26a   : > { %4230 = vmatpush.msra.mxu1 %v9241_v51  ;;  %4362 = vmatpush.msra.mxu3 %v4361_v27  ;;  %v11173_v51 = vand.u32 4294901760, %v9326_v34 }
 0x26b   : > { %4203 = vmatmul.f32.vlgmr.msra.gmra.mxu0 %v11159_v57  ;;  %4273 = vmatpush.msra.mxu2 %v9504_v60 }
 0x26c   : > { %4388 = vmatpush.msrb.mxu0 %v9326_v34  ;;  %4232 = vmatpush.msra.mxu1 %v9254_v2  ;;  %v11174_v2 = vld [vmem:[#allocation24_spill] sm:$0xff] }
 0x26d   : > { %4368 = vmatpush.msra.mxu3 %v4367_v40  ;;  %4275 = vmatpush.msra.mxu2 %v9517_v38 }
 0x26e   : > { %4391 = vmatpush.msrb.mxu0 %v9348_v31  ;;  %4234 = vmatpush.msra.mxu1 %v9266_v37  ;;  %v11176_v37 = vand.u32 4294901760, %v9359_v28  ;;  %v11177_v31 = vand.u32 4294901760, %v9367_v4 }
 0x26f   : > { %4374 = vmatpush.msra.mxu3 %v4373_v33  ;;  %4281 = vmatmul.f32.vlgmr.msra.gmra.mxu2 %v11172_v21 }
 0x270   : > { %4394 = vmatpush.msrb.mxu0 %v9359_v28  ;;  %4482 = vmatpush.msrb.mxu2 %v11173_v51 }
 0x271   : > { %4236 = vmatpush.msra.mxu1 %v9286_v32  ;;  %4380 = vmatpush.msra.mxu3 %v4379_v58  ;;  %v11179_v32 = vand.u32 4294901760, %v9401_v20 }
 0x272   : > { %4382 = vmatmul.f32.vlgmr.msra.gmra.mxu3 %v11174_v2  ;;  %4397 = vmatpush.msrb.mxu0 %v9367_v4 }
 0x273   : > { %4486 = vmatpush.msrb.mxu2 %v11175_v50  ;;  %4549 = vmatpush.msrb.mxu3 %v9299_v25 }
 0x274   : > { %4238 = vmatpush.msra.mxu1 %v9306_v46  ;;  %4400 = vmatpush.msrb.mxu0 %v9380_v49  ;;  %v11178_v46 = vand.u32 4294901760, %v9380_v49  ;;  %v280_v49 = vld [vmem:[%s6461_s5 + $0x158] sm:$0xff] }
 0x275   : > { %4240 = vmatmul.f32.vlgmr.msra.gmra.mxu1 %v11159_v57  ;;  %4490 = vmatpush.msrb.mxu2 %v11176_v37  ;;  %v316_v57 = vld [vmem:[%s6461_s5 + $0x278] sm:$0xff] }
 0x276   : > { %4441 = vmatpush.msrb.mxu1 %v9299_v25  ;;  %4551 = vmatpush.msrb.mxu3 %v9320_v62  ;;  %v11181_v25 = vand.u32 4294901760, %v9431_v29 }
 0x277   : > { %4403 = vmatpush.msrb.mxu0 %v9401_v20  ;;  %4494 = vmatpush.msrb.mxu2 %v11177_v31  ;;  %v296_v20 = vld [vmem:[%s6461_s5 + $0x1d8] sm:$0xff] }
 0x278   : > { %4443 = vmatpush.msrb.mxu1 %v9320_v62  ;;  %4553 = vmatpush.msrb.mxu3 %v9335_v19  ;;  %v11180_v62 = vand.u32 4294901760, %v9416_v1  ;;  %v9641_v34 = vand.u32 4294901760, %v296_v20  ;;  %v248_v31 = vld [vmem:[%s6461_s5 + $0x58] sm:$0xff] }
 0x279   : > { %4406 = vmatpush.msrb.mxu0 %v9416_v1  ;;  %4498 = vmatpush.msrb.mxu2 %v11178_v46  ;;  %v300_v1 = vld [vmem:[%s6461_s5 + $0x1f8] sm:$0xff] }
 0x27a   : > { %4445 = vmatpush.msrb.mxu1 %v9335_v19  ;;  %4555 = vmatpush.msrb.mxu3 %v9341_v12  ;;  %v9663_v4 = vsub.f32 %v296_v20, %v9641_v34  ;;  %v244_v20 = vld [vmem:[%s6461_s5 + $0x38] sm:$0xff] }
 0x27b   : > { %4409 = vmatpush.msrb.mxu0 %v9431_v29  ;;  %4502 = vmatpush.msrb.mxu2 %v11179_v32 }
 0x27c   : > { %4447 = vmatpush.msrb.mxu1 %v9341_v12  ;;  %4557 = vmatpush.msrb.mxu3 %v9353_v43 }
 0x27d   : > { %4412 = vmatpush.msrb.mxu0 %v9444_v41  ;;  %4506 = vmatpush.msrb.mxu2 %v11180_v62  ;;  %v276_v41 = vld [vmem:[%s6461_s5 + $0x138] sm:$0xff]  ;;  %v9780_v62 = vand.u32 4294901760, %v252_v59 }
 0x27e   : > { %4449 = vmatpush.msrb.mxu1 %v9353_v43  ;;  %4559 = vmatpush.msrb.mxu3 %v9372_v35  ;;  %v284_v43 = vld [vmem:[%s6461_s5 + $0x178] sm:$0xff] }
 0x27f   : > { %4415 = vmatpush.msrb.mxu0 %v9457_v54  ;;  %4510 = vmatpush.msrb.mxu2 %v11181_v25  ;;  %v9683_v54 = vand.u32 4294901760, %v280_v49  ;;  %v9783_v25 = vsub.f32 %v260_v26, %v9756_v13 }
 0x280   : > { %4451 = vmatpush.msrb.mxu1 %v9372_v35  ;;  %4561 = vmatpush.msrb.mxu3 %v9389_v6  ;;  %v9633_v35 = vand.u32 4294901760, %v300_v1 }
 0x281   : > { %4418 = vmatpush.msrb.mxu0 %v9470_v44  ;;  %4514 = vmatpush.msrb.mxu2 %v4335_v9  ;;  %v272_v44 = vld [vmem:[%s6461_s5 + $0x118] sm:$0xff] }
 0x282   : > { %4453 = vmatpush.msrb.mxu1 %v9389_v6  ;;  %4563 = vmatpush.msrb.mxu3 %v9403_v7  ;;  %v292_v6 = vld [vmem:[%s6461_s5 + $0x1b8] sm:$0xff]  ;;  %v9652_v12 = vsub.f32 %v300_v1, %v9633_v35 }
 0x283   : > { %4421 = vmatpush.msrb.mxu0 %v9484_v16  ;;  %4518 = vmatpush.msrb.mxu2 %v4341_v63  ;;  %v9649_v19 = vand.u32 4294901760, %v292_v6  ;;  %v9698_v63 = vand.u32 4294901760, %v276_v41 }
 0x284   : > { %4455 = vmatpush.msrb.mxu1 %v9403_v7  ;;  %4565 = vmatpush.msrb.mxu3 %v9418_v45  ;;  %v288_v7 = vld [vmem:[%s6461_s5 + $0x198] sm:$0xff] }
 0x285   : > { %4424 = vmatpush.msrb.mxu0 %v9498_v11  ;;  %4522 = vmatpush.msrb.mxu2 %v4347_v47  ;;  %v9660_v28 = vand.u32 4294901760, %v288_v7  ;;  %v9675_v29 = vsub.f32 %v292_v6, %v9649_v19  ;;  %v268_v11 = vld [vmem:[%s6461_s5 + $0xf8] sm:$0xff]  ;;  %v9730_v14 = vsub.f32 %v276_v41, %v9698_v63 }
 0x286   : > { %4457 = vmatpush.msrb.mxu1 %v9418_v45  ;;  %4567 = vmatpush.msrb.mxu3 %v9433_v10  ;;  %v9671_v45 = vand.u32 4294901760, %v284_v43  ;;  %v9721_v22 = vand.u32 4294901760, %v268_v11  ;;  %v364_v41 = vld [vmem:[%s6461_s5 + $0x3f8] sm:$0xff] }
 0x287   : > { %4427 = vmatpush.msrb.mxu0 %v9515_v24  ;;  %4526 = vmatpush.msrb.mxu2 %v4353_v56  ;;  %v9687_v9 = vsub.f32 %v288_v7, %v9660_v28  ;;  %v10913_v16 = vand.u32 4294901760, %v9675_v29  ;;  %v9712_v56 = vand.u32 4294901760, %v272_v44  ;;  %v10906_v55 = vand.u32 4294901760, %v9730_v14 }
 0x288   : > { %4459 = vmatpush.msrb.mxu1 %v9433_v10  ;;  %4569 = vmatpush.msrb.mxu3 %v9446_v15  ;;  %v11182_v10 = vld [vmem:[#allocation25_spill] sm:$0xff]  ;;  %v9702_v47 = vsub.f32 %v284_v43, %v9671_v45  ;;  %v9793_v43 = vand.u32 4294901760, %v248_v31  ;;  %v9817_v26 = vand.u32 4294901760, %v364_v41 }
 0x289   : > { %4430 = vmatpush.msrb.mxu0 %v9528_v42  ;;  %4530 = vmatpush.msrb.mxu2 %v4359_v0  ;;  %v10911_v24 = vand.u32 4294901760, %v9687_v9  ;;  %v9716_v0 = vsub.f32 %v280_v49, %v9683_v54  ;;  %v264_v42 = vld [vmem:[%s6461_s5 + $0xd8] sm:$0xff]  ;;  %v9744_v61 = vsub.f32 %v272_v44, %v9712_v56  ;;  %v4665_v32 = vsub.f32 %v9730_v14, %v10906_v55 }
 0x28a   : > { %4461 = vmatpush.msrb.mxu1 %v9446_v15  ;;  %4571 = vmatpush.msrb.mxu3 %v9459_v3  ;;  %v4628_v15 = vand.u32 4294901760, %v9652_v12  ;;  %v344_v55 = vld [vmem:[%s6461_s5 + $0x358] sm:$0xff] }
 0x28b   : > { %4433 = vmatpush.msrb.mxu0 %v9539_v36  ;;  %4534 = vmatpush.msrb.mxu2 %v4365_v48  ;;  %v4641_v48 = vsub.f32 %v9675_v29, %v10913_v16  ;;  %v10909_v36 = vand.u32 4294901760, %v9702_v47  ;;  %v10908_v52 = vand.u32 4294901760, %v9716_v0  ;;  %v10905_v50 = vand.u32 4294901760, %v9744_v61 }
 0x28c   : > { %4463 = vmatpush.msrb.mxu1 %v9459_v3  ;;  %4573 = vmatpush.msrb.mxu3 %v9472_v23  ;;  %v10914_v3 = vand.u32 4294901760, %v9663_v4 }
 0x28d   : > { %4436 = vmatmul.f32.vlgmr.msrb.gmra.mxu0 %v11182_v10  ;;  %4538 = vmatpush.msrb.mxu2 %v4371_v5  ;;  %v4647_v5 = vsub.f32 %v9687_v9, %v10911_v24  ;;  %v4642_v27 = vand.u32 4294901760, %v4641_v48  ;;  %v4653_v39 = vsub.f32 %v9702_v47, %v10909_v36  ;;  %v4659_v58 = vsub.f32 %v9716_v0, %v10908_v52 }
 0x28e   : > { %4586 = vmatpush.msra.mxu0 %v9633_v35  ;;  %4465 = vmatpush.msrb.mxu1 %v9472_v23  ;;  %v4629_v23 = vsub.f32 %v9652_v12, %v4628_v15  ;;  %v4671_v7 = vsub.f32 %v9744_v61, %v10905_v50 }
 0x28f   : > { %4575 = vmatpush.msrb.mxu3 %v9490_v30  ;;  %4542 = vmatpush.msrb.mxu2 %v4377_v17  ;;  %v9749_v17 = vsub.f32 %v268_v11, %v9721_v22  ;;  %v4648_v33 = vand.u32 4294901760, %v4647_v5  ;;  %v4654_v46 = vand.u32 4294901760, %v4653_v39  ;;  %v4660_v6 = vand.u32 4294901760, %v4659_v58 }
 0x290   : > { %4588 = vmatpush.msra.mxu0 %v9641_v34  ;;  %4467 = vmatpush.msrb.mxu1 %v9490_v30  ;;  %v4635_v30 = vsub.f32 %v9663_v4, %v10914_v3  ;;  %v4630_v8 = vand.u32 4294901760, %v4629_v23  ;;  %v240_v23 = vld [vmem:[%s6461_s5 + $0x18] sm:$0xff]  ;;  %v4666_v11 = vand.u32 4294901760, %v4665_v32  ;;  %v4672_v5 = vand.u32 4294901760, %v4671_v7 }
 0x291   : > { %4577 = vmatpush.msrb.mxu3 %v9504_v60  ;;  %4544 = vmatmul.f32.vlgmr.msrb.gmra.mxu2 %v11174_v2  ;;  %v10903_v37 = vand.u32 4294901760, %v9749_v17  ;;  %v9825_v39 = vsub.f32 %v248_v31, %v9793_v43 }
 0x292   : > { %4590 = vmatpush.msra.mxu0 %v9649_v19  ;;  %4729 = vmatpush.msra.mxu2 %v9652_v12  ;;  %v4636_v53 = vand.u32 4294901760, %v4635_v30  ;;  %v9806_v30 = vand.u32 4294901760, %v244_v20  ;;  %v11185_v12 = vand.u32 4294901760, %v9663_v4 }
 0x293   : > { %4469 = vmatpush.msrb.mxu1 %v9504_v60  ;;  %4579 = vmatpush.msrb.mxu3 %v9517_v38  ;;  %v9734_v60 = vand.u32 4294901760, %v264_v42  ;;  %v4677_v44 = vsub.f32 %v9749_v17, %v10903_v37  ;;  %v348_v37 = vld [vmem:[%s6461_s5 + $0x378] sm:$0xff] }
 0x294   : > { %4581 = vmatmul.f32.vlgmr.msrb.gmra.mxu3 %v11174_v2  ;;  %4592 = vmatpush.msra.mxu0 %v9660_v28  ;;  %v9836_v32 = vsub.f32 %v244_v20, %v9806_v30  ;;  %v10910_v20 = vand.u32 4294901760, %v9825_v39 }
 0x295   : > { %4732 = vmatpush.msra.mxu2 %v9663_v4  ;;  %4782 = vmatpush.msra.mxu3 %v9633_v35  ;;  %v9762_v40 = vsub.f32 %v264_v42, %v9734_v60  ;;  %v10901_v42 = vand.u32 4294901760, %v9783_v25 }
 0x296   : > { %4471 = vmatpush.msrb.mxu1 %v9517_v38  ;;  %4594 = vmatpush.msra.mxu0 %v9671_v45  ;;  %v256_v38 = vld [vmem:[%s6461_s5 + $0x98] sm:$0xff] }
 0x297   : > { %4475 = vmatmul.f32.vlgmr.msrb.gmra.mxu1 %v11183_v18  ;;  %4735 = vmatpush.msra.mxu2 %v9675_v29  ;;  %v9769_v51 = vand.u32 4294901760, %v256_v38  ;;  %v10902_v1 = vand.u32 4294901760, %v9762_v40  ;;  %v4689_v58 = vsub.f32 %v9783_v25, %v10901_v42 }
 0x298   : > { %4631 = vmatpush.msra.mxu1 %v4630_v8  ;;  %4784 = vmatpush.msra.mxu3 %v9641_v34  ;;  %v9810_v8 = vsub.f32 %v252_v59, %v9780_v62  ;;  %v4678_v59 = vand.u32 4294901760, %v4677_v44  ;;  %v9844_v44 = vsub.f32 %v364_v41, %v9817_v26 }
 0x299   : > { %4596 = vmatpush.msra.mxu0 %v9683_v54  ;;  %4738 = vmatpush.msra.mxu2 %v9687_v9  ;;  %v9796_v49 = vsub.f32 %v256_v38, %v9769_v51  ;;  %v4683_v48 = vsub.f32 %v9762_v40, %v10902_v1  ;;  %v9821_v38 = vand.u32 4294901760, %v240_v23 }
 0x29a   : > { %4637 = vmatpush.msra.mxu1 %v4636_v53  ;;  %4786 = vmatpush.msra.mxu3 %v9649_v19  ;;  %v360_v53 = vld [vmem:[%s6461_s5 + $0x3d8] sm:$0xff]  ;;  %v10915_v50 = vand.u32 4294901760, %v9844_v44 }
 0x29b   : > { %4598 = vmatpush.msra.mxu0 %v9698_v63  ;;  %4741 = vmatpush.msra.mxu2 %v9702_v47  ;;  %v9838_v31 = vand.u32 4294901760, %v360_v53  ;;  %v4684_v7 = vand.u32 4294901760, %v4683_v48  ;;  %v9852_v42 = vsub.f32 %v240_v23, %v9821_v38  ;;  %v4690_v48 = vand.u32 4294901760, %v4689_v58 }
 0x29c   : > { %4643 = vmatpush.msra.mxu1 %v4642_v27  ;;  %4788 = vmatpush.msra.mxu3 %v9660_v28  ;;  %v10904_v27 = vand.u32 4294901760, %v9796_v49  ;;  %v10912_v23 = vand.u32 4294901760, %v9836_v32 }
 0x29d   : > { %4600 = vmatpush.msra.mxu0 %v9712_v56  ;;  %4744 = vmatpush.msra.mxu2 %v9716_v0 }
 0x29e   : > { %4649 = vmatpush.msra.mxu1 %v4648_v33  ;;  %4790 = vmatpush.msra.mxu3 %v9671_v45  ;;  %v356_v33 = vld [vmem:[%s6461_s5 + $0x3b8] sm:$0xff] }
 0x29f   : > { %4602 = vmatpush.msra.mxu0 %v9721_v22  ;;  %4747 = vmatpush.msra.mxu2 %v9730_v14  ;;  %v9854_v1 = vand.u32 4294901760, %v356_v33 }
 0x2a0   : > { %4655 = vmatpush.msra.mxu1 %v4654_v46  ;;  %4792 = vmatpush.msra.mxu3 %v9683_v54  ;;  %v10907_v46 = vand.u32 4294901760, %v9810_v8 }
 0x2a1   : > { %4604 = vmatpush.msra.mxu0 %v9734_v60  ;;  %4750 = vmatpush.msra.mxu2 %v9744_v61  ;;  %v9881_v52 = vsub.f32 %v356_v33, %v9854_v1  ;;  %v9894_v33 = vand.u32 4294901760, %v344_v55 }
 0x2a2   : > { %4661 = vmatpush.msra.mxu1 %v4660_v6  ;;  %4794 = vmatpush.msra.mxu3 %v9698_v63  ;;  %v352_v6 = vld [vmem:[%s6461_s5 + $0x398] sm:$0xff] }
 0x2a3   : > { %4606 = vmatpush.msra.mxu0 %v9756_v13  ;;  %4753 = vmatpush.msra.mxu2 %v9749_v17  ;;  %v9859_v41 = vand.u32 4294901760, %v352_v6  ;;  %v9922_v3 = vsub.f32 %v344_v55, %v9894_v33 }
 0x2a4   : > { %4667 = vmatpush.msra.mxu1 %v4666_v11  ;;  %4796 = vmatpush.msra.mxu3 %v9712_v56  ;;  %v4695_v11 = vsub.f32 %v9796_v49, %v10904_v27  ;;  %v9867_v27 = vsub.f32 %v360_v53, %v9838_v31  ;;  %v10916_v53 = vand.u32 4294901760, %v9852_v42 }
 0x2a5   : > { %4608 = vmatpush.msra.mxu0 %v9769_v51  ;;  %4756 = vmatpush.msra.mxu2 %v9762_v40  ;;  %v9886_v36 = vsub.f32 %v352_v6, %v9859_v41  ;;  %v4970_v6 = vsub.f32 %v9844_v44, %v10915_v50 }
 0x2a6   : > { %4673 = vmatpush.msra.mxu1 %v4672_v5  ;;  %4798 = vmatpush.msra.mxu3 %v9721_v22  ;;  %v4701_v5 = vsub.f32 %v9810_v8, %v10907_v46  ;;  %v4696_v58 = vand.u32 4294901760, %v4695_v11  ;;  %v4707_v46 = vsub.f32 %v9825_v39, %v10910_v20  ;;  %v4713_v20 = vsub.f32 %v9836_v32, %v10912_v23 }
 0x2a7   : > { %4610 = vmatpush.msra.mxu0 %v9780_v62  ;;  %4759 = vmatpush.msra.mxu2 %v9783_v25  ;;  %v4719_v16 = vsub.f32 %v9852_v42, %v10916_v53  ;;  %v11184_v50 = vand.u32 4294901760, %v9867_v27 }
 0x2a8   : > { %4679 = vmatpush.msra.mxu1 %v4678_v59  ;;  %4800 = vmatpush.msra.mxu3 %v9734_v60  ;;  %v9872_v59 = vand.u32 4294901760, %v348_v37  ;;  %v4702_v11 = vand.u32 4294901760, %v4701_v5  ;;  %v336_v5 = vld [vmem:[%s6461_s5 + $0x318] sm:$0xff]  ;;  %v4708_v23 = vand.u32 4294901760, %v4707_v46  ;;  %v4714_v46 = vand.u32 4294901760, %v4713_v20 }
 0x2a9   : > { %4612 = vmatpush.msra.mxu0 %v9793_v43  ;;  %4762 = vmatpush.msra.mxu2 %v9796_v49  ;;  %v4976_v53 = vsub.f32 %v9867_v27, %v11184_v50  ;;  %v9924_v18 = vand.u32 4294901760, %v336_v5  ;;  %v4720_v20 = vand.u32 4294901760, %v4719_v16  ;;  %v11186_v50 = vand.u32 4294901760, %v9881_v52  ;;  %v324_v16 = vld [vmem:[%s6461_s5 + $0x2b8] sm:$0xff] }
 0x2aa   : > { %4685 = vmatpush.msra.mxu1 %v4684_v7  ;;  %4802 = vmatpush.msra.mxu3 %v9756_v13  ;;  %v340_v7 = vld [vmem:[%s6461_s5 + $0x338] sm:$0xff]  ;;  %v9965_v21 = vand.u32 4294901760, %v324_v16 }
 0x2ab   : > { %4614 = vmatpush.msra.mxu0 %v9806_v30  ;;  %4765 = vmatpush.msra.mxu2 %v9810_v8  ;;  %v9910_v24 = vand.u32 4294901760, %v340_v7  ;;  %v4982_v55 = vsub.f32 %v9881_v52, %v11186_v50  ;;  %v4977_v50 = vand.u32 4294901760, %v4976_v53 }
 0x2ac   : > { %4691 = vmatpush.msra.mxu1 %v4690_v48  ;;  %4804 = vmatpush.msra.mxu3 %v9769_v51  ;;  %v9902_v48 = vsub.f32 %v348_v37, %v9872_v59  ;;  %v328_v37 = vld [vmem:[%s6461_s5 + $0x2d8] sm:$0xff] }
 0x2ad   : > { %4616 = vmatpush.msra.mxu0 %v9821_v38  ;;  %4768 = vmatpush.msra.mxu2 %v9825_v39  ;;  %v9936_v10 = vsub.f32 %v340_v7, %v9910_v24  ;;  %v9950_v7 = vsub.f32 %v336_v5, %v9924_v18  ;;  %v9952_v2 = vand.u32 4294901760, %v328_v37  ;;  %v4983_v53 = vand.u32 4294901760, %v4982_v55 }
 0x2ae   : > { %4697 = vmatpush.msra.mxu1 %v4696_v58  ;;  %4806 = vmatpush.msra.mxu3 %v9780_v62  ;;  %v332_v58 = vld [vmem:[%s6461_s5 + $0x2f8] sm:$0xff] }
 0x2af   : > { %4823 = vmatpush.msrb.mxu0 %v4628_v15  ;;  %4771 = vmatpush.msra.mxu2 %v9836_v32  ;;  %v4971_v15 = vand.u32 4294901760, %v4970_v6  ;;  %v9938_v4 = vand.u32 4294901760, %v332_v58  ;;  %v9977_v55 = vsub.f32 %v328_v37, %v9952_v2  ;;  %v9990_v37 = vsub.f32 %v324_v16, %v9965_v21 }
 0x2b0   : > { %4703 = vmatpush.msra.mxu1 %v4702_v11  ;;  %4808 = vmatpush.msra.mxu3 %v9793_v43  ;;  %v5005_v11 = vand.u32 4294901760, %v9936_v10 }
 0x2b1   : > { %4827 = vmatpush.msrb.mxu0 %v11185_v12  ;;  %4774 = vmatpush.msra.mxu2 %v9852_v42  ;;  %v11187_v12 = vand.u32 4294901760, %v9675_v29  ;;  %v11189_v29 = vand.u32 4294901760, %v9687_v9  ;;  %v9963_v5 = vsub.f32 %v332_v58, %v9938_v4  ;;  %v11191_v9 = vand.u32 4294901760, %v9702_v47 }
 0x2b2   : > { %4709 = vmatpush.msra.mxu1 %v4708_v23  ;;  %4810 = vmatpush.msra.mxu3 %v9806_v30  ;;  %v11188_v23 = vand.u32 4294901760, %v9886_v36  ;;  %v5011_v58 = vand.u32 4294901760, %v9950_v7  ;;  %v11193_v47 = vand.u32 4294901760, %v9716_v0  ;;  %v312_v0 = vld [vmem:[%s6461_s5 + $0x258] sm:$0xff]  ;;  %v5023_v16 = vand.u32 4294901760, %v9977_v55 }
 0x2b3   : > { %4831 = vmatpush.msrb.mxu0 %v11187_v12  ;;  %4927 = vmatpush.msrb.mxu2 %v9817_v26  ;;  %v11190_v12 = vand.u32 4294901760, %v9902_v48 }
 0x2b4   : > { %v4988_v6 = vsub.f32 %v9886_v36, %v11188_v23  ;;  %4715 = vmatpush.msra.mxu1 %v4714_v46  ;;  %4812 = vmatpush.msra.mxu3 %v9821_v38  ;;  %v320_v23 = vld [vmem:[%s6461_s5 + $0x298] sm:$0xff] }
 0x2b5   : > { %4835 = vmatpush.msrb.mxu0 %v11189_v29  ;;  %4929 = vmatpush.msrb.mxu2 %v9838_v31  ;;  %v4994_v46 = vsub.f32 %v9902_v48, %v11190_v12  ;;  %v9979_v12 = vand.u32 4294901760, %v320_v23 }
 0x2b6   : > { %4972 = vmatpush.msrb.mxu3 %v4971_v15  ;;  %4721 = vmatpush.msra.mxu1 %v4720_v20  ;;  %v4989_v29 = vand.u32 4294901760, %v4988_v6  ;;  %v11192_v15 = vand.u32 4294901760, %v9922_v3  ;;  %v5006_v6 = vsub.f32 %v9936_v10, %v5005_v11 }
 0x2b7   : > { %4839 = vmatpush.msrb.mxu0 %v11191_v9  ;;  %4931 = vmatpush.msrb.mxu2 %v9854_v1  ;;  %v9992_v9 = vand.u32 4294901760, %v316_v57 }
 0x2b8   : > { %4890 = vmatpush.msrb.mxu1 %v9633_v35  ;;  %4978 = vmatpush.msrb.mxu3 %v4977_v50  ;;  %v5000_v20 = vsub.f32 %v9922_v3, %v11192_v15  ;;  %v4995_v35 = vand.u32 4294901760, %v4994_v46  ;;  %v10919_v50 = vand.u32 4294901760, %v9963_v5  ;;  %v11194_v15 = vand.u32 4294901760, %v9730_v14 }
 0x2b9   : > { %4843 = vmatpush.msrb.mxu0 %v11193_v47  ;;  %4933 = vmatpush.msrb.mxu2 %v9859_v41  ;;  %v5012_v46 = vsub.f32 %v9950_v7, %v5011_v58  ;;  %v308_v47 = vld [vmem:[%s6461_s5 + $0x238] sm:$0xff]  ;;  %v11195_v14 = vand.u32 4294901760, %v9744_v61  ;;  %v11196_v61 = vand.u32 4294901760, %v9749_v17 }
 0x2ba   : > { %4892 = vmatpush.msrb.mxu1 %v9641_v34  ;;  %4984 = vmatpush.msrb.mxu3 %v4983_v53  ;;  %v5001_v34 = vand.u32 4294901760, %v5000_v20  ;;  %v10004_v53 = vsub.f32 %v320_v23, %v9979_v12  ;;  %v5018_v20 = vsub.f32 %v9963_v5, %v10919_v50  ;;  %v10018_v23 = vsub.f32 %v316_v57, %v9992_v9 }
 0x2bb   : > { %4847 = vmatpush.msrb.mxu0 %v11194_v15  ;;  %4935 = vmatpush.msrb.mxu2 %v9872_v59  ;;  %v5029_v15 = vand.u32 4294901760, %v9990_v37  ;;  %v11197_v57 = vand.u32 4294901760, %v9762_v40  ;;  %v11198_v40 = vand.u32 4294901760, %v9783_v25 }
 0x2bc   : > { %4894 = vmatpush.msrb.mxu1 %v9649_v19  ;;  %4990 = vmatpush.msrb.mxu3 %v4989_v29  ;;  %v10010_v19 = vand.u32 4294901760, %v312_v0  ;;  %v5007_v29 = vand.u32 4294901760, %v5006_v6  ;;  %v5024_v6 = vsub.f32 %v9977_v55, %v5023_v16  ;;  %v5035_v50 = vand.u32 4294901760, %v10004_v53 }
 0x2bd   : > { %4851 = vmatpush.msrb.mxu0 %v11195_v14  ;;  %4937 = vmatpush.msrb.mxu2 %v9894_v33  ;;  %v304_v14 = vld [vmem:[%s6461_s5 + $0x218] sm:$0xff]  ;;  %v5019_v17 = vand.u32 4294901760, %v5018_v20  ;;  %v11199_v20 = vand.u32 4294901760, %v9796_v49 }
 0x2be   : > { %4896 = vmatpush.msrb.mxu1 %v9660_v28  ;;  %4996 = vmatpush.msrb.mxu3 %v4995_v35  ;;  %v10023_v28 = vand.u32 4294901760, %v308_v47  ;;  %v5013_v35 = vand.u32 4294901760, %v5012_v46  ;;  %v5041_v46 = vand.u32 4294901760, %v10018_v23 }
 0x2bf   : > { %4855 = vmatpush.msrb.mxu0 %v11196_v61  ;;  %4939 = vmatpush.msrb.mxu2 %v9910_v24  ;;  %v10042_v61 = vand.u32 4294901760, %v304_v14 }
 0x2c0   : > { %4898 = vmatpush.msrb.mxu1 %v9671_v45  ;;  %5002 = vmatpush.msrb.mxu3 %v5001_v34  ;;  %v10035_v45 = vsub.f32 %v312_v0, %v10010_v19  ;;  %v5030_v34 = vsub.f32 %v9990_v37, %v5029_v15  ;;  %v5025_v0 = vand.u32 4294901760, %v5024_v6  ;;  %v11200_v6 = vand.u32 4294901760, %v9810_v8 }
 0x2c1   : > { %4859 = vmatpush.msrb.mxu0 %v11197_v57  ;;  %4941 = vmatpush.msrb.mxu2 %v9924_v18  ;;  %v11201_v57 = vand.u32 4294901760, %v9825_v39 }
 0x2c2   : > { %4900 = vmatpush.msrb.mxu1 %v9683_v54  ;;  %5008 = vmatpush.msrb.mxu3 %v5007_v29  ;;  %v10048_v54 = vsub.f32 %v308_v47, %v10023_v28  ;;  %v5036_v29 = vsub.f32 %v10004_v53, %v5035_v50  ;;  %v5047_v25 = vand.u32 4294901760, %v10035_v45  ;;  %v5042_v47 = vsub.f32 %v10018_v23, %v5041_v46 }
 0x2c3   : > { %4863 = vmatpush.msrb.mxu0 %v11198_v40  ;;  %4943 = vmatpush.msrb.mxu2 %v9938_v4 }
 0x2c4   : > { %4902 = vmatpush.msrb.mxu1 %v9698_v63  ;;  %5014 = vmatpush.msrb.mxu3 %v5013_v35  ;;  %v5031_v63 = vand.u32 4294901760, %v5030_v34  ;;  %v10063_v35 = vsub.f32 %v304_v14, %v10042_v61  ;;  %v5037_v49 = vand.u32 4294901760, %v5036_v29  ;;  %v5048_v14 = vsub.f32 %v10035_v45, %v5047_v25  ;;  %v3259_v29 = vpop.f32.mrf.mxu0 }
 0x2c5   : > { %4867 = vmatpush.msrb.mxu0 %v11199_v20  ;;  %4945 = vmatpush.msrb.mxu2 %v9952_v2  ;;  %v5043_v8 = vand.u32 4294901760, %v5042_v47  ;;  %v11206_v20 = vld [vmem:[#allocation15_spill] sm:$0xff]  ;;  %v3414_v47 = vpop.f32.mrf.mxu2 }
 0x2c6   : > { %4904 = vmatpush.msrb.mxu1 %v9712_v56  ;;  %5020 = vmatpush.msrb.mxu3 %v5019_v17  ;;  %v5053_v56 = vand.u32 4294901760, %v10048_v54  ;;  %v11202_v17 = vand.u32 4294901760, %v9836_v32  ;;  %v5049_v34 = vand.u32 4294901760, %v5048_v14  ;;  %v11204_v32 = vld [vmem:[#allocation17_spill] sm:$0xff]  ;;  %v11213_v14 = vld [vmem:[#allocation16_spill] sm:$0xff] }
 0x2c7   : > { %4871 = vmatpush.msrb.mxu0 %v11200_v6  ;;  %4947 = vmatpush.msrb.mxu2 %v9965_v21  ;;  %v11208_v6 = vld [vmem:[#allocation13_spill] sm:$0xff] }
 0x2c8   : > { %4906 = vmatpush.msrb.mxu1 %v9721_v22  ;;  %5026 = vmatpush.msrb.mxu3 %v5025_v0  ;;  %v5059_v22 = vand.u32 4294901760, %v10063_v35  ;;  %v5054_v39 = vsub.f32 %v10048_v54, %v5053_v56 }
 0x2c9   : > { %4875 = vmatpush.msrb.mxu0 %v11201_v57  ;;  %4949 = vmatpush.msrb.mxu2 %v9979_v12  ;;  %v11211_v57 = vld [vmem:[#allocation20_spill] sm:$0xff] }
 0x2ca   : > { %4908 = vmatpush.msrb.mxu1 %v9734_v60  ;;  %5032 = vmatpush.msrb.mxu3 %v5031_v63  ;;  %v11203_v60 = vand.u32 4294901760, %v9852_v42  ;;  %v5055_v40 = vand.u32 4294901760, %v5054_v39  ;;  %v11205_v42 = vld [vmem:[#allocation14_spill] sm:$0xff]  ;;  %v11207_v63 = vand.u32 4294901760, %v9844_v44 }
 0x2cb   : > { %4879 = vmatpush.msrb.mxu0 %v11202_v17  ;;  %4951 = vmatpush.msrb.mxu2 %v9992_v9 }
 0x2cc   : > { %4910 = vmatpush.msrb.mxu1 %v9756_v13  ;;  %5038 = vmatpush.msrb.mxu3 %v5037_v49  ;;  %v5060_v13 = vsub.f32 %v10063_v35, %v5059_v22 }
 0x2cd   : > { %4883 = vmatpush.msrb.mxu0 %v11203_v60  ;;  %4953 = vmatpush.msrb.mxu2 %v10010_v19  ;;  %v11217_v60 = vld [vmem:[#allocation18_spill] sm:$0xff] }
 0x2ce   : > { %4912 = vmatpush.msrb.mxu1 %v9769_v51  ;;  %5044 = vmatpush.msrb.mxu3 %v5043_v8  ;;  %v3360_v51 = vpop.f32.mrf.mxu1  ;;  %v5061_v0 = vand.u32 4294901760, %v5060_v13  ;;  %v11215_v8 = vand.u32 4294901760, %v9922_v3 }
 0x2cf   : > { %4622 = vmatmul.f32.vlgmr.msra.gmra.mxu0 %v11204_v32  ;;  %4955 = vmatpush.msrb.mxu2 %v10023_v28  ;;  %v400_v32 = vld [vmem:[%s6461_s5 + $0x518] sm:$0xff] }
 0x2d0   : > { %4914 = vmatpush.msrb.mxu1 %v9780_v62  ;;  %5070 = vmatpush.msra.mxu0 %v9844_v44  ;;  %v3361_v62 = vadd.f32 %v3360_v51, %v3259_v29  ;;  %v3453_v44 = vpop.f32.mrf.mxu3  ;;  %v396_v51 = vld [vmem:[%s6461_s5 + $0x4f8] sm:$0xff] }
 0x2d1   : > { %5050 = vmatpush.msrb.mxu3 %v5049_v34  ;;  %4777 = vmatmul.f32.vlgmr.msra.gmra.mxu2 %v11205_v42 }
 0x2d2   : > { %5073 = vmatpush.msra.mxu0 %v9867_v27  ;;  %4916 = vmatpush.msrb.mxu1 %v9793_v43  ;;  %v11209_v43 = vand.u32 4294901760, %v9867_v27  ;;  %v3415_v49 = vadd.f32 %v3414_v47, %v3361_v62  ;;  %v11212_v27 = vand.u32 4294901760, %v9886_v36 }
 0x2d3   : > { %4957 = vmatpush.msrb.mxu2 %v10042_v61  ;;  %5056 = vmatpush.msrb.mxu3 %v5055_v40 }
 0x2d4   : > { %4816 = vmatmul.f32.vlgmr.msra.gmra.mxu3 %v11206_v20  ;;  %5076 = vmatpush.msra.mxu0 %v9881_v52 }
 0x2d5   : > { %5164 = vmatpush.msra.mxu2 %v11207_v63  ;;  %4918 = vmatpush.msrb.mxu1 %v9806_v30  ;;  %v11210_v30 = vand.u32 4294901760, %v9881_v52  ;;  %v11214_v52 = vand.u32 4294901760, %v9902_v48  ;;  %v392_v63 = vld [vmem:[%s6461_s5 + $0x4d8] sm:$0xff] }
 0x2d6   : > { %5062 = vmatpush.msrb.mxu3 %v5061_v0  ;;  %4723 = vmatmul.f32.vlgmr.msra.gmra.mxu1 %v11208_v6 }
 0x2d7   : > { %5079 = vmatpush.msra.mxu0 %v9886_v36  ;;  %5168 = vmatpush.msra.mxu2 %v11209_v43 }
 0x2d8   : > { %5231 = vmatpush.msra.mxu3 %v9817_v26  ;;  %4920 = vmatpush.msrb.mxu1 %v9821_v38  ;;  %v3454_v38 = vadd.f32 %v3453_v44, %v3415_v49  ;;  %v10251_v49 = vand.u32 4294901760, %v396_v51 }
 0x2d9   : > { %5082 = vmatpush.msra.mxu0 %v9902_v48  ;;  %5172 = vmatpush.msra.mxu2 %v11210_v30  ;;  %v3701_v48 = vpop.f32.mrf.mxu3 }
 0x2da   : > { %5123 = vmatpush.msra.mxu1 %v9817_v26  ;;  %5233 = vmatpush.msra.mxu3 %v9838_v31  ;;  %v3522_v26 = vpop.f32.mrf.mxu0 }
 0x2db   : > { %4963 = vmatmul.f32.vlgmr.msrb.gmra.mxu2 %v11211_v57  ;;  %5085 = vmatpush.msra.mxu0 %v9922_v3  ;;  %v3523_v36 = vadd.f32 %v3522_v26, %v3454_v38  ;;  %v11216_v3 = vand.u32 4294901760, %v9963_v5  ;;  %v388_v57 = vld [vmem:[%s6461_s5 + $0x4b8] sm:$0xff]  ;;  %v10265_v26 = vand.u32 4294901760, %v392_v63 }
 0x2dc   : > { %5125 = vmatpush.msra.mxu1 %v9838_v31  ;;  %5176 = vmatpush.msra.mxu2 %v11212_v27  ;;  %v3559_v31 = vpop.f32.mrf.mxu1 }
 0x2dd   : > { %5235 = vmatpush.msra.mxu3 %v9854_v1  ;;  %4885 = vmatmul.f32.vlgmr.msrb.gmra.mxu0 %v11208_v6 }
 0x2de   : > { %5064 = vmatmul.f32.vlgmr.msrb.gmra.mxu3 %v11213_v14  ;;  %5088 = vmatpush.msra.mxu0 %v9936_v10  ;;  %v428_v10 = vld [vmem:[%s6461_s5 + $0x5f8] sm:$0xff] }
 0x2df   : > { %5127 = vmatpush.msra.mxu1 %v9854_v1  ;;  %5180 = vmatpush.msra.mxu2 %v11214_v52  ;;  %v3560_v1 = vadd.f32 %v3559_v31, %v3523_v36  ;;  %v11218_v36 = vld [vmem:[#allocation19_spill] sm:$0xff] }
 0x2e0   : > { %5237 = vmatpush.msra.mxu3 %v9859_v41  ;;  %4922 = vmatmul.f32.vlgmr.msrb.gmra.mxu1 %v11208_v6  ;;  %v384_v31 = vld [vmem:[%s6461_s5 + $0x498] sm:$0xff] }
 0x2e1   : > { %5091 = vmatpush.msra.mxu0 %v9950_v7  ;;  %5129 = vmatpush.msra.mxu1 %v9859_v41  ;;  %v3600_v41 = vpop.f32.mrf.mxu2  ;;  %v3900_v40 = vpop.f32.mrf.mxu3 }
 0x2e2   : > { %5184 = vmatpush.msra.mxu2 %v11215_v8  ;;  %5239 = vmatpush.msra.mxu3 %v9872_v59  ;;  %v3755_v7 = vpop.f32.mrf.mxu0 }
 0x2e3   : > { %5094 = vmatpush.msra.mxu0 %v9963_v5  ;;  %5131 = vmatpush.msra.mxu1 %v9872_v59  ;;  %v3601_v59 = vadd.f32 %v3600_v41, %v3560_v1  ;;  %v10277_v41 = vand.u32 4294901760, %v388_v57 }
 0x2e4   : > { %5188 = vmatpush.msra.mxu2 %v5005_v11  ;;  %5241 = vmatpush.msra.mxu3 %v9894_v33  ;;  %v420_v11 = vld [vmem:[%s6461_s5 + $0x5b8] sm:$0xff] }
 0x2e5   : > { %5097 = vmatpush.msra.mxu0 %v9977_v55  ;;  %5133 = vmatpush.msra.mxu1 %v9894_v33  ;;  %v424_v33 = vld [vmem:[%s6461_s5 + $0x5d8] sm:$0xff]  ;;  %v3702_v5 = vadd.f32 %v3701_v48, %v3601_v59  ;;  %v3794_v55 = vpop.f32.mrf.mxu1 }
 0x2e6   : > { %5192 = vmatpush.msra.mxu2 %v5011_v58  ;;  %5243 = vmatpush.msra.mxu3 %v9910_v24  ;;  %v416_v58 = vld [vmem:[%s6461_s5 + $0x598] sm:$0xff] }
 0x2e7   : > { %5100 = vmatpush.msra.mxu0 %v9990_v37  ;;  %5135 = vmatpush.msra.mxu1 %v9910_v24  ;;  %v10157_v24 = vand.u32 4294901760, %v428_v10 }
 0x2e8   : > { %5196 = vmatpush.msra.mxu2 %v11216_v3  ;;  %5245 = vmatpush.msra.mxu3 %v9924_v18  ;;  %v10281_v3 = vsub.f32 %v396_v51, %v10251_v49 }
 0x2e9   : > { %5103 = vmatpush.msra.mxu0 %v10004_v53  ;;  %5137 = vmatpush.msra.mxu1 %v9924_v18  ;;  %v10165_v18 = vand.u32 4294901760, %v424_v33  ;;  %v10176_v37 = vsub.f32 %v428_v10, %v10157_v24  ;;  %v408_v53 = vld [vmem:[%s6461_s5 + $0x558] sm:$0xff] }
 0x2ea   : > { %5200 = vmatpush.msra.mxu2 %v5023_v16  ;;  %5247 = vmatpush.msra.mxu3 %v9938_v4  ;;  %v412_v16 = vld [vmem:[%s6461_s5 + $0x578] sm:$0xff]  ;;  %v10203_v34 = vand.u32 4294901760, %v408_v53  ;;  %v3941_v0 = vpop.f32.mrf.mxu0 }
 0x2eb   : > { %5106 = vmatpush.msra.mxu0 %v10018_v23  ;;  %5139 = vmatpush.msra.mxu1 %v9938_v4  ;;  %v10173_v4 = vand.u32 4294901760, %v420_v11  ;;  %v10192_v39 = vand.u32 4294901760, %v412_v16  ;;  %v5310_v23 = vand.u32 4294901760, %v10176_v37 }
 0x2ec   : > { %5204 = vmatpush.msra.mxu2 %v5029_v15  ;;  %5249 = vmatpush.msra.mxu3 %v9952_v2  ;;  %v3756_v15 = vadd.f32 %v3755_v7, %v3702_v5  ;;  %v10294_v5 = vsub.f32 %v392_v63, %v10265_v26 }
 0x2ed   : > { %5109 = vmatpush.msra.mxu0 %v10035_v45  ;;  %5141 = vmatpush.msra.mxu1 %v9952_v2  ;;  %v10184_v2 = vand.u32 4294901760, %v416_v58  ;;  %v4042_v47 = vpop.f32.mrf.mxu1 }
 0x2ee   : > { %5208 = vmatpush.msra.mxu2 %v5035_v50  ;;  %5251 = vmatpush.msra.mxu3 %v9965_v21  ;;  %v10187_v50 = vsub.f32 %v424_v33, %v10165_v18  ;;  %v3795_v17 = vadd.f32 %v3794_v55, %v3756_v15  ;;  %v380_v33 = vld [vmem:[%s6461_s5 + $0x478] sm:$0xff]  ;;  %v4135_v15 = vpop.f32.mrf.mxu3 }
 0x2ef   : > { %5112 = vmatpush.msra.mxu0 %v10048_v54  ;;  %5143 = vmatpush.msra.mxu1 %v9965_v21  ;;  %v3863_v21 = vpop.f32.mrf.mxu2  ;;  %v5311_v54 = vsub.f32 %v10176_v37, %v5310_v23 }
 0x2f0   : > { %5212 = vmatpush.msra.mxu2 %v5041_v46  ;;  %5253 = vmatpush.msra.mxu3 %v9979_v12  ;;  %v10199_v46 = vsub.f32 %v420_v11, %v10173_v4  ;;  %v5316_v45 = vand.u32 4294901760, %v10187_v50  ;;  %v3864_v13 = vadd.f32 %v3863_v21, %v3795_v17  ;;  %v10290_v11 = vand.u32 4294901760, %v384_v31 }
 0x2f1   : > { %5115 = vmatpush.msra.mxu0 %v10063_v35  ;;  %5145 = vmatpush.msra.mxu1 %v9979_v12  ;;  %v404_v12 = vld [vmem:[%s6461_s5 + $0x538] sm:$0xff]  ;;  %v5312_v6 = vand.u32 4294901760, %v5311_v54  ;;  %v10303_v17 = vand.u32 4294901760, %v380_v33  ;;  %v10924_v21 = vand.u32 4294901760, %v10281_v3  ;;  %v10923_v54 = vand.u32 4294901760, %v10294_v5 }
 0x2f2   : > { %5216 = vmatpush.msra.mxu2 %v5047_v25  ;;  %5255 = vmatpush.msra.mxu3 %v9992_v9  ;;  %v10211_v25 = vsub.f32 %v416_v58, %v10184_v2  ;;  %v5322_v42 = vand.u32 4294901760, %v10199_v46  ;;  %v5317_v35 = vsub.f32 %v10187_v50, %v5316_v45  ;;  %v3901_v20 = vadd.f32 %v3900_v40, %v3864_v13  ;;  %v4204_v13 = vpop.f32.mrf.mxu0 }
 0x2f3   : > { %5118 = vmatmul.f32.vlgmr.msra.gmra.mxu0 %v11217_v60  ;;  %5147 = vmatpush.msra.mxu1 %v9992_v9  ;;  %v10216_v9 = vsub.f32 %v412_v16, %v10192_v39  ;;  %v376_v16 = vld [vmem:[%s6461_s5 + $0x458] sm:$0xff]  ;;  %v10307_v60 = vsub.f32 %v388_v57, %v10277_v41  ;;  %v10319_v51 = vsub.f32 %v384_v31, %v10290_v11 }
 0x2f4   : > { %5268 = vmatpush.msrb.mxu0 %v10157_v24  ;;  %5220 = vmatpush.msra.mxu2 %v5053_v56  ;;  %v10225_v56 = vand.u32 4294901760, %v404_v12  ;;  %v10931_v29 = vand.u32 4294901760, %v10211_v25  ;;  %v5323_v43 = vsub.f32 %v10199_v46, %v5322_v42  ;;  %v5318_v27 = vand.u32 4294901760, %v5317_v35 }
 0x2f5   : > { %5257 = vmatpush.msra.mxu3 %v10010_v19  ;;  %5149 = vmatpush.msra.mxu1 %v10010_v19  ;;  %v10231_v19 = vsub.f32 %v408_v53, %v10203_v34  ;;  %v10929_v62 = vand.u32 4294901760, %v10216_v9  ;;  %v10315_v40 = vand.u32 4294901760, %v376_v16 }
 0x2f6   : > { %5270 = vmatpush.msrb.mxu0 %v10165_v18  ;;  %5224 = vmatpush.msra.mxu2 %v5059_v22  ;;  %v10239_v22 = vand.u32 4294901760, %v400_v32  ;;  %v10254_v44 = vsub.f32 %v404_v12, %v10225_v56  ;;  %v5329_v38 = vsub.f32 %v10211_v25, %v10931_v29  ;;  %v5324_v1 = vand.u32 4294901760, %v5323_v43 }
 0x2f7   : > { %5259 = vmatpush.msra.mxu3 %v10023_v28  ;;  %5226 = vmatmul.f32.vlgmr.msra.gmra.mxu2 %v11213_v14  ;;  %v10928_v30 = vand.u32 4294901760, %v10231_v19  ;;  %v4096_v8 = vpop.f32.mrf.mxu2  ;;  %v10330_v43 = vsub.f32 %v380_v33, %v10303_v17  ;;  %v10344_v31 = vsub.f32 %v376_v16, %v10315_v40 }
 0x2f8   : > { %5272 = vmatpush.msrb.mxu0 %v10173_v4  ;;  %5411 = vmatpush.msrb.mxu2 %v10176_v37  ;;  %v10927_v10 = vand.u32 4294901760, %v10254_v44  ;;  %v5330_v48 = vand.u32 4294901760, %v5329_v38  ;;  %v368_v38 = vld [vmem:[%s6461_s5 + $0x418] sm:$0xff] }
 0x2f9   : > { %5151 = vmatpush.msra.mxu1 %v10023_v28  ;;  %5261 = vmatpush.msra.mxu3 %v10042_v61  ;;  %v3942_v28 = vadd.f32 %v3941_v0, %v3901_v20  ;;  %v5341_v59 = vsub.f32 %v10231_v19, %v10928_v30  ;;  %v372_v0 = vld [vmem:[%s6461_s5 + $0x438] sm:$0xff]  ;;  %v4241_v20 = vpop.f32.mrf.mxu1  ;;  %v10920_v16 = vand.u32 4294901760, %v10330_v43 }
 0x2fa   : > { %5263 = vmatmul.f32.vlgmr.msra.gmra.mxu3 %v11213_v14  ;;  %5274 = vmatpush.msrb.mxu0 %v10184_v2  ;;  %v10268_v14 = vsub.f32 %v400_v32, %v10239_v22  ;;  %v5347_v53 = vsub.f32 %v10254_v44, %v10927_v10 }
 0x2fb   : > { %5414 = vmatpush.msrb.mxu2 %v10187_v50  ;;  %5464 = vmatpush.msrb.mxu3 %v10157_v24  ;;  %v4043_v52 = vadd.f32 %v4042_v47, %v3942_v28  ;;  %v5342_v12 = vand.u32 4294901760, %v5341_v59  ;;  %v5359_v47 = vsub.f32 %v10281_v3, %v10924_v21  ;;  %v492_v28 = vld [vmem:[%s6461_s5 + $0x7f8] sm:$0xff] }
 0x2fc   : > { %5153 = vmatpush.msra.mxu1 %v10042_v61  ;;  %5276 = vmatpush.msrb.mxu0 %v10192_v39  ;;  %v5335_v61 = vsub.f32 %v10216_v9, %v10929_v62  ;;  %v10926_v7 = vand.u32 4294901760, %v10268_v14  ;;  %v5348_v63 = vand.u32 4294901760, %v5347_v53  ;;  %v488_v59 = vld [vmem:[%s6461_s5 + $0x7d8] sm:$0xff] }
 0x2fd   : > { %5157 = vmatmul.f32.vlgmr.msra.gmra.mxu1 %v11218_v36  ;;  %5417 = vmatpush.msrb.mxu2 %v10199_v46  ;;  %v4097_v58 = vadd.f32 %v4096_v8, %v4043_v52  ;;  %v5365_v36 = vsub.f32 %v10294_v5, %v10923_v54  ;;  %v484_v53 = vld [vmem:[%s6461_s5 + $0x7b8] sm:$0xff] }
 0x2fe   : > { %5313 = vmatpush.msrb.mxu1 %v5312_v6  ;;  %5466 = vmatpush.msrb.mxu3 %v10165_v18  ;;  %v5336_v55 = vand.u32 4294901760, %v5335_v61  ;;  %v5353_v32 = vsub.f32 %v10268_v14, %v10926_v7  ;;  %v10922_v6 = vand.u32 4294901760, %v10307_v60  ;;  %v10921_v61 = vand.u32 4294901760, %v10319_v51  ;;  %v472_v21 = vld [vmem:[%s6461_s5 + $0x758] sm:$0xff] }
 0x2ff   : > { %5278 = vmatpush.msrb.mxu0 %v10203_v34  ;;  %5420 = vmatpush.msrb.mxu2 %v10211_v25  ;;  %v4136_v35 = vadd.f32 %v4135_v15, %v4097_v58  ;;  %v4282_v33 = vpop.f32.mrf.mxu2  ;;  %v468_v7 = vld [vmem:[%s6461_s5 + $0x738] sm:$0xff]  ;;  %v10421_v62 = vand.u32 4294901760, %v472_v21 }
 0x300   : > { %5319 = vmatpush.msrb.mxu1 %v5318_v27  ;;  %5468 = vmatpush.msrb.mxu3 %v10173_v4  ;;  %v10335_v27 = vand.u32 4294901760, %v372_v0  ;;  %v5354_v52 = vand.u32 4294901760, %v5353_v32  ;;  %v5371_v58 = vsub.f32 %v10307_v60, %v10922_v6  ;;  %v10925_v32 = vand.u32 4294901760, %v10344_v31 }
 0x301   : > { %5280 = vmatpush.msrb.mxu0 %v10225_v56  ;;  %5423 = vmatpush.msrb.mxu2 %v10216_v9  ;;  %v4205_v57 = vadd.f32 %v4204_v13, %v4136_v35  ;;  %v5377_v13 = vsub.f32 %v10319_v51, %v10921_v61  ;;  %v10369_v35 = vand.u32 4294901760, %v488_v59  ;;  %v10438_v29 = vand.u32 4294901760, %v468_v7 }
 0x302   : > { %5325 = vmatpush.msrb.mxu1 %v5324_v1  ;;  %5470 = vmatpush.msrb.mxu3 %v10184_v2  ;;  %v10348_v1 = vand.u32 4294901760, %v492_v28  ;;  %v10361_v15 = vsub.f32 %v372_v0, %v10335_v27 }
 0x303   : > { %5282 = vmatpush.msrb.mxu0 %v10239_v22  ;;  %5426 = vmatpush.msrb.mxu2 %v10231_v19  ;;  %v4242_v8 = vadd.f32 %v4241_v20, %v4205_v57  ;;  %v480_v20 = vld [vmem:[%s6461_s5 + $0x798] sm:$0xff]  ;;  %v5372_v57 = vand.u32 4294901760, %v5371_v58  ;;  %v5378_v58 = vand.u32 4294901760, %v5377_v13  ;;  %v10397_v61 = vsub.f32 %v488_v59, %v10369_v35 }
 0x304   : > { %5331 = vmatpush.msrb.mxu1 %v5330_v48  ;;  %5472 = vmatpush.msrb.mxu3 %v10192_v39  ;;  %v5360_v48 = vand.u32 4294901760, %v5359_v47  ;;  %v10375_v0 = vsub.f32 %v492_v28, %v10348_v1  ;;  %v4383_v47 = vpop.f32.mrf.mxu3  ;;  %v10930_v28 = vand.u32 4294901760, %v10361_v15 }
 0x305   : > { %5284 = vmatpush.msrb.mxu0 %v10251_v49  ;;  %5429 = vmatpush.msrb.mxu2 %v10254_v44 }
 0x306   : > { %5337 = vmatpush.msrb.mxu1 %v5336_v55  ;;  %5474 = vmatpush.msrb.mxu3 %v10203_v34  ;;  %v10355_v55 = vand.u32 4294901760, %v368_v38  ;;  %v10932_v54 = vand.u32 4294901760, %v10375_v0 }
 0x307   : > { %5286 = vmatpush.msrb.mxu0 %v10265_v26  ;;  %5432 = vmatpush.msrb.mxu2 %v10268_v14 }
 0x308   : > { %5343 = vmatpush.msrb.mxu1 %v5342_v12  ;;  %5476 = vmatpush.msrb.mxu3 %v10225_v56  ;;  %v5366_v12 = vand.u32 4294901760, %v5365_v36  ;;  %v10382_v36 = vsub.f32 %v368_v38, %v10355_v55  ;;  %v5389_v38 = vsub.f32 %v10344_v31, %v10925_v32 }
 0x309   : > { %5288 = vmatpush.msrb.mxu0 %v10277_v41  ;;  %5435 = vmatpush.msrb.mxu2 %v10281_v3 }
 0x30a   : > { %5349 = vmatpush.msrb.mxu1 %v5348_v63  ;;  %5478 = vmatpush.msrb.mxu3 %v10239_v22  ;;  %v4283_v63 = vadd.f32 %v4282_v33, %v4242_v8  ;;  %v10384_v8 = vand.u32 4294901760, %v484_v53  ;;  %v476_v33 = vld [vmem:[%s6461_s5 + $0x778] sm:$0xff]  ;;  %v10933_v32 = vand.u32 4294901760, %v10382_v36 }
 0x30b   : > { %5290 = vmatpush.msrb.mxu0 %v10290_v11  ;;  %5438 = vmatpush.msrb.mxu2 %v10294_v5 }
 0x30c   : > { %5355 = vmatpush.msrb.mxu1 %v5354_v52  ;;  %5480 = vmatpush.msrb.mxu3 %v10251_v49  ;;  %v5383_v52 = vsub.f32 %v10330_v43, %v10920_v16  ;;  %v4437_v16 = vpop.f32.mrf.mxu0  ;;  %v4384_v6 = vadd.f32 %v4383_v47, %v4283_v63  ;;  %v10408_v59 = vsub.f32 %v484_v53, %v10384_v8  ;;  %v10934_v53 = vand.u32 4294901760, %v10397_v61 }
 0x30d   : > { %5292 = vmatpush.msrb.mxu0 %v10303_v17  ;;  %5441 = vmatpush.msrb.mxu2 %v10307_v60  ;;  %v5395_v47 = vsub.f32 %v10361_v15, %v10930_v28 }
 0x30e   : > { %5361 = vmatpush.msrb.mxu1 %v5360_v48  ;;  %5482 = vmatpush.msrb.mxu3 %v10265_v26  ;;  %v10390_v48 = vand.u32 4294901760, %v480_v20  ;;  %v5384_v13 = vand.u32 4294901760, %v5383_v52  ;;  %v4438_v63 = vadd.f32 %v4437_v16, %v4384_v6  ;;  %v5390_v52 = vand.u32 4294901760, %v5389_v38  ;;  %v11219_v6 = vld [vmem:[#allocation23_spill] sm:$0xff] }
 0x30f   : > { %5294 = vmatpush.msrb.mxu0 %v10315_v40  ;;  %5444 = vmatpush.msrb.mxu2 %v10319_v51  ;;  %v5652_v16 = vsub.f32 %v10375_v0, %v10932_v54  ;;  %v464_v38 = vld [vmem:[%s6461_s5 + $0x718] sm:$0xff]  ;;  %v10936_v28 = vand.u32 4294901760, %v10408_v59  ;;  %v10450_v54 = vsub.f32 %v472_v21, %v10421_v62 }
 0x310   : > { %5367 = vmatpush.msrb.mxu1 %v5366_v12  ;;  %5484 = vmatpush.msrb.mxu3 %v10277_v41  ;;  %v10402_v12 = vand.u32 4294901760, %v476_v33 }
 0x311   : > { %5296 = vmatpush.msrb.mxu0 %v10335_v27  ;;  %5447 = vmatpush.msrb.mxu2 %v10330_v43 }
 0x312   : > { %5373 = vmatpush.msrb.mxu1 %v5372_v57  ;;  %5486 = vmatpush.msrb.mxu3 %v10290_v11  ;;  %v10416_v57 = vsub.f32 %v480_v20, %v10390_v48 }
 0x313   : > { %5298 = vmatpush.msrb.mxu0 %v10355_v55  ;;  %5450 = vmatpush.msrb.mxu2 %v10344_v31 }
 0x314   : > { %5379 = vmatpush.msrb.mxu1 %v5378_v58  ;;  %5488 = vmatpush.msrb.mxu3 %v10303_v17  ;;  %v4476_v10 = vpop.f32.mrf.mxu1  ;;  %v4545_v30 = vpop.f32.mrf.mxu2  ;;  %v10429_v58 = vsub.f32 %v476_v33, %v10402_v12 }
 0x315   : > { %5304 = vmatmul.f32.vlgmr.msrb.gmra.mxu0 %v11219_v6  ;;  %5453 = vmatpush.msrb.mxu2 %v10361_v15  ;;  %v4477_v20 = vadd.f32 %v4476_v10, %v4438_v63  ;;  %v5401_v6 = vsub.f32 %v10382_v36, %v10933_v32  ;;  %v5396_v10 = vand.u32 4294901760, %v5395_v47  ;;  %v10935_v63 = vand.u32 4294901760, %v10416_v57 }
 0x316   : > { %5505 = vmatpush.msra.mxu0 %v5310_v23  ;;  %5385 = vmatpush.msrb.mxu1 %v5384_v13  ;;  %v460_v23 = vld [vmem:[%s6461_s5 + $0x6f8] sm:$0xff]  ;;  %v5658_v13 = vsub.f32 %v10397_v61, %v10934_v53  ;;  %v10452_v32 = vand.u32 4294901760, %v464_v38  ;;  %v5653_v47 = vand.u32 4294901760, %v5652_v16  ;;  %v10937_v50 = vand.u32 4294901760, %v10429_v58  ;;  %v11221_v16 = vld [vmem:[#allocation22_spill] sm:$0xff] }
 0x317   : > { %5490 = vmatpush.msrb.mxu3 %v10315_v40  ;;  %5456 = vmatpush.msrb.mxu2 %v10382_v36  ;;  %v4546_v33 = vadd.f32 %v4545_v30, %v4477_v20  ;;  %v4582_v37 = vpop.f32.mrf.mxu3  ;;  %v11220_v30 = vld [vmem:[#allocation21_spill] sm:$0xff]  ;;  %v5402_v21 = vand.u32 4294901760, %v5401_v6  ;;  %v10465_v53 = vsub.f32 %v468_v7, %v10438_v29  ;;  %v5670_v46 = vsub.f32 %v10416_v57, %v10935_v63  ;;  %v444_v7 = vld [vmem:[%s6461_s5 + $0x678] sm:$0xff] }
 0x318   : > { %5509 = vmatpush.msra.mxu0 %v5316_v45  ;;  %5391 = vmatpush.msrb.mxu1 %v5390_v52  ;;  %v456_v45 = vld [vmem:[%s6461_s5 + $0x6d8] sm:$0xff]  ;;  %v5664_v52 = vsub.f32 %v10408_v59, %v10936_v28  ;;  %v11222_v6 = vand.u32 4294901760, %v10211_v25  ;;  %v11223_v25 = vand.u32 4294901760, %v10216_v9  ;;  %v11224_v28 = vld [vmem:[#allocation12_spill] sm:$0xff]  ;;  %v11225_v9 = vand.u32 4294901760, %v10450_v54 }
 0x319   : > { %5492 = vmatpush.msrb.mxu3 %v10335_v27  ;;  %5459 = vmatmul.f32.vlgmr.msrb.gmra.mxu2 %v11220_v30  ;;  %v4583_v20 = vadd.f32 %v4582_v37, %v4546_v33  ;;  %v10467_v30 = vand.u32 4294901760, %v460_v23  ;;  %v5659_v33 = vand.u32 4294901760, %v5658_v13  ;;  %v10480_v37 = vsub.f32 %v464_v38, %v10452_v32 }
 0x31a   : > { %5513 = vmatpush.msra.mxu0 %v5322_v42  ;;  %5609 = vmatpush.msra.mxu2 %v10348_v1  ;;  %v452_v42 = vld [vmem:[%s6461_s5 + $0x6b8] sm:$0xff]  ;;  %v5665_v13 = vand.u32 4294901760, %v5664_v52 }
 0x31b   : > { %5397 = vmatpush.msrb.mxu1 %v5396_v10  ;;  %5494 = vmatpush.msrb.mxu3 %v10355_v55  ;;  %5966 = vst [vmem:[%s8373_s18 + $0x10] sm:$0xff] %v4583_v20  ;;  %v10482_v10 = vand.u32 4294901760, %v456_v45  ;;  %v5676_v20 = vsub.f32 %v10429_v58, %v10937_v50  ;;  %v10493_v38 = vsub.f32 %v460_v23, %v10467_v30  ;;  %v10495_v63 = vand.u32 4294901760, %v452_v42 }
 0x31c   : > { %5498 = vmatmul.f32.vlgmr.msrb.gmra.mxu3 %v11221_v16  ;;  %5517 = vmatpush.msra.mxu0 %v11222_v6  ;;  %v448_v16 = vld [vmem:[%s6461_s5 + $0x698] sm:$0xff]  ;;  %v10938_v6 = vand.u32 4294901760, %v10465_v53  ;;  %v10939_v52 = vand.u32 4294901760, %v10480_v37  ;;  %v11226_v50 = vand.u32 4294901760, %v10231_v19 }
 0x31d   : > { %5611 = vmatpush.msra.mxu2 %v10369_v35  ;;  %5654 = vmatpush.msra.mxu3 %v5653_v47  ;;  %v5671_v47 = vand.u32 4294901760, %v5670_v46  ;;  %v10506_v23 = vsub.f32 %v456_v45, %v10482_v10  ;;  %v5677_v46 = vand.u32 4294901760, %v5676_v20  ;;  %v10519_v45 = vsub.f32 %v452_v42, %v10495_v63  ;;  %v440_v19 = vld [vmem:[%s6461_s5 + $0x658] sm:$0xff] }
 0x31e   : > { %5403 = vmatpush.msrb.mxu1 %v5402_v21  ;;  %5521 = vmatpush.msra.mxu0 %v11223_v25  ;;  %v5682_v21 = vsub.f32 %v10450_v54, %v11225_v9  ;;  %v10508_v25 = vand.u32 4294901760, %v448_v16  ;;  %v10521_v9 = vand.u32 4294901760, %v444_v7  ;;  %v5694_v20 = vsub.f32 %v10480_v37, %v10939_v52  ;;  %v432_v52 = vld [vmem:[%s6461_s5 + $0x618] sm:$0xff] }
 0x31f   : > { %5405 = vmatmul.f32.vlgmr.msrb.gmra.mxu1 %v11224_v28  ;;  %5613 = vmatpush.msra.mxu2 %v10384_v8  ;;  %v5705_v42 = vand.u32 4294901760, %v10506_v23 }
 0x320   : > { %5572 = vmatpush.msra.mxu1 %v10157_v24  ;;  %5660 = vmatpush.msra.mxu3 %v5659_v33  ;;  %v5688_v24 = vsub.f32 %v10465_v53, %v10938_v6  ;;  %v5699_v33 = vand.u32 4294901760, %v10493_v38  ;;  %v436_v6 = vld [vmem:[%s6461_s5 + $0x638] sm:$0xff] }
 0x321   : > { %5525 = vmatpush.msra.mxu0 %v11226_v50  ;;  %5615 = vmatpush.msra.mxu2 %v10390_v48  ;;  %v11227_v50 = vand.u32 4294901760, %v10254_v44  ;;  %v11228_v44 = vand.u32 4294901760, %v10268_v14  ;;  %v11229_v14 = vand.u32 4294901760, %v10281_v3 }
 0x322   : > { %5574 = vmatpush.msra.mxu1 %v10165_v18  ;;  %5666 = vmatpush.msra.mxu3 %v5665_v13  ;;  %v5683_v18 = vand.u32 4294901760, %v5682_v21  ;;  %v10533_v13 = vsub.f32 %v448_v16, %v10508_v25  ;;  %v5711_v21 = vand.u32 4294901760, %v10519_v45  ;;  %v10547_v16 = vsub.f32 %v444_v7, %v10521_v9 }
 0x323   : > { %5529 = vmatpush.msra.mxu0 %v11227_v50  ;;  %5617 = vmatpush.msra.mxu2 %v10402_v12  ;;  %v10539_v50 = vand.u32 4294901760, %v440_v19  ;;  %v11230_v7 = vand.u32 4294901760, %v10294_v5  ;;  %v11231_v5 = vand.u32 4294901760, %v10307_v60 }
 0x324   : > { %5576 = vmatpush.msra.mxu1 %v10173_v4  ;;  %5672 = vmatpush.msra.mxu3 %v5671_v47  ;;  %v5689_v4 = vand.u32 4294901760, %v5688_v24  ;;  %v5700_v47 = vsub.f32 %v10493_v38, %v5699_v33  ;;  %v5717_v24 = vand.u32 4294901760, %v10533_v13 }
 0x325   : > { %5533 = vmatpush.msra.mxu0 %v11228_v44  ;;  %5619 = vmatpush.msra.mxu2 %v10421_v62  ;;  %v10553_v44 = vand.u32 4294901760, %v436_v6  ;;  %v10564_v3 = vsub.f32 %v440_v19, %v10539_v50 }
 0x326   : > { %5578 = vmatpush.msra.mxu1 %v10184_v2  ;;  %5678 = vmatpush.msra.mxu3 %v5677_v46  ;;  %v5695_v2 = vand.u32 4294901760, %v5694_v20  ;;  %v5706_v46 = vsub.f32 %v10506_v23, %v5705_v42  ;;  %v5723_v20 = vand.u32 4294901760, %v10547_v16 }
 0x327   : > { %5537 = vmatpush.msra.mxu0 %v11229_v14  ;;  %5621 = vmatpush.msra.mxu2 %v10438_v29  ;;  %v10566_v14 = vand.u32 4294901760, %v432_v52  ;;  %v10577_v19 = vsub.f32 %v436_v6, %v10553_v44  ;;  %v5729_v60 = vand.u32 4294901760, %v10564_v3 }
 0x328   : > { %5580 = vmatpush.msra.mxu1 %v10192_v39  ;;  %5684 = vmatpush.msra.mxu3 %v5683_v18  ;;  %v5701_v39 = vand.u32 4294901760, %v5700_v47  ;;  %v5712_v18 = vsub.f32 %v10519_v45, %v5711_v21  ;;  %v11232_v47 = vand.u32 4294901760, %v10319_v51  ;;  %v5724_v6 = vsub.f32 %v10547_v16, %v5723_v20 }
 0x329   : > { %5541 = vmatpush.msra.mxu0 %v11230_v7  ;;  %5623 = vmatpush.msra.mxu2 %v10452_v32  ;;  %v10588_v7 = vsub.f32 %v432_v52, %v10566_v14  ;;  %v5735_v51 = vand.u32 4294901760, %v10577_v19 }
 0x32a   : > { %5582 = vmatpush.msra.mxu1 %v10203_v34  ;;  %5690 = vmatpush.msra.mxu3 %v5689_v4  ;;  %v5707_v34 = vand.u32 4294901760, %v5706_v46  ;;  %v5718_v4 = vsub.f32 %v10533_v13, %v5717_v24  ;;  %v11234_v46 = vand.u32 4294901760, %v10344_v31  ;;  %v11236_v31 = vand.u32 4294901760, %v10382_v36 }
 0x32b   : > { %5545 = vmatpush.msra.mxu0 %v11231_v5  ;;  %5625 = vmatpush.msra.mxu2 %v10467_v30  ;;  %v11238_v36 = vand.u32 4294901760, %v10375_v0 }
 0x32c   : > { %5584 = vmatpush.msra.mxu1 %v10225_v56  ;;  %5696 = vmatpush.msra.mxu3 %v5695_v2  ;;  %v5713_v56 = vand.u32 4294901760, %v5712_v18  ;;  %v11233_v2 = vand.u32 4294901760, %v10330_v43  ;;  %v5719_v52 = vand.u32 4294901760, %v5718_v4  ;;  %v5741_v43 = vand.u32 4294901760, %v10588_v7 }
 0x32d   : > { %5549 = vmatpush.msra.mxu0 %v11232_v47  ;;  %5627 = vmatpush.msra.mxu2 %v10482_v10  ;;  %v11235_v18 = vand.u32 4294901760, %v10361_v15 }
 0x32e   : > { %5586 = vmatpush.msra.mxu1 %v10239_v22  ;;  %5702 = vmatpush.msra.mxu3 %v5701_v39  ;;  %v5730_v22 = vsub.f32 %v10564_v3, %v5729_v60  ;;  %v5725_v39 = vand.u32 4294901760, %v5724_v6  ;;  %v5742_v15 = vsub.f32 %v10588_v7, %v5741_v43 }
 0x32f   : > { %5553 = vmatpush.msra.mxu0 %v11233_v2  ;;  %5629 = vmatpush.msra.mxu2 %v10495_v63 }
 0x330   : > { %5588 = vmatpush.msra.mxu1 %v10251_v49  ;;  %5708 = vmatpush.msra.mxu3 %v5707_v34  ;;  %v5736_v49 = vsub.f32 %v10577_v19, %v5735_v51  ;;  %v11240_v34 = vand.u32 4294901760, %v10397_v61 }
 0x331   : > { %5557 = vmatpush.msra.mxu0 %v11234_v46  ;;  %5631 = vmatpush.msra.mxu2 %v10508_v25 }
 0x332   : > { %5590 = vmatpush.msra.mxu1 %v10265_v26  ;;  %5714 = vmatpush.msra.mxu3 %v5713_v56  ;;  %v5731_v26 = vand.u32 4294901760, %v5730_v22  ;;  %v5737_v5 = vand.u32 4294901760, %v5736_v49 }
 0x333   : > { %5561 = vmatpush.msra.mxu0 %v11235_v18  ;;  %5633 = vmatpush.msra.mxu2 %v10521_v9 }
 0x334   : > { %5592 = vmatpush.msra.mxu1 %v10277_v41  ;;  %5720 = vmatpush.msra.mxu3 %v5719_v52  ;;  %v5743_v41 = vand.u32 4294901760, %v5742_v15 }
 0x335   : > { %5565 = vmatpush.msra.mxu0 %v11236_v31  ;;  %5635 = vmatpush.msra.mxu2 %v10539_v50 }
 0x336   : > { %5594 = vmatpush.msra.mxu1 %v10290_v11  ;;  %5726 = vmatpush.msra.mxu3 %v5725_v39  ;;  %v11237_v11 = vld [vmem:[#allocation27_spill] sm:$0xff] }
 0x337   : > { %5567 = vmatmul.f32.vlgmr.msra.gmra.mxu0 %v11224_v28  ;;  %5637 = vmatpush.msra.mxu2 %v10553_v44 }
 0x338   : > { %5752 = vmatpush.msrb.mxu0 %v10375_v0  ;;  %5596 = vmatpush.msra.mxu1 %v10303_v17  ;;  %v11239_v17 = vld [vmem:[#allocation24_spill] sm:$0xff] }
 0x339   : > { %5732 = vmatpush.msra.mxu3 %v5731_v26  ;;  %5639 = vmatpush.msra.mxu2 %v10566_v14 }
 0x33a   : > { %5755 = vmatpush.msrb.mxu0 %v10397_v61  ;;  %5598 = vmatpush.msra.mxu1 %v10315_v40  ;;  %v11241_v40 = vand.u32 4294901760, %v10408_v59  ;;  %v11243_v61 = vand.u32 4294901760, %v10429_v58 }
 0x33b   : > { %5738 = vmatpush.msra.mxu3 %v5737_v5  ;;  %5645 = vmatmul.f32.vlgmr.msra.gmra.mxu2 %v11237_v11 }
 0x33c   : > { %5758 = vmatpush.msrb.mxu0 %v10408_v59  ;;  %5846 = vmatpush.msrb.mxu2 %v11238_v36 }
 0x33d   : > { %5600 = vmatpush.msra.mxu1 %v10335_v27  ;;  %5744 = vmatpush.msra.mxu3 %v5743_v41  ;;  %v11242_v27 = vand.u32 4294901760, %v10416_v57 }
 0x33e   : > { %5746 = vmatmul.f32.vlgmr.msra.gmra.mxu3 %v11239_v17  ;;  %5761 = vmatpush.msrb.mxu0 %v10416_v57 }
 0x33f   : > { %5850 = vmatpush.msrb.mxu2 %v11240_v34  ;;  %5913 = vmatpush.msrb.mxu3 %v10348_v1 }
 0x340   : > { %5602 = vmatpush.msra.mxu1 %v10355_v55  ;;  %5764 = vmatpush.msrb.mxu0 %v10429_v58  ;;  %v11245_v55 = vand.u32 4294901760, %v10465_v53 }
 0x341   : > { %5604 = vmatmul.f32.vlgmr.msra.gmra.mxu1 %v11224_v28  ;;  %5854 = vmatpush.msrb.mxu2 %v11241_v40 }
 0x342   : > { %5805 = vmatpush.msrb.mxu1 %v10348_v1  ;;  %5915 = vmatpush.msrb.mxu3 %v10369_v35  ;;  %v11244_v1 = vand.u32 4294901760, %v10450_v54 }
 0x343   : > { %5767 = vmatpush.msrb.mxu0 %v10450_v54  ;;  %5858 = vmatpush.msrb.mxu2 %v11242_v27 }
 0x344   : > { %5807 = vmatpush.msrb.mxu1 %v10369_v35  ;;  %5917 = vmatpush.msrb.mxu3 %v10384_v8  ;;  %v11246_v35 = vand.u32 4294901760, %v10480_v37 }
 0x345   : > { %5770 = vmatpush.msrb.mxu0 %v10465_v53  ;;  %5862 = vmatpush.msrb.mxu2 %v11243_v61 }
 0x346   : > { %5809 = vmatpush.msrb.mxu1 %v10384_v8  ;;  %5919 = vmatpush.msrb.mxu3 %v10390_v48 }
 0x347   : > { %5773 = vmatpush.msrb.mxu0 %v10480_v37  ;;  %5866 = vmatpush.msrb.mxu2 %v11244_v1 }
 0x348   : > { %5811 = vmatpush.msrb.mxu1 %v10390_v48  ;;  %5921 = vmatpush.msrb.mxu3 %v10402_v12 }
 0x349   : > { %5776 = vmatpush.msrb.mxu0 %v10493_v38  ;;  %5870 = vmatpush.msrb.mxu2 %v11245_v55 }
 0x34a   : > { %5813 = vmatpush.msrb.mxu1 %v10402_v12  ;;  %5923 = vmatpush.msrb.mxu3 %v10421_v62 }
 0x34b   : > { %5779 = vmatpush.msrb.mxu0 %v10506_v23  ;;  %5874 = vmatpush.msrb.mxu2 %v11246_v35 }
 0x34c   : > { %5815 = vmatpush.msrb.mxu1 %v10421_v62  ;;  %5925 = vmatpush.msrb.mxu3 %v10438_v29  ;;  %v11248_v62 = vld [vmem:[#allocation26_spill] sm:$0xff] }
 0x34d   : > { %5782 = vmatpush.msrb.mxu0 %v10519_v45  ;;  %5878 = vmatpush.msrb.mxu2 %v5699_v33 }
 0x34e   : > { %5817 = vmatpush.msrb.mxu1 %v10438_v29  ;;  %5927 = vmatpush.msrb.mxu3 %v10452_v32  ;;  %v11247_v29 = vld [vmem:[#allocation25_spill] sm:$0xff] }
 0x34f   : > { %5785 = vmatpush.msrb.mxu0 %v10533_v13  ;;  %5882 = vmatpush.msrb.mxu2 %v5705_v42 }
 0x350   : > { %5819 = vmatpush.msrb.mxu1 %v10452_v32  ;;  %5929 = vmatpush.msrb.mxu3 %v10467_v30  ;;  %v4623_v32 = vpop.f32.mrf.mxu0 }
 0x351   : > { %5788 = vmatpush.msrb.mxu0 %v10547_v16  ;;  %5886 = vmatpush.msrb.mxu2 %v5711_v21 }
 0x352   : > { %5821 = vmatpush.msrb.mxu1 %v10467_v30  ;;  %5931 = vmatpush.msrb.mxu3 %v10482_v10 }
 0x353   : > { %5791 = vmatpush.msrb.mxu0 %v10564_v3  ;;  %5890 = vmatpush.msrb.mxu2 %v5717_v24  ;;  %v4724_v54 = vpop.f32.mrf.mxu1 }
 0x354   : > { %5823 = vmatpush.msrb.mxu1 %v10482_v10  ;;  %5933 = vmatpush.msrb.mxu3 %v10495_v63  ;;  %v4725_v0 = vadd.f32 %v4724_v54, %v4623_v32  ;;  %v4778_v8 = vpop.f32.mrf.mxu2 }
 0x355   : > { %5794 = vmatpush.msrb.mxu0 %v10577_v19  ;;  %5894 = vmatpush.msrb.mxu2 %v5723_v20 }
 0x356   : > { %5825 = vmatpush.msrb.mxu1 %v10495_v63  ;;  %5935 = vmatpush.msrb.mxu3 %v10508_v25  ;;  %v4779_v28 = vadd.f32 %v4778_v8, %v4725_v0 }
 0x357   : > { %5797 = vmatpush.msrb.mxu0 %v10588_v7  ;;  %5898 = vmatpush.msrb.mxu2 %v5729_v60  ;;  %v4817_v48 = vpop.f32.mrf.mxu3 }
 0x358   : > { %5827 = vmatpush.msrb.mxu1 %v10508_v25  ;;  %5937 = vmatpush.msrb.mxu3 %v10521_v9  ;;  %v4818_v12 = vadd.f32 %v4817_v48, %v4779_v28 }
 0x359   : > { %5800 = vmatmul.f32.vlgmr.msrb.gmra.mxu0 %v11247_v29  ;;  %5902 = vmatpush.msrb.mxu2 %v5735_v51 }
 0x35a   : > { %5829 = vmatpush.msrb.mxu1 %v10521_v9  ;;  %5939 = vmatpush.msrb.mxu3 %v10539_v50  ;;  %v4886_v59 = vpop.f32.mrf.mxu0 }
 0x35b   : > { %5906 = vmatpush.msrb.mxu2 %v5741_v43  ;;  %v4887_v57 = vadd.f32 %v4886_v59, %v4818_v12 }
 0x35c   : > { %5831 = vmatpush.msrb.mxu1 %v10539_v50  ;;  %5941 = vmatpush.msrb.mxu3 %v10553_v44 }
 0x35d   : > { %5908 = vmatmul.f32.vlgmr.msrb.gmra.mxu2 %v11239_v17  ;;  %v4923_v53 = vpop.f32.mrf.mxu1 }
 0x35e   : > { %5833 = vmatpush.msrb.mxu1 %v10553_v44  ;;  %5943 = vmatpush.msrb.mxu3 %v10566_v14  ;;  %v4924_v58 = vadd.f32 %v4923_v53, %v4887_v57  ;;  %v4964_v63 = vpop.f32.mrf.mxu2 }
 0x35f   : > { %5945 = vmatmul.f32.vlgmr.msrb.gmra.mxu3 %v11239_v17 }
 0x360   : > { %5835 = vmatpush.msrb.mxu1 %v10566_v14  ;;  %v4965_v30 = vadd.f32 %v4964_v63, %v4924_v58 }
 0x361   : > { %5839 = vmatmul.f32.vlgmr.msrb.gmra.mxu1 %v11248_v62  ;;  %v5065_v37 = vpop.f32.mrf.mxu3 }
 0x362   : > { %v5066_v38 = vadd.f32 %v5065_v37, %v4965_v30 }
 0x370   : > { %v5119_v10 = vpop.f32.mrf.mxu0 }
 0x371   : > { %v5120_v25 = vadd.f32 %v5119_v10, %v5066_v38 }
 0x37a   : > { %v5158_v23 = vpop.f32.mrf.mxu1  ;;  %v5227_v45 = vpop.f32.mrf.mxu2 }
 0x37b   : > { %v5159_v33 = vadd.f32 %v5158_v23, %v5120_v25 }
 0x37d   : > { %v5228_v9 = vadd.f32 %v5227_v45, %v5159_v33  ;;  %v5264_v42 = vpop.f32.mrf.mxu3 }
 0x37f   : > { %v5265_v50 = vadd.f32 %v5264_v42, %v5228_v9 }
 0x392   : > { %v5305_v13 = vpop.f32.mrf.mxu0 }
 0x393   : > { %v5306_v16 = vadd.f32 %v5305_v13, %v5265_v50 }
 0x39c   : > { %v5406_v21 = vpop.f32.mrf.mxu1  ;;  %v5460_v24 = vpop.f32.mrf.mxu2 }
 0x39d   : > { %v5407_v44 = vadd.f32 %v5406_v21, %v5306_v16 }
 0x39f   : > { %v5461_v3 = vadd.f32 %v5460_v24, %v5407_v44  ;;  %v5499_v14 = vpop.f32.mrf.mxu3 }
 0x3a1   : > { %v5500_v19 = vadd.f32 %v5499_v14, %v5461_v3 }
 0x3b4   : > { %v5568_v20 = vpop.f32.mrf.mxu0 }
 0x3b5   : > { %v5569_v47 = vadd.f32 %v5568_v20, %v5500_v19 }
 0x3be   : > { %v5605_v4 = vpop.f32.mrf.mxu1  ;;  %v5646_v7 = vpop.f32.mrf.mxu2 }
 0x3bf   : > { %v5606_v60 = vadd.f32 %v5605_v4, %v5569_v47 }
 0x3c1   : > { %v5647_v56 = vadd.f32 %v5646_v7, %v5606_v60  ;;  %v5747_v6 = vpop.f32.mrf.mxu3 }
 0x3c3   : > { %v5748_v51 = vadd.f32 %v5747_v6, %v5647_v56 }
 0x3d6   : > { %v5801_v2 = vpop.f32.mrf.mxu0 }
 0x3d7   : > { %v5802_v52 = vadd.f32 %v5801_v2, %v5748_v51 }
 0x3de   : > { %v5840_v46 = vpop.f32.mrf.mxu1 }
 0x3df   : > { %v5841_v22 = vadd.f32 %v5840_v46, %v5802_v52 }
 0x3e0   : > { %v5909_v43 = vpop.f32.mrf.mxu2 }
 0x3e1   : > { %v5910_v39 = vadd.f32 %v5909_v43, %v5841_v22 }
 0x3e2   : > { %v5946_v18 = vpop.f32.mrf.mxu3 }
 0x3e3   : > { %v5947_v49 = vadd.f32 %v5946_v18, %v5910_v39 }
 0x3e5   : > { %5967 = vst [vmem:[%s8373_s18 + $0x18] sm:$0xff] %v5947_v49 }
 0x3e6   : > { %6273 = shalt.err (!%p6270_p13)
}
 0x3e7   : > { %6116 = dma.vmem_to_hbm [thread:$0]  (%p6405_p8), %s5985_s7, 512, %s5987_s8, %s5969_s15  }
 0x3e8 PF: > { %p6133_p0 = scmp.ge.s32.totalorder %s6332_s14, 2  ;;  %s5998_s17 = sand.u32 1, %s6312_s9  }
 0x3e9   : > { %s5999_s3 = scalar_lea.sflag [#allocation5], %s5998_s17 }
 0x3ea   : > { %p6127_p1 = pnand %p6133_p0, %p6409_p9 }
 0x3ec   : > { %p6128_p2 = pneg %p6127_p1 }
 0x3ee   : > { %6307 = dma.done.wait (%p6128_p2), %s5999_s3, 512  }
 0x3ef   : > { %6309 = vsyncadd (%p6128_p2), %s5999_s3, 4294966784  ;;  %s19_s14 = sadd.s32 1, %s6332_s14   ;;  %s11249_s9 = smov %s6316_s10 }
 0x3f0   : > { %p16_p4 = scmp.ge.s32.totalorder %s19_s14, 5   ;;  %s11250_s10 = smov %s6320_s11 }
 0x3f1   : > { %s11251_s11 = smov %s6446_s23  ;;  %s11252_s12 = smov %s6328_s13 }
 0x3f2   : > { %s11253_s13 = smov %s11255_s30  ;;  %18 = sbr.rel (!%p16_p4) target bundleno = 9 (0x9), region = 87 }
 0x3f7   :  { %6005 = vsyncpa [#allocation4], 1 }
 0x3f8   :  { %6007 = vsyncpa [#allocation4 + $0x1], 1 }
 0x3f9   :  { %6008 = vsyncpa [#allocation7], 1 }
 0x3fa   :  { %6010 = vsyncpa [#allocation7 + $0x1], 1 }
 0x3fb   :  { %6011 = vsyncpa [#allocation5], 1 }
 0x3fc   :  { %6013 = vsyncpa [#allocation5 + $0x1], 1 }

</bundles_post_ra>
